<compile_context>
chip_gen: v6e
topology: v6e:2x2x1
jax: 0.10.0
libtpu: 0.0.40
codegen_flags: <defaults>
</compile_context>

<pallas_src>
import jax
import jax.numpy as jnp
from jax.experimental import pallas as pl
from jax.experimental.pallas import tpu as pltpu


def _pointnet_kernel(x_ref,
                     w1_ref, b1_ref,
                     w2_ref, b2_ref,
                     w3_ref, b3_ref,
                     w4_ref, b4_ref,
                     o_ref,
                     gmax_ref):
    n_idx = pl.program_id(1)
    TB, NC, Cin = x_ref.shape
    M = TB * NC

    # ---- init running max at the first N-chunk ------------------------------
    @pl.when(n_idx == 0)
    def _():
        gmax_ref[...] = jnp.full(gmax_ref.shape, -jnp.inf, gmax_ref.dtype)

    # ---- local layer 1 (K = Cin = 3): unrolled f32 VPU FMAs -----------------
    x = x_ref[...].reshape(M, Cin)                     # f32; NC % 8 == 0 -> free view
    w1 = w1_ref[...]                                   # (Cin, C1) f32
    h = x[:, 0:1] * w1[0:1, :]
    for i in range(1, Cin):
        h = h + x[:, i:i + 1] * w1[i:i + 1, :]
    h = jnp.maximum(h + b1_ref[...], 0.0).astype(jnp.bfloat16)      # (M, C1)

    # ---- local layers 2-3: bf16 MXU matmul, f32 accumulate, early bf16 cast -
    h = jnp.dot(h, w2_ref[...], preferred_element_type=jnp.float32)
    h = jnp.maximum(h + b2_ref[...], 0.0).astype(jnp.bfloat16)      # (M, C2)

    h = jnp.dot(h, w3_ref[...], preferred_element_type=jnp.float32)
    h = jnp.maximum(h + b3_ref[...], 0.0).astype(jnp.bfloat16)      # (M, C3)

    # ---- running global max-pool over this N-chunk (bf16) -------------------
    m = jnp.max(h.reshape(TB, NC, -1), axis=1)                      # (TB, C3)
    gmax_ref[...] = jnp.maximum(gmax_ref[...], m)

    # ---- last chunk: global MLP (Linear + folded BN + ReLU) and store -------
    @pl.when(n_idx == pl.num_programs(1) - 1)
    def _():
        o = jnp.dot(gmax_ref[...], w4_ref[...],
                    preferred_element_type=jnp.float32)
        o = jnp.maximum(o + b4_ref[...], 0.0)                       # (TB, CG)
        o_ref[...] = o.astype(o_ref.dtype)


def pointnet_extractor_forward(points, folded_params, *, tb=None, n_chunk=None,
                               vmem_limit_bytes=None):
    """points: (B, N, pc_dim) float32 (observation layout, pre-transpose).
    folded_params: (w1, b1, w2, b2, w3, b3, w4, b4) with inference-mode BN
    folded into weights and biases.  Returns (B, global_channels[-1]) f32."""
    B, N, Cin = points.shape
    assert N % 8 == 0, "N must be a multiple of 8 for aligned reshapes"
    points = points.astype(jnp.float32)
    w1, b1, w2, b2, w3, b3, w4, b4 = folded_params
    C1, C2, C3, CG = w1.shape[1], w2.shape[1], w3.shape[1], w4.shape[1]

    # Batch tile: the biggest single lever.  Keep >= 2 grid tiles along batch
    # (v7x has 2 TensorCores; the parallel axis is the only thing sharding the
    # kernel across them) and cap at 64 so per-step activations fit v7x's
    # smaller VMEM.  Multiple of 8 for aligned sublane tiles.
    if tb is None:
        tb = max(8, min(64, 8 * pl.cdiv(B, 16)))
    # N-chunk for the running-max pipeline: peak activations are
    # O(tb * n_chunk * C) instead of O(tb * N * C).
    if n_chunk is None:
        n_chunk = next((c for c in (64, 32, 16, 8) if N % c == 0), N)
    assert N % n_chunk == 0 and n_chunk % 8 == 0

    num_b = pl.cdiv(B, tb)
    num_n = N // n_chunk
    Bp = num_b * tb
    if Bp != B:
        points = jnp.pad(points, ((0, Bp - B), (0, 0), (0, 0)))

    # bf16 only for the MXU weights of layers 2-4; raw points stay f32.
    w2b, w3b, w4b = (w.astype(jnp.bfloat16) for w in (w2, w3, w4))

    # Advisory cost hint: this kernel is small and latency-bound, a correct
    # hint lets XLA overlap surrounding ops instead of treating it as opaque.
    flops = 2 * Bp * N * (Cin * C1 + C1 * C2 + C2 * C3) + 2 * Bp * C3 * CG
    weight_bytes = sum(int(a.size) * a.dtype.itemsize
                       for a in (w1, b1, w2b, b2, w3b, b3, w4b, b4))
    bytes_accessed = int(points.size) * 4 + weight_bytes + Bp * CG * 4
    cost = pl.CostEstimate(flops=int(flops), transcendentals=0,
                           bytes_accessed=int(bytes_accessed))

    # Explicit VMEM budget derived from the tile sizes (with headroom).
    if vmem_limit_bytes is None:
        M = tb * n_chunk
        act = M * (C1 * 6 + C2 * 6 + C3 * 6)       # f32 + bf16 activation copies
        xbuf = 2 * tb * n_chunk * 128 * 4          # lane-padded (.., 3) input, 2 bufs
        est = act + xbuf + 2 * weight_bytes + 4 * tb * CG * 4
        vmem_limit_bytes = int(min(96 * 2**20, max(32 * 2**20, 2 * est)))

    # NOTE: the constant-index weight/bias blocks could be single-buffered
    # (pipeline_mode) to reclaim a few hundred KiB of VMEM if tb is pushed
    # to the cap; not needed at these sizes.
    # NOTE: the (tb, n_chunk, 3) input block is lane-sparse (3 -> 128 lanes);
    # only worth restructuring to a lane-dense slab if a trace shows the input
    # DMA exposed at large tb.
    full = lambda a: pl.BlockSpec(a.shape, lambda b, n: (0,) * a.ndim)

    out = pl.pallas_call(
        _pointnet_kernel,
        out_shape=jax.ShapeDtypeStruct((Bp, CG), jnp.float32),
        grid_spec=pltpu.PrefetchScalarGridSpec(
            num_scalar_prefetch=0,
            grid=(num_b, num_n),
            in_specs=[
                pl.BlockSpec((tb, n_chunk, Cin), lambda b, n: (b, n, 0)),
                full(w1), full(b1),
                full(w2b), full(b2),
                full(w3b), full(b3),
                full(w4b), full(b4),
            ],
            out_specs=pl.BlockSpec((tb, CG), lambda b, n: (b, 0)),
            scratch_shapes=[pltpu.VMEM((tb, C3), jnp.bfloat16)],
        ),
        compiler_params=pltpu.CompilerParams(
            dimension_semantics=("parallel", "arbitrary"),
            vmem_limit_bytes=vmem_limit_bytes),
        cost_estimate=cost,
    )(points, w1, b1, w2b, b2, w3b, b3, w4b, b4)
    return out[:B]


def init_params(key, in_channels, local_channels=(64, 128, 256),
                global_channels=(256,)):
    """Synthetic params mirroring Conv1d/Linear + BatchNorm (inference)."""
    dims = [in_channels, *local_channels, *global_channels]
    raw = []
    for i in range(len(dims) - 1):
        cin, cout = dims[i], dims[i + 1]
        key, kw, kb, kg, kbe, km, kv = jax.random.split(key, 7)
        raw.append(dict(
            w=jax.random.normal(kw, (cin, cout), jnp.float32) / jnp.sqrt(cin),
            b=0.05 * jax.random.normal(kb, (cout,), jnp.float32),
            gamma=1.0 + 0.1 * jax.random.normal(kg, (cout,), jnp.float32),
            beta=0.1 * jax.random.normal(kbe, (cout,), jnp.float32),
            mean=0.05 * jax.random.normal(km, (cout,), jnp.float32),
            var=1.0 + 0.1 * jax.random.uniform(kv, (cout,), jnp.float32),
        ))
    return raw


def fold_bn_params(raw_params, eps=1e-5):
    """Fold inference-mode BN fully: W' = W * s, b' = s*(b_conv - mu) + beta,
    with s = gamma / sqrt(var + eps).  Biases kept as (1, C)."""
    folded = []
    for p in raw_params:
        s = p["gamma"] / jnp.sqrt(p["var"] + eps)
        folded.append(p["w"] * s[None, :])
        folded.append(((p["b"] - p["mean"]) * s + p["beta"])[None, :])
    return folded


def reference_forward(points, folded_params):
    """Pure-JAX reference mirroring the kernel's numerics (f32 VPU layer 1,
    bf16 MXU layers 2-4, bf16 max-pool), semantically the PyTorch forward."""
    w1, b1, w2, b2, w3, b3, w4, b4 = folded_params
    x = points.astype(jnp.float32)
    h = x[..., 0:1] * w1[0, :]
    for i in range(1, w1.shape[0]):
        h = h + x[..., i:i + 1] * w1[i, :]
    h = jnp.maximum(h + b1, 0.0).astype(jnp.bfloat16)
    for w, b in ((w2, b2), (w3, b3)):
        h = jnp.einsum('bnc,cd->bnd', h, w.astype(jnp.bfloat16),
                       preferred_element_type=jnp.float32)
        h = jnp.maximum(h + b, 0.0).astype(jnp.bfloat16)
    g = jnp.max(h, axis=1)                                   # (B, C3) bf16
    o = jnp.einsum('bc,cd->bd', g, w4.astype(jnp.bfloat16),
                   preferred_element_type=jnp.float32)
    return jnp.maximum(o + b4, 0.0)


if __name__ == "__main__":
    key = jax.random.PRNGKey(0)
    B, N, PC_DIM = 16, 128, 3          # pc observation: (B, N, 3)
    key, kp = jax.random.split(key)
    points = jax.random.normal(kp, (B, N, PC_DIM), jnp.float32)

    raw = init_params(key, in_channels=PC_DIM,
                      local_channels=(64, 128, 256),
                      global_channels=(256,))
    params = fold_bn_params(raw)

    out = pointnet_extractor_forward(points, params)   # auto tb=8 -> grid (2, 2)
    out = jax.block_until_ready(out)

    ref = reference_forward(points, params)
    assert out.shape == (B, 256)
    assert jnp.allclose(out, ref, atol=5e-3, rtol=5e-3), (
        float(jnp.max(jnp.abs(out - ref))))

    print("KERNEL_OK")
</pallas_src>

<mosaic_0001>
module attributes {stable_mosaic.version = 11 : i64} {
  func.func @_pointnet_kernel(%arg0: i32, %arg1: i32, %arg2: memref<8x64x3xf32, #tpu.memory_space<vmem>>, %arg3: memref<3x64xf32, #tpu.memory_space<vmem>>, %arg4: memref<1x64xf32, #tpu.memory_space<vmem>>, %arg5: memref<64x128xbf16, #tpu.memory_space<vmem>>, %arg6: memref<1x128xf32, #tpu.memory_space<vmem>>, %arg7: memref<128x256xbf16, #tpu.memory_space<vmem>>, %arg8: memref<1x256xf32, #tpu.memory_space<vmem>>, %arg9: memref<256x256xbf16, #tpu.memory_space<vmem>>, %arg10: memref<1x256xf32, #tpu.memory_space<vmem>>, %arg11: memref<8x256xf32, #tpu.memory_space<vmem>>, %arg12: memref<8x256xbf16, #tpu.memory_space<vmem>>) attributes {dimension_semantics = [#tpu.dimension_semantics<parallel>, #tpu.dimension_semantics<arbitrary>], iteration_bounds = array<i64: 2, 2>, scalar_prefetch = 0 : i64, scratch_operands = 1 : i64, tpu.core_type = #tpu.core_type<tc>, window_params = [{transform_indices = @transform_0, window_bounds = array<i64: 8, 64, 3>}, {pipeline_mode = #tpu.pipeline_mode<synchronous>, transform_indices = @transform_1, window_bounds = array<i64: 3, 64>}, {pipeline_mode = #tpu.pipeline_mode<synchronous>, transform_indices = @transform_2, window_bounds = array<i64: 1, 64>}, {pipeline_mode = #tpu.pipeline_mode<synchronous>, transform_indices = @transform_3, window_bounds = array<i64: 64, 128>}, {pipeline_mode = #tpu.pipeline_mode<synchronous>, transform_indices = @transform_4, window_bounds = array<i64: 1, 128>}, {pipeline_mode = #tpu.pipeline_mode<synchronous>, transform_indices = @transform_5, window_bounds = array<i64: 128, 256>}, {pipeline_mode = #tpu.pipeline_mode<synchronous>, transform_indices = @transform_6, window_bounds = array<i64: 1, 256>}, {pipeline_mode = #tpu.pipeline_mode<synchronous>, transform_indices = @transform_7, window_bounds = array<i64: 256, 256>}, {pipeline_mode = #tpu.pipeline_mode<synchronous>, transform_indices = @transform_8, window_bounds = array<i64: 1, 256>}, {transform_indices = @transform_9, window_bounds = array<i64: 8, 256>}]} {
    %c0_i32 = arith.constant 0 : i32
    %0 = arith.cmpi eq, %arg1, %c0_i32 : i32
    %1 = arith.extui %0 : i1 to i32
    %c0_i32_0 = arith.constant 0 : i32
    %2 = arith.cmpi ne, %1, %c0_i32_0 : i32
    scf.if %2 {
      %cst_25 = arith.constant 0xFF80 : bf16
      %53 = vector.broadcast %cst_25 : bf16 to vector<8x256xbf16>
      %c0_26 = arith.constant 0 : index
      %c0_27 = arith.constant 0 : index
      %54 = vector.load %arg12[%c0_26, %c0_27] : memref<8x256xbf16, #tpu.memory_space<vmem>>, vector<8x256xbf16>
      tpu.vector_store %arg12[%c0_26, %c0_27], %53 {strides = array<i32>} : memref<8x256xbf16, #tpu.memory_space<vmem>>, vector<8x256xbf16>,
    } else {
    }
    %c0 = arith.constant 0 : index
    %c0_1 = arith.constant 0 : index
    %c0_2 = arith.constant 0 : index
    %3 = vector.load %arg2[%c0, %c0_1, %c0_2] : memref<8x64x3xf32, #tpu.memory_space<vmem>>, vector<8x64x3xf32>
    %4 = vector.shape_cast %3 : vector<8x64x3xf32> to vector<512x3xf32>
    %c0_3 = arith.constant 0 : index
    %c0_4 = arith.constant 0 : index
    %5 = vector.load %arg3[%c0_3, %c0_4] : memref<3x64xf32, #tpu.memory_space<vmem>>, vector<3x64xf32>
    %6 = vector.extract_strided_slice %4 {offsets = [0, 0], sizes = [512, 1], strides = [1, 1]} : vector<512x3xf32> to vector<512x1xf32>
    %7 = vector.extract_strided_slice %5 {offsets = [0, 0], sizes = [1, 64], strides = [1, 1]} : vector<3x64xf32> to vector<1x64xf32>
    %8 = vector.broadcast %6 : vector<512x1xf32> to vector<512x64xf32>
    %9 = vector.broadcast %7 : vector<1x64xf32> to vector<512x64xf32>
    %10 = arith.mulf %8, %9 : vector<512x64xf32>
    %11 = vector.extract_strided_slice %4 {offsets = [0, 1], sizes = [512, 1], strides = [1, 1]} : vector<512x3xf32> to vector<512x1xf32>
    %12 = vector.extract_strided_slice %5 {offsets = [1, 0], sizes = [1, 64], strides = [1, 1]} : vector<3x64xf32> to vector<1x64xf32>
    %13 = vector.broadcast %11 : vector<512x1xf32> to vector<512x64xf32>
    %14 = vector.broadcast %12 : vector<1x64xf32> to vector<512x64xf32>
    %15 = arith.mulf %13, %14 : vector<512x64xf32>
    %16 = arith.addf %10, %15 : vector<512x64xf32>
    %17 = vector.extract_strided_slice %4 {offsets = [0, 2], sizes = [512, 1], strides = [1, 1]} : vector<512x3xf32> to vector<512x1xf32>
    %18 = vector.extract_strided_slice %5 {offsets = [2, 0], sizes = [1, 64], strides = [1, 1]} : vector<3x64xf32> to vector<1x64xf32>
    %19 = vector.broadcast %17 : vector<512x1xf32> to vector<512x64xf32>
    %20 = vector.broadcast %18 : vector<1x64xf32> to vector<512x64xf32>
    %21 = arith.mulf %19, %20 : vector<512x64xf32>
    %22 = arith.addf %16, %21 : vector<512x64xf32>
    %c0_5 = arith.constant 0 : index
    %c0_6 = arith.constant 0 : index
    %23 = vector.load %arg4[%c0_5, %c0_6] : memref<1x64xf32, #tpu.memory_space<vmem>>, vector<1x64xf32>
    %24 = vector.broadcast %23 : vector<1x64xf32> to vector<512x64xf32>
    %25 = arith.addf %22, %24 : vector<512x64xf32>
    %cst = arith.constant 0.000000e+00 : f32
    %26 = vector.broadcast %cst : f32 to vector<512x64xf32>
    %27 = arith.maximumf %25, %26 : vector<512x64xf32>
    %28 = arith.truncf %27 : vector<512x64xf32> to vector<512x64xbf16>
    %c0_7 = arith.constant 0 : index
    %c0_8 = arith.constant 0 : index
    %29 = vector.load %arg5[%c0_7, %c0_8] : memref<64x128xbf16, #tpu.memory_space<vmem>>, vector<64x128xbf16>
    %cst_9 = arith.constant dense<0.000000e+00> : vector<512x128xf32>
    %30 = tpu.matmul %28, %29, %cst_9 {dimension_numbers = #tpu.dot_dimension_numbers<[1], [0], [0], [1], [0, 0, 1, 1], [], []>} : vector<512x64xbf16>, vector<64x128xbf16>, vector<512x128xf32> -> vector<512x128xf32>
    %c0_10 = arith.constant 0 : index
    %c0_11 = arith.constant 0 : index
    %31 = vector.load %arg6[%c0_10, %c0_11] : memref<1x128xf32, #tpu.memory_space<vmem>>, vector<1x128xf32>
    %32 = vector.broadcast %31 : vector<1x128xf32> to vector<512x128xf32>
    %33 = arith.addf %30, %32 : vector<512x128xf32>
    %cst_12 = arith.constant 0.000000e+00 : f32
    %34 = vector.broadcast %cst_12 : f32 to vector<512x128xf32>
    %35 = arith.maximumf %33, %34 : vector<512x128xf32>
    %36 = arith.truncf %35 : vector<512x128xf32> to vector<512x128xbf16>
    %c0_13 = arith.constant 0 : index
    %c0_14 = arith.constant 0 : index
    %37 = vector.load %arg7[%c0_13, %c0_14] : memref<128x256xbf16, #tpu.memory_space<vmem>>, vector<128x256xbf16>
    %cst_15 = arith.constant dense<0.000000e+00> : vector<512x256xf32>
    %38 = tpu.matmul %36, %37, %cst_15 {dimension_numbers = #tpu.dot_dimension_numbers<[1], [0], [0], [1], [0, 0, 1, 1], [], []>} : vector<512x128xbf16>, vector<128x256xbf16>, vector<512x256xf32> -> vector<512x256xf32>
    %c0_16 = arith.constant 0 : index
    %c0_17 = arith.constant 0 : index
    %39 = vector.load %arg8[%c0_16, %c0_17] : memref<1x256xf32, #tpu.memory_space<vmem>>, vector<1x256xf32>
    %40 = vector.broadcast %39 : vector<1x256xf32> to vector<512x256xf32>
    %41 = arith.addf %38, %40 : vector<512x256xf32>
    %cst_18 = arith.constant 0.000000e+00 : f32
    %42 = vector.broadcast %cst_18 : f32 to vector<512x256xf32>
    %43 = arith.maximumf %41, %42 : vector<512x256xf32>
    %44 = arith.truncf %43 : vector<512x256xf32> to vector<512x256xbf16>
    %45 = vector.shape_cast %44 : vector<512x256xbf16> to vector<8x64x256xbf16>
    %cst_19 = arith.constant dense<0xFF80> : vector<8x256xbf16>
    %46 = vector.multi_reduction <maximumf>, %45, %cst_19 [1] : vector<8x64x256xbf16> to vector<8x256xbf16>
    %c0_20 = arith.constant 0 : index
    %c0_21 = arith.constant 0 : index
    %47 = vector.load %arg12[%c0_20, %c0_21] : memref<8x256xbf16, #tpu.memory_space<vmem>>, vector<8x256xbf16>
    %48 = arith.maximumf %47, %46 : vector<8x256xbf16>
    %c0_22 = arith.constant 0 : index
    %c0_23 = arith.constant 0 : index
    %49 = vector.load %arg12[%c0_22, %c0_23] : memref<8x256xbf16, #tpu.memory_space<vmem>>, vector<8x256xbf16>
    tpu.vector_store %arg12[%c0_22, %c0_23], %48 {strides = array<i32>} : memref<8x256xbf16, #tpu.memory_space<vmem>>, vector<8x256xbf16>,
    %c1_i32 = arith.constant 1 : i32
    %50 = arith.cmpi eq, %arg1, %c1_i32 : i32
    %51 = arith.extui %50 : i1 to i32
    %c0_i32_24 = arith.constant 0 : i32
    %52 = arith.cmpi ne, %51, %c0_i32_24 : i32
    scf.if %52 {
      %c0_25 = arith.constant 0 : index
      %c0_26 = arith.constant 0 : index
      %53 = vector.load %arg12[%c0_25, %c0_26] : memref<8x256xbf16, #tpu.memory_space<vmem>>, vector<8x256xbf16>
      %c0_27 = arith.constant 0 : index
      %c0_28 = arith.constant 0 : index
      %54 = vector.load %arg9[%c0_27, %c0_28] : memref<256x256xbf16, #tpu.memory_space<vmem>>, vector<256x256xbf16>
      %cst_29 = arith.constant dense<0.000000e+00> : vector<8x256xf32>
      %55 = tpu.matmul %53, %54, %cst_29 {dimension_numbers = #tpu.dot_dimension_numbers<[1], [0], [0], [1], [0, 0, 1, 1], [], []>} : vector<8x256xbf16>, vector<256x256xbf16>, vector<8x256xf32> -> vector<8x256xf32>
      %c0_30 = arith.constant 0 : index
      %c0_31 = arith.constant 0 : index
      %56 = vector.load %arg10[%c0_30, %c0_31] : memref<1x256xf32, #tpu.memory_space<vmem>>, vector<1x256xf32>
      %57 = vector.broadcast %56 : vector<1x256xf32> to vector<8x256xf32>
      %58 = arith.addf %55, %57 : vector<8x256xf32>
      %cst_32 = arith.constant 0.000000e+00 : f32
      %59 = vector.broadcast %cst_32 : f32 to vector<8x256xf32>
      %60 = arith.maximumf %58, %59 : vector<8x256xf32>
      %c0_33 = arith.constant 0 : index
      %c0_34 = arith.constant 0 : index
      %61 = vector.load %arg11[%c0_33, %c0_34] : memref<8x256xf32, #tpu.memory_space<vmem>>, vector<8x256xf32>
      tpu.vector_store %arg11[%c0_33, %c0_34], %60 {strides = array<i32>} : memref<8x256xf32, #tpu.memory_space<vmem>>, vector<8x256xf32>,
    } else {
    }
    return
  }
  func.func @transform_0(%arg0: i32, %arg1: i32) -> (i32, i32, i32) {
    %c0_i32 = arith.constant 0 : i32
    %c0_i32_0 = arith.constant 0 : i32
    return %arg0, %arg1, %c0_i32 : i32, i32, i32
  }
  func.func @transform_1(%arg0: i32, %arg1: i32) -> (i32, i32) {
    %c0_i32 = arith.constant 0 : i32
    %c0_i32_0 = arith.constant 0 : i32
    %c0_i32_1 = arith.constant 0 : i32
    return %c0_i32, %c0_i32_0 : i32, i32
  }
  func.func @transform_2(%arg0: i32, %arg1: i32) -> (i32, i32) {
    %c0_i32 = arith.constant 0 : i32
    %c0_i32_0 = arith.constant 0 : i32
    %c0_i32_1 = arith.constant 0 : i32
    return %c0_i32, %c0_i32_0 : i32, i32
  }
  func.func @transform_3(%arg0: i32, %arg1: i32) -> (i32, i32) {
    %c0_i32 = arith.constant 0 : i32
    %c0_i32_0 = arith.constant 0 : i32
    %c0_i32_1 = arith.constant 0 : i32
    return %c0_i32, %c0_i32_0 : i32, i32
  }
  func.func @transform_4(%arg0: i32, %arg1: i32) -> (i32, i32) {
    %c0_i32 = arith.constant 0 : i32
    %c0_i32_0 = arith.constant 0 : i32
    %c0_i32_1 = arith.constant 0 : i32
    return %c0_i32, %c0_i32_0 : i32, i32
  }
  func.func @transform_5(%arg0: i32, %arg1: i32) -> (i32, i32) {
    %c0_i32 = arith.constant 0 : i32
    %c0_i32_0 = arith.constant 0 : i32
    %c0_i32_1 = arith.constant 0 : i32
    return %c0_i32, %c0_i32_0 : i32, i32
  }
  func.func @transform_6(%arg0: i32, %arg1: i32) -> (i32, i32) {
    %c0_i32 = arith.constant 0 : i32
    %c0_i32_0 = arith.constant 0 : i32
    %c0_i32_1 = arith.constant 0 : i32
    return %c0_i32, %c0_i32_0 : i32, i32
  }
  func.func @transform_7(%arg0: i32, %arg1: i32) -> (i32, i32) {
    %c0_i32 = arith.constant 0 : i32
    %c0_i32_0 = arith.constant 0 : i32
    %c0_i32_1 = arith.constant 0 : i32
    return %c0_i32, %c0_i32_0 : i32, i32
  }
  func.func @transform_8(%arg0: i32, %arg1: i32) -> (i32, i32) {
    %c0_i32 = arith.constant 0 : i32
    %c0_i32_0 = arith.constant 0 : i32
    %c0_i32_1 = arith.constant 0 : i32
    return %c0_i32, %c0_i32_0 : i32, i32
  }
  func.func @transform_9(%arg0: i32, %arg1: i32) -> (i32, i32) {
    %c0_i32 = arith.constant 0 : i32
    %c0_i32_0 = arith.constant 0 : i32
    return %arg0, %c0_i32 : i32, i32
  }
}

</mosaic_0001>

<bundles_post_ra>
// kernel: tpu_custom_call.1
= control target key start
LH: loop header
LB: loop body
LE: loop exit
PB: predicated region body
PF: predicated region fallthrough
CT: control target
= control target key end

     0   :  { %s6196_s0 = inlined_call_operand.vmem [shape: f32[16,128,3], index: 0, kind: input, shape index: {}]   ;;  %s6197_s1 = inlined_call_operand.vmem [shape: f32[3,64], index: 1, kind: input, shape index: {}]   ;;  %s6198_s2 = inlined_call_operand.vmem [shape: f32[1,64], index: 2, kind: input, shape index: {}]   ;;  %s6199_s3 = inlined_call_operand.vmem [shape: bf16[64,128], index: 3, kind: input, shape index: {}]   ;;  %s6200_s4 = inlined_call_operand.vmem [shape: f32[1,128], index: 4, kind: input, shape index: {}]   ;;  %s6201_s5 = inlined_call_operand.vmem [shape: bf16[128,256], index: 5, kind: input, shape index: {}]   ;;  %s6202_s6 = inlined_call_operand.vmem [shape: f32[1,256], index: 6, kind: input, shape index: {}]   ;;  %s6203_s7 = inlined_call_operand.vmem [shape: bf16[256,256], index: 7, kind: input, shape index: {}]   ;;  %s6204_s8 = inlined_call_operand.vmem [shape: f32[1,256], index: 8, kind: input, shape index: {}]   ;;  %s6205_s9 = inlined_call_operand.hbm [shape: f32[16,256], index: 9, kind: output, shape index: {}]  }
   0x1   :  { %6229 = sst [smem:[#allocation26_spill]] %s6196_s0 }
   0x2   :  { %6230 = sst [smem:[#allocation27_spill]] %s6205_s9 }
   0x3   :  { %14 = vsyncpa [#allocation5], 0 }
   0x4   :  { %16 = vsyncpa [#allocation5 + $0x1], 0  ;;  %s4521_s30 = smov 0   ;;  %s4523_s10 = smov 0  }
   0x5   :  { %s4525_s11 = smov 0   ;;  %s4527_s12 = smov 0  }
   0x6   :  { %s4529_s13 = smov 0   ;;  %s4531_s14 = smov 0  }
   0x7   :  { %s4533_s15 = smov 0   ;;  %s4535_s16 = smov 0  }
   0x8   :  { %s4537_s17 = smov 0   ;;  %s4539_s18 = smov 0  }
   0x9 LB: > { %6231 = sst [smem:[#allocation7_spill]] %s4428_s30  ;;  %s3860_s19 = sadd.s32 4294967295, %s4464_s18   ;;  %s4464_s18 = sphi %s4539_s18, %s22_s18   ;;  %s4460_s17 = sphi %s4537_s17, %s6287_s17   ;;  %s4456_s16 = sphi %s4535_s16, %s6286_s16   ;;  %s4452_s15 = sphi %s4533_s15, %s6285_s15   ;;  %s4448_s14 = sphi %s4531_s14, %s6284_s14   ;;  %s4444_s13 = sphi %s4529_s13, %s6283_s13   ;;  %s4440_s12 = sphi %s4527_s12, %s6282_s12   ;;  %s4436_s11 = sphi %s4525_s11, %s6281_s11   ;;  %s4432_s10 = sphi %s4523_s10, %s6280_s10   ;;  %s4428_s30 = sphi %s4521_s30, %s6279_s30  }
   0xa   : > { %s3861_s20 = sadd.s32 4294967294, %s4464_s18   ;;  %s31_s21 = sadd.s32 1, %s4456_s16 }
   0xb   : > { %s34_s22 = sadd.s32 1, %s4460_s17  ;;  %p32_p0 = scmp.ge.s32.totalorder %s31_s21, 2 }
   0xc   : > { %s43_s23 = sadd.s32 1, %s4444_s13  ;;  %p50_p1 = scmp.ne.s32.totalorder %s4444_s13, %s4440_s12 }
   0xd   : > { %p51_p2 = scmp.eq.s32.totalorder %s4464_s18, 0  ;;  %s6289_s21 = smov (%p32_p0, %s31_s21), 0 }
   0xe   : > { %6232 = sst [smem:[#allocation8_spill]] %s6289_s21  ;;  %s6291_s22 = smov (!%p32_p0, %s34_s22), %s4460_s17 }
   0xf   : > { %s39_s24 = ssub.s32 %s4456_s16, %s6289_s21  ;;  %p4584_p3 = por %p51_p2, %p50_p1 }
  0x10   : > { %p36_p4 = scmp.ge.s32.totalorder %s6291_s22, 2  ;;  %s237_s26 = sadd.s32 1, %s4436_s11 }
  0x11   : > { %p247_p5 = scmp.ne.s32.totalorder %s4436_s11, %s4432_s10  ;;  %p248_p6 = scmp.eq.s32.totalorder %s3860_s19, 3 }
  0x12   : > { %s6293_s22 = smov (%p36_p4, %s6291_s22), 0  ;;  %p253_p8 = scmp.ne.s32.totalorder %s4432_s10, %s4428_s30 }
  0x13   : > { %6234 = sst [smem:[#allocation9_spill]] %s6293_s22  ;;  %p4593_p7 = por %p248_p6, %p247_p5 }
  0x14   : > { %s38_s28 = ssub.s32 %s4460_s17, %s6293_s22  ;;  %p254_p9 = scmp.eq.s32.totalorder %s3861_s20, 3 }
  0x15   : > { %s40_s29 = sor.u32 %s39_s24, %s38_s28  ;;  %p235_p10 = scmp.eq.s32.totalorder %s38_s28, 0 }
  0x16   : > { %p41_p11 = scmp.eq.s32.totalorder %s40_s29, 0  ;;  %p4601_p12 = por %p254_p9, %p253_p8 }
  0x17   : > { %s4606_s9 = scalar_select %p235_p10, %s4436_s11, %s237_s26  }
  0x18   : > { %s6236_s21 = scalar_select %p4601_p12, 1, 0 }
  0x19   : > { %s4609_s19 = scalar_select %p41_p11, %s4444_s13, %s43_s23  }
  0x1a   : > { %6237 = sst [smem:[#allocation10_spill]] %s6236_s21  ;;  %p3863_p13 = scmp.ge.s32.totalorder %s4464_s18, 4 }
  0x1c   : > { %294 = sbr.rel (%p3863_p13) target bundleno = 75 (0x4b), region = 48 }
  0x21   : > { %297 = sbr.rel (!%p4584_p3) target bundleno = 75 (0x4b), region = 52  ;;  %s299_s20 = sand.u32 (%p4584_p3), 1, %s4444_s13  }
  0x22   : > { %s3866_s24 = sshll.u32 (%p4584_p3), %s4456_s16, 3  ;;  %s3864_s28 = sshll.u32 (%p4584_p3), %s299_s20, 9 }
  0x23   : > { %s3975_s29 = sshll.u32 (%p4584_p3), %s4460_s17, 7  ;;  %s6238_s0 = sld [smem:[#allocation26_spill]] (%p4584_p3) }
  0x24   : > { %s305_s22 = sadd.s32 (%p4584_p3), %s3975_s29, %s3866_s24  ;;  %s4625_s25 = scalar_lea.vmem (%p4584_p3), [#allocation3], %s3864_s28 }
  0x25   : > { %s3868_s30 = sshll.u32 (%p4584_p3), %s305_s22, 3 }
  0x29   : > { %s4620_s23 = scalar_lea.vmem %s6238_s0, %s3868_s30 }
  0x2a   : > { %v462_v0 = vld [vmem:[%s4620_s23] sm:$0xff]  ;;  %v464_v1 = vld [vmem:[%s4620_s23 + $0x8] sm:$0xff]  ;;  %v466_v2 = vld [vmem:[%s4620_s23 + $0x10] sm:$0xff] }
  0x2b   : > { %463 = vst [vmem:[%s4625_s25] sm:$0xff] %v462_v0  ;;  %465 = vst [vmem:[%s4625_s25 + $0x8] sm:$0xff] %v464_v1  ;;  %v468_v3 = vld [vmem:[%s4620_s23 + $0x18] sm:$0xff]  ;;  %v470_v4 = vld [vmem:[%s4620_s23 + $0x20] sm:$0xff] }
  0x2c   : > { %467 = vst [vmem:[%s4625_s25 + $0x10] sm:$0xff] %v466_v2  ;;  %v472_v5 = vld [vmem:[%s4620_s23 + $0x28] sm:$0xff]  ;;  %469 = vst [vmem:[%s4625_s25 + $0x18] sm:$0xff] %v468_v3  ;;  %v474_v6 = vld [vmem:[%s4620_s23 + $0x30] sm:$0xff] }
  0x2d   : > { %471 = vst [vmem:[%s4625_s25 + $0x20] sm:$0xff] %v470_v4  ;;  %473 = vst [vmem:[%s4625_s25 + $0x28] sm:$0xff] %v472_v5  ;;  %v476_v7 = vld [vmem:[%s4620_s23 + $0x38] sm:$0xff]  ;;  %v478_v8 = vld [vmem:[%s4620_s23 + $0x80] sm:$0xff] }
  0x2e   : > { %475 = vst [vmem:[%s4625_s25 + $0x30] sm:$0xff] %v474_v6  ;;  %477 = vst [vmem:[%s4625_s25 + $0x38] sm:$0xff] %v476_v7  ;;  %v480_v9 = vld [vmem:[%s4620_s23 + $0x88] sm:$0xff]  ;;  %v482_v10 = vld [vmem:[%s4620_s23 + $0x90] sm:$0xff] }
  0x2f   : > { %479 = vst [vmem:[%s4625_s25 + $0x40] sm:$0xff] %v478_v8  ;;  %v484_v11 = vld [vmem:[%s4620_s23 + $0x98] sm:$0xff]  ;;  %481 = vst [vmem:[%s4625_s25 + $0x48] sm:$0xff] %v480_v9  ;;  %v486_v12 = vld [vmem:[%s4620_s23 + $0xa0] sm:$0xff] }
  0x30   : > { %483 = vst [vmem:[%s4625_s25 + $0x50] sm:$0xff] %v482_v10  ;;  %485 = vst [vmem:[%s4625_s25 + $0x58] sm:$0xff] %v484_v11  ;;  %v488_v13 = vld [vmem:[%s4620_s23 + $0xa8] sm:$0xff]  ;;  %v490_v14 = vld [vmem:[%s4620_s23 + $0xb0] sm:$0xff] }
  0x31   : > { %487 = vst [vmem:[%s4625_s25 + $0x60] sm:$0xff] %v486_v12  ;;  %489 = vst [vmem:[%s4625_s25 + $0x68] sm:$0xff] %v488_v13  ;;  %v492_v15 = vld [vmem:[%s4620_s23 + $0xb8] sm:$0xff]  ;;  %v494_v16 = vld [vmem:[%s4620_s23 + $0x100] sm:$0xff] }
  0x32   : > { %491 = vst [vmem:[%s4625_s25 + $0x70] sm:$0xff] %v490_v14  ;;  %v496_v17 = vld [vmem:[%s4620_s23 + $0x108] sm:$0xff]  ;;  %493 = vst [vmem:[%s4625_s25 + $0x78] sm:$0xff] %v492_v15  ;;  %v498_v18 = vld [vmem:[%s4620_s23 + $0x110] sm:$0xff] }
  0x33   : > { %495 = vst [vmem:[%s4625_s25 + $0x80] sm:$0xff] %v494_v16  ;;  %497 = vst [vmem:[%s4625_s25 + $0x88] sm:$0xff] %v496_v17  ;;  %v500_v19 = vld [vmem:[%s4620_s23 + $0x118] sm:$0xff]  ;;  %v502_v20 = vld [vmem:[%s4620_s23 + $0x120] sm:$0xff] }
  0x34   : > { %499 = vst [vmem:[%s4625_s25 + $0x90] sm:$0xff] %v498_v18  ;;  %501 = vst [vmem:[%s4625_s25 + $0x98] sm:$0xff] %v500_v19  ;;  %v504_v21 = vld [vmem:[%s4620_s23 + $0x128] sm:$0xff]  ;;  %v506_v22 = vld [vmem:[%s4620_s23 + $0x130] sm:$0xff] }
  0x35   : > { %503 = vst [vmem:[%s4625_s25 + $0xa0] sm:$0xff] %v502_v20  ;;  %v508_v23 = vld [vmem:[%s4620_s23 + $0x138] sm:$0xff]  ;;  %505 = vst [vmem:[%s4625_s25 + $0xa8] sm:$0xff] %v504_v21  ;;  %v510_v24 = vld [vmem:[%s4620_s23 + $0x180] sm:$0xff] }
  0x36   : > { %507 = vst [vmem:[%s4625_s25 + $0xb0] sm:$0xff] %v506_v22  ;;  %509 = vst [vmem:[%s4625_s25 + $0xb8] sm:$0xff] %v508_v23  ;;  %v512_v25 = vld [vmem:[%s4620_s23 + $0x188] sm:$0xff]  ;;  %v514_v26 = vld [vmem:[%s4620_s23 + $0x190] sm:$0xff] }
  0x37   : > { %511 = vst [vmem:[%s4625_s25 + $0xc0] sm:$0xff] %v510_v24  ;;  %513 = vst [vmem:[%s4625_s25 + $0xc8] sm:$0xff] %v512_v25  ;;  %v516_v27 = vld [vmem:[%s4620_s23 + $0x198] sm:$0xff]  ;;  %v518_v28 = vld [vmem:[%s4620_s23 + $0x1a0] sm:$0xff] }
  0x38   : > { %515 = vst [vmem:[%s4625_s25 + $0xd0] sm:$0xff] %v514_v26  ;;  %v520_v29 = vld [vmem:[%s4620_s23 + $0x1a8] sm:$0xff]  ;;  %517 = vst [vmem:[%s4625_s25 + $0xd8] sm:$0xff] %v516_v27  ;;  %v522_v30 = vld [vmem:[%s4620_s23 + $0x1b0] sm:$0xff] }
  0x39   : > { %519 = vst [vmem:[%s4625_s25 + $0xe0] sm:$0xff] %v518_v28  ;;  %521 = vst [vmem:[%s4625_s25 + $0xe8] sm:$0xff] %v520_v29  ;;  %v524_v31 = vld [vmem:[%s4620_s23 + $0x1b8] sm:$0xff]  ;;  %v526_v32 = vld [vmem:[%s4620_s23 + $0x200] sm:$0xff] }
  0x3a   : > { %523 = vst [vmem:[%s4625_s25 + $0xf0] sm:$0xff] %v522_v30  ;;  %525 = vst [vmem:[%s4625_s25 + $0xf8] sm:$0xff] %v524_v31  ;;  %v528_v33 = vld [vmem:[%s4620_s23 + $0x208] sm:$0xff]  ;;  %v530_v34 = vld [vmem:[%s4620_s23 + $0x210] sm:$0xff] }
  0x3b   : > { %527 = vst [vmem:[%s4625_s25 + $0x100] sm:$0xff] %v526_v32  ;;  %v532_v35 = vld [vmem:[%s4620_s23 + $0x218] sm:$0xff]  ;;  %529 = vst [vmem:[%s4625_s25 + $0x108] sm:$0xff] %v528_v33  ;;  %v534_v36 = vld [vmem:[%s4620_s23 + $0x220] sm:$0xff] }
  0x3c   : > { %531 = vst [vmem:[%s4625_s25 + $0x110] sm:$0xff] %v530_v34  ;;  %533 = vst [vmem:[%s4625_s25 + $0x118] sm:$0xff] %v532_v35  ;;  %v536_v37 = vld [vmem:[%s4620_s23 + $0x228] sm:$0xff]  ;;  %v538_v38 = vld [vmem:[%s4620_s23 + $0x230] sm:$0xff] }
  0x3d   : > { %535 = vst [vmem:[%s4625_s25 + $0x120] sm:$0xff] %v534_v36  ;;  %537 = vst [vmem:[%s4625_s25 + $0x128] sm:$0xff] %v536_v37  ;;  %v540_v39 = vld [vmem:[%s4620_s23 + $0x238] sm:$0xff]  ;;  %v542_v40 = vld [vmem:[%s4620_s23 + $0x280] sm:$0xff] }
  0x3e   : > { %539 = vst [vmem:[%s4625_s25 + $0x130] sm:$0xff] %v538_v38  ;;  %v544_v41 = vld [vmem:[%s4620_s23 + $0x288] sm:$0xff]  ;;  %541 = vst [vmem:[%s4625_s25 + $0x138] sm:$0xff] %v540_v39  ;;  %v546_v42 = vld [vmem:[%s4620_s23 + $0x290] sm:$0xff] }
  0x3f   : > { %543 = vst [vmem:[%s4625_s25 + $0x140] sm:$0xff] %v542_v40  ;;  %545 = vst [vmem:[%s4625_s25 + $0x148] sm:$0xff] %v544_v41  ;;  %v548_v43 = vld [vmem:[%s4620_s23 + $0x298] sm:$0xff]  ;;  %v550_v44 = vld [vmem:[%s4620_s23 + $0x2a0] sm:$0xff] }
  0x40   : > { %547 = vst [vmem:[%s4625_s25 + $0x150] sm:$0xff] %v546_v42  ;;  %549 = vst [vmem:[%s4625_s25 + $0x158] sm:$0xff] %v548_v43  ;;  %v552_v45 = vld [vmem:[%s4620_s23 + $0x2a8] sm:$0xff]  ;;  %v554_v46 = vld [vmem:[%s4620_s23 + $0x2b0] sm:$0xff] }
  0x41   : > { %551 = vst [vmem:[%s4625_s25 + $0x160] sm:$0xff] %v550_v44  ;;  %v556_v47 = vld [vmem:[%s4620_s23 + $0x2b8] sm:$0xff]  ;;  %553 = vst [vmem:[%s4625_s25 + $0x168] sm:$0xff] %v552_v45  ;;  %v558_v48 = vld [vmem:[%s4620_s23 + $0x300] sm:$0xff] }
  0x42   : > { %555 = vst [vmem:[%s4625_s25 + $0x170] sm:$0xff] %v554_v46  ;;  %557 = vst [vmem:[%s4625_s25 + $0x178] sm:$0xff] %v556_v47  ;;  %v560_v49 = vld [vmem:[%s4620_s23 + $0x308] sm:$0xff]  ;;  %v562_v50 = vld [vmem:[%s4620_s23 + $0x310] sm:$0xff] }
  0x43   : > { %559 = vst [vmem:[%s4625_s25 + $0x180] sm:$0xff] %v558_v48  ;;  %561 = vst [vmem:[%s4625_s25 + $0x188] sm:$0xff] %v560_v49  ;;  %v564_v51 = vld [vmem:[%s4620_s23 + $0x318] sm:$0xff]  ;;  %v566_v52 = vld [vmem:[%s4620_s23 + $0x320] sm:$0xff] }
  0x44   : > { %563 = vst [vmem:[%s4625_s25 + $0x190] sm:$0xff] %v562_v50  ;;  %v568_v53 = vld [vmem:[%s4620_s23 + $0x328] sm:$0xff]  ;;  %565 = vst [vmem:[%s4625_s25 + $0x198] sm:$0xff] %v564_v51  ;;  %v570_v54 = vld [vmem:[%s4620_s23 + $0x330] sm:$0xff] }
  0x45   : > { %567 = vst [vmem:[%s4625_s25 + $0x1a0] sm:$0xff] %v566_v52  ;;  %569 = vst [vmem:[%s4625_s25 + $0x1a8] sm:$0xff] %v568_v53  ;;  %v572_v55 = vld [vmem:[%s4620_s23 + $0x338] sm:$0xff]  ;;  %v574_v56 = vld [vmem:[%s4620_s23 + $0x380] sm:$0xff] }
  0x46   : > { %571 = vst [vmem:[%s4625_s25 + $0x1b0] sm:$0xff] %v570_v54  ;;  %573 = vst [vmem:[%s4625_s25 + $0x1b8] sm:$0xff] %v572_v55  ;;  %v576_v57 = vld [vmem:[%s4620_s23 + $0x388] sm:$0xff]  ;;  %v578_v58 = vld [vmem:[%s4620_s23 + $0x390] sm:$0xff] }
  0x47   : > { %575 = vst [vmem:[%s4625_s25 + $0x1c0] sm:$0xff] %v574_v56  ;;  %v580_v59 = vld [vmem:[%s4620_s23 + $0x398] sm:$0xff]  ;;  %577 = vst [vmem:[%s4625_s25 + $0x1c8] sm:$0xff] %v576_v57  ;;  %v582_v60 = vld [vmem:[%s4620_s23 + $0x3a0] sm:$0xff] }
  0x48   : > { %579 = vst [vmem:[%s4625_s25 + $0x1d0] sm:$0xff] %v578_v58  ;;  %581 = vst [vmem:[%s4625_s25 + $0x1d8] sm:$0xff] %v580_v59  ;;  %v584_v61 = vld [vmem:[%s4620_s23 + $0x3a8] sm:$0xff]  ;;  %v586_v62 = vld [vmem:[%s4620_s23 + $0x3b0] sm:$0xff] }
  0x49   : > { %583 = vst [vmem:[%s4625_s25 + $0x1e0] sm:$0xff] %v582_v60  ;;  %585 = vst [vmem:[%s4625_s25 + $0x1e8] sm:$0xff] %v584_v61  ;;  %v588_v63 = vld [vmem:[%s4620_s23 + $0x3b8] sm:$0xff] }
  0x4a   : > { %587 = vst [vmem:[%s4625_s25 + $0x1f0] sm:$0xff] %v586_v62  ;;  %589 = vst [vmem:[%s4625_s25 + $0x1f8] sm:$0xff] %v588_v63 }
  0x4b PF: > { %p3869_p0 = scmp.ge.s32.totalorder %s4464_s18, 1  ;;  %p594_p1 = scmp.lt.s32.totalorder %s4464_s18, 5 }
  0x4d   : > { %p595_p2 = pnand %p3869_p0, %p594_p1 }
  0x4f   : > { %598 = sbr.rel (%p595_p2) target bundleno = 1507 (0x5e3), region = 90 }
  0x54   : > { %s601_s30 = sand.u32 1, %s4440_s12   ;;  %s633_s21 = sand.u32 1, %s4432_s10  }
  0x55   : > { %s3870_s22 = sshll.u32 %s601_s30, 9  ;;  %s3871_s20 = sshll.u32 %s633_s21, 4 }
  0x56   : > { %s4758_s24 = scalar_lea.vmem [#allocation3], %s3870_s22  ;;  %s4760_s28 = scalar_lea.vmem [#allocation4], %s3871_s20 }
  0x57   : > { %p3872_p3 = scmp.ne.s32.totalorder %s4448_s14, 0 }
  0x59   : > { %643 = sbr.rel (%p3872_p3) target bundleno = 96 (0x60), region = 98 }
  0x5e   : > { %v4466_v0 = vmov 4286644096  }
  0x5f   : > { %644 = vst [vmem:[#allocation2] sm:$0xff] %v4466_v0 }
  0x60 PF: > { %v647_v1 = vld [vmem:[%s4758_s24 + $0x10] sm:$0xff]  ;;  %v645_v2 = vld [vmem:[%s4758_s24] sm:$0xff]  ;;  %v6219_v3 = vmov 0   ;;  %v648_v4 = vld [vmem:[%s4758_s24 + $0x18] sm:$0xff]  ;;  %v6213_v15 = vmov 1   ;;  %v6211_v18 = vmov 2  }
  0x61   : > { %4193 = vset.pattern.permute.xlu1 %v6219_v3  ;;  %4192 = vset.pattern.permute.xlu0 %v6219_v3  ;;  %v4769_v5 = vld [vmem:[%s4758_s24 + $0x8] sm:$0xff]  ;;  %v649_v7 = vld [vmem:[%s4758_s24 + $0x20] sm:$0xff]  ;;  %v652_v8 = vld [vmem:[%s4758_s24 + $0x38] sm:$0xff]  ;;  %vm2080_vm0 = vcmask 523264   ;;  %vm3480_vm1 = vcmask 1041409   ;;  %vm3482_vm2 = vcmask 1042434  }
  0x62   : > { %722 = vperm.xlu1 %4193, %v647_v1   ;;  %712 = vperm.xlu0 %4192, %v645_v2   ;;  %v4774_v6 = vld [vmem:[%s4758_s24 + $0x28] sm:$0xff]  ;;  %v651_v9 = vld [vmem:[%s4758_s24 + $0x30] sm:$0xff]  ;;  %v653_v11 = vld [vmem:[%s4758_s24 + $0x40] sm:$0xff]  ;;  %vm3484_vm3 = vcmask 1043459   ;;  %vm3486_vm4 = vcmask 1044484   ;;  %vm3488_vm5 = vcmask 1045509  }
  0x63   : > { %2792 = vmatprep.mubr.bf16.mxu1 %v6219_v3  ;;  %v4781_v10 = vld [vmem:[%s4758_s24 + $0x48] sm:$0xff]  ;;  %v656_v12 = vld [vmem:[%s4758_s24 + $0x58] sm:$0xff]  ;;  %v655_v13 = vld [vmem:[%s4758_s24 + $0x50] sm:$0xff]  ;;  %vm3490_vm6 = vcmask 1046534   ;;  %vm3492_vm7 = vcmask 1047559   ;;  %p3935_p4 = scmp.ne.s32.totalorder %s4448_s14, 1 }
  0x64   : > { %v4788_v14 = vld [vmem:[%s4758_s24 + $0x60] sm:$0xff]  ;;  %v4794_v16 = vld [vmem:[%s4758_s24 + $0x88] sm:$0xff]  ;;  %v4798_v17 = vld [vmem:[%s4758_s24 + $0x90] sm:$0xff] }
  0x65   : > { %v4803_v19 = vld [vmem:[%s4758_s24 + $0xa0] sm:$0xff]  ;;  %v658_v20 = vld [vmem:[%s4758_s24 + $0x68] sm:$0xff]  ;;  %v659_v21 = vld [vmem:[%s4758_s24 + $0x70] sm:$0xff] }
  0x66   : > { %727 = vperm.xlu1 %4193, %v648_v4   ;;  %717 = vperm.xlu0 %4192, %v4769_v5   ;;  %v4816_v22 = vld [vmem:[%s4758_s24 + $0xa8] sm:$0xff]  ;;  %v4821_v23 = vld [vmem:[%s4758_s24 + $0xb0] sm:$0xff]  ;;  %v4275_v30 = vld [vmem:[%s6199_s3 + $0x8] sm:$0xff]  }
  0x67   : > { %v4825_v24 = vld [vmem:[%s4758_s24 + $0xd0] sm:$0xff]  ;;  %v4829_v25 = vld [vmem:[%s4758_s24 + $0xe8] sm:$0xff]  ;;  %v660_v31 = vld [vmem:[%s4758_s24 + $0x78] sm:$0xff] }
  0x68   : > { %v4834_v26 = vld [vmem:[%s4758_s24 + $0xf0] sm:$0xff]  ;;  %v4274_v29 = vld [vmem:[%s6199_s3 + $0x10] sm:$0xff]   ;;  %v4276_v32 = vld [vmem:[%s6199_s3] sm:$0xff]  }
  0x69   : > { %v4273_v27 = vld [vmem:[%s6199_s3 + $0x18] sm:$0xff]   ;;  %v661_v33 = vld [vmem:[%s4758_s24 + $0x80] sm:$0xff]  ;;  %v4877_v38 = vld [vmem:[%s4758_s24 + $0xb8] sm:$0xff] }
  0x6a   : > { %737 = vperm.xlu1 %4193, %v4774_v6   ;;  %732 = vperm.xlu0 %4192, %v649_v7   ;;  %v4841_v28 = vld [vmem:[%s4758_s24 + $0x110] sm:$0xff]  ;;  %v4886_v41 = vld [vmem:[%s4758_s24 + $0xc8] sm:$0xff]  ;;  %v664_v44 = vld [vmem:[%s4758_s24 + $0x98] sm:$0xff] }
  0x6b   : > { %4013 = vmatprep.subr.bf16.mxu0 %v4273_v27  ;;  %6239 = vst [vmem:[#allocation11_spill] sm:$0xff] %v4841_v28  ;;  %v4896_v45 = vld [vmem:[%s4758_s24 + $0xe0] sm:$0xff]  ;;  %v4905_v48 = vld [vmem:[%s4758_s24 + $0xf8] sm:$0xff]  ;;  %v4914_v51 = vld [vmem:[%s4758_s24 + $0x108] sm:$0xff] }
  0x6c   : > { %4014 = vmatpush3.bf16.msra.mxu0 %v4273_v27  ;;  %6240 = vst [vmem:[#allocation12_spill] sm:$0xff] %v4914_v51  ;;  %v4921_v53 = vld [vmem:[%s4758_s24 + $0x120] sm:$0xff]  ;;  %v4929_v56 = vld [vmem:[%s4758_s24 + $0x138] sm:$0xff]  ;;  %v4938_v59 = vld [vmem:[%s4758_s24 + $0x148] sm:$0xff] }
  0x6d   : > { %4015 = vmatprep.subr.bf16.mxu0 %v4274_v29  ;;  %6241 = vst [vmem:[#allocation13_spill] sm:$0xff] %v4921_v53  ;;  %6242 = vst [vmem:[#allocation14_spill] sm:$0xff] %v4929_v56 }
  0x6e   : > { %747 = vperm.xlu1 %4193, %v652_v8   ;;  %742 = vperm.xlu0 %4192, %v651_v9   ;;  %6243 = vst [vmem:[#allocation15_spill] sm:$0xff] %v4938_v59 }
  0x70   : > { %4016 = vmatpush3.bf16.msra.mxu0 %v4274_v29  ;;  %v5019_v29 = vld [vmem:[%s4758_s24 + $0x190] sm:$0xff] }
  0x71   : > { %4017 = vmatprep.subr.bf16.mxu0 %v4275_v30 }
  0x72   : > { %757 = vperm.xlu1 %4193, %v4781_v10   ;;  %752 = vperm.xlu0 %4192, %v653_v11  }
  0x74   : > { %4018 = vmatpush3.bf16.msra.mxu0 %v4275_v30 }
  0x75   : > { %4019 = vmatprep.subr.bf16.mxu0 %v4276_v32 }
  0x76   : > { %767 = vperm.xlu1 %4193, %v656_v12   ;;  %762 = vperm.xlu0 %4192, %v655_v13  }
  0x78   : > { %4020 = vmatpush3.bf16.msra.mxu0 %v4276_v32 }
  0x7a   : > { %4194 = vset.pattern.permute.xlu1 %v6213_v15  ;;  %772 = vperm.xlu0 %4192, %v4788_v14  }
  0x7b   : > { %1103 = vperm.xlu1 %4194, %v4769_v5  }
  0x7e   : > { %797 = vperm.xlu0 %4192, %v4794_v16  }
  0x7f   : > { %1107 = vperm.xlu1 %4194, %v647_v1  }
  0x82   : > { %802 = vperm.xlu0 %4192, %v4798_v17  }
  0x83   : > { %4195 = vset.pattern.permute.xlu1 %v6211_v18 }
  0x84   : > { %1487 = vperm.xlu1 %4195, %v645_v2  }
  0x86   : > { %812 = vperm.xlu0 %4192, %v4803_v19  }
  0x88   : > { %1495 = vperm.xlu1 %4195, %v647_v1  }
  0x8a   : > { %4210 = vset.pattern.permute.xlu0 %v6213_v15 }
  0x8b   : > { %1099 = vperm.xlu0 %4210, %v645_v2  }
  0x8c   : > { %1499 = vperm.xlu1 %4195, %v648_v4  }
  0x8f   : > { %1111 = vperm.xlu0 %4210, %v648_v4  }
  0x90   : > { %4196 = vset.pattern.permute.xlu1 %v6213_v15 }
  0x91   : > { %1119 = vperm.xlu1 %4196, %v4774_v6  }
  0x93   : > { %1115 = vperm.xlu0 %4210, %v649_v7  }
  0x95   : > { %1123 = vperm.xlu1 %4196, %v651_v9  }
  0x97   : > { %1127 = vperm.xlu0 %4210, %v652_v8  }
  0x99   : > { %4197 = vset.pattern.permute.xlu1 %v6211_v18 }
  0x9a   : > { %1503 = vperm.xlu1 %4197, %v649_v7  }
  0x9b   : > { %1131 = vperm.xlu0 %4210, %v653_v11  }
  0x9e   : > { %1511 = vperm.xlu1 %4197, %v651_v9  }
  0x9f   : > { %1143 = vperm.xlu0 %4210, %v656_v12  }
  0xa2   : > { %1515 = vperm.xlu1 %4197, %v652_v8  }
  0xa3   : > { %1151 = vperm.xlu0 %4210, %v658_v20  }
  0xa6   : > { %4198 = vset.pattern.permute.xlu1 %v6213_v15 }
  0xa7   : > { %1135 = vperm.xlu1 %4198, %v4781_v10   ;;  %1155 = vperm.xlu0 %4210, %v659_v21  }
  0xab   : > { %1139 = vperm.xlu1 %4198, %v655_v13   ;;  %1171 = vperm.xlu0 %4210, %v4798_v17  }
  0xaf   : > { %4199 = vset.pattern.permute.xlu1 %v6211_v18  ;;  %1183 = vperm.xlu0 %4210, %v4816_v22  }
  0xb0   : > { %1519 = vperm.xlu1 %4199, %v653_v11  }
  0xb3   : > { %1187 = vperm.xlu0 %4210, %v4821_v23  }
  0xb4   : > { %1527 = vperm.xlu1 %4199, %v655_v13   ;;  %v4993_v13 = vld [vmem:[%s4758_s24 + $0x150] sm:$0xff] }
  0xb7   : > { %1203 = vperm.xlu0 %4210, %v4825_v24  }
  0xb8   : > { %1531 = vperm.xlu1 %4199, %v656_v12  }
  0xbb   : > { %1215 = vperm.xlu0 %4210, %v4829_v25  }
  0xbc   : > { %4200 = vset.pattern.permute.xlu1 %v6219_v3 }
  0xbd   : > { %777 = vperm.xlu1 %4200, %v658_v20  }
  0xbf   : > { %1219 = vperm.xlu0 %4210, %v4834_v26  }
  0xc1   : > { %4201 = vset.pattern.permute.xlu1 %v6213_v15 }
  0xc2   : > { %1147 = vperm.xlu1 %4201, %v4788_v14  }
  0xc3   : > { %1235 = vperm.xlu0 %4210, %v4841_v28  }
  0xc6   : > { %4202 = vset.pattern.permute.xlu1 %v6219_v3 }
  0xc7   : > { %782 = vperm.xlu1 %4202, %v659_v21   ;;  %4229 = vset.pattern.permute.xlu0 %v6211_v18 }
  0xc8   : > { %1491 = vperm.xlu0 %4229, %v4769_v5  }
  0xcb   : > { %787 = vperm.xlu1 %4202, %v660_v31  }
  0xcc   : > { %1507 = vperm.xlu0 %4229, %v4774_v6  }
  0xcf   : > { %4203 = vset.pattern.permute.xlu1 %v6213_v15 }
  0xd0   : > { %1159 = vperm.xlu1 %4203, %v660_v31   ;;  %1523 = vperm.xlu0 %4229, %v4781_v10  }
  0xd4   : > { %4204 = vset.pattern.permute.xlu1 %v6211_v18  ;;  %1535 = vperm.xlu0 %4229, %v4788_v14   ;;  %v669_v14 = vld [vmem:[%s4758_s24 + $0xc0] sm:$0xff] }
  0xd5   : > { %1539 = vperm.xlu1 %4204, %v658_v20  }
  0xd8   : > { %1547 = vperm.xlu0 %4229, %v660_v31  }
  0xd9   : > { %1543 = vperm.xlu1 %4204, %v659_v21  }
  0xdc   : > { %1555 = vperm.xlu0 %4229, %v4794_v16  }
  0xdd   : > { %v4866_v34 = vpop.permute.xlu1 %722  ;;  %4205 = vset.pattern.permute.xlu1 %v6219_v3  ;;  %v4869_v35 = vpop.permute.xlu0 %712 }
  0xde   : > { %792 = vperm.xlu1 %4205, %v661_v33  }
  0xe0   : > { %1567 = vperm.xlu0 %4229, %v4803_v19  }
  0xe1   : > { %v4872_v36 = vpop.permute.xlu1 %727  ;;  %v4874_v37 = vpop.permute.xlu0 %717 }
  0xe2   : > { %4206 = vset.pattern.permute.xlu1 %v6213_v15 }
  0xe3   : > { %1163 = vperm.xlu1 %4206, %v661_v33  }
  0xe4   : > { %1579 = vperm.xlu0 %4229, %v4877_v38  }
  0xe5   : > { %v4881_v39 = vpop.permute.xlu1 %737  ;;  %v4883_v40 = vpop.permute.xlu0 %732 }
  0xe7   : > { %1167 = vperm.xlu1 %4206, %v4794_v16  }
  0xe8   : > { %1587 = vperm.xlu0 %4229, %v4886_v41  }
  0xe9   : > { %v4890_v42 = vpop.permute.xlu1 %747  ;;  %v4892_v43 = vpop.permute.xlu0 %742 }
  0xeb   : > { %4207 = vset.pattern.permute.xlu1 %v6219_v3 }
  0xec   : > { %807 = vperm.xlu1 %4207, %v664_v44   ;;  %1599 = vperm.xlu0 %4229, %v4896_v45  }
  0xed   : > { %v4900_v46 = vpop.permute.xlu1 %757  ;;  %v4902_v47 = vpop.permute.xlu0 %752 }
  0xf0   : > { %4208 = vset.pattern.permute.xlu1 %v6213_v15  ;;  %1611 = vperm.xlu0 %4229, %v4905_v48  }
  0xf1   : > { %v4909_v49 = vpop.permute.xlu1 %767  ;;  %1175 = vperm.xlu1 %4208, %v664_v44   ;;  %v4911_v50 = vpop.permute.xlu0 %762 }
  0xf4   : > { %1619 = vperm.xlu0 %4229, %v4914_v51  }
  0xf5   : > { %4209 = vset.pattern.permute.xlu1 %v6211_v18  ;;  %v4918_v52 = vpop.permute.xlu0 %772 }
  0xf6   : > { %v4923_v54 = vpop.permute.xlu1 %1103  ;;  %1551 = vperm.xlu1 %4209, %v661_v33  }
  0xf8   : > { %1631 = vperm.xlu0 %4229, %v4921_v53  }
  0xf9   : > { %v4926_v55 = vpop.permute.xlu0 %797 }
  0xfa   : > { %v4931_v57 = vpop.permute.xlu1 %1107  ;;  %1559 = vperm.xlu1 %4209, %v4798_v17  }
  0xfc   : > { %1643 = vperm.xlu0 %4229, %v4929_v56  }
  0xfd   : > { %v4935_v58 = vpop.permute.xlu0 %802 }
  0xfe   : > { %1563 = vperm.xlu1 %4209, %v664_v44   ;;  %v5032_v44 = vld [vmem:[%s4758_s24 + $0xd8] sm:$0xff] }
  0xff   : > { %v4940_v60 = vpop.permute.xlu1 %1487 }
 0x100   : > { %1651 = vperm.xlu0 %4229, %v4938_v59  }
 0x101   : > { %v4943_v61 = vpop.permute.xlu0 %812 }
 0x102   : > { %6244 = vst [vmem:[#allocation16_spill] sm:$0xff] %v4943_v61  ;;  %4211 = vset.pattern.permute.xlu1 %v6219_v3 }
 0x103   : > { %817 = vperm.xlu1 %4211, %v4816_v22   ;;  %v4947_v62 = vpop.permute.xlu1 %1495 }
 0x104   : > { %4242 = vset.pattern.permute.xlu0 %v6219_v3 }
 0x105   : > { %837 = vperm.xlu0 %4242, %v4886_v41  }
 0x106   : > { %v4951_v63 = vpop.permute.xlu0 %1099 }
 0x107   : > { %4212 = vset.pattern.permute.xlu1 %v6213_v15  ;;  %v4954_v0 = vpop.permute.xlu1 %1499 }
 0x108   : > { %1179 = vperm.xlu1 %4212, %v4803_v19   ;;  %v5003_v19 = vld [vmem:[%s4758_s24 + $0x160] sm:$0xff] }
 0x109   : > { %842 = vperm.xlu0 %4242, %v4825_v24  }
 0x10a   : > { %v4958_v1 = vpop.permute.xlu0 %1111 }
 0x10c   : > { %4213 = vset.pattern.permute.xlu1 %v6219_v3  ;;  %v4961_v2 = vpop.permute.xlu1 %1119 }
 0x10d   : > { %822 = vperm.xlu1 %4213, %v4821_v23   ;;  %852 = vperm.xlu0 %4242, %v4896_v45  }
 0x10e   : > { %v4965_v4 = vpop.permute.xlu0 %1115 }
 0x110   : > { %v4967_v5 = vpop.permute.xlu1 %1123 }
 0x111   : > { %827 = vperm.xlu1 %4213, %v4877_v38   ;;  %877 = vperm.xlu0 %4242, %v4914_v51  }
 0x112   : > { %v4971_v6 = vpop.permute.xlu0 %1127 }
 0x115   : > { %4214 = vset.pattern.permute.xlu1 %v6213_v15  ;;  %v4974_v7 = vpop.permute.xlu1 %1503  ;;  %882 = vperm.xlu0 %4242, %v4841_v28  }
 0x116   : > { %1191 = vperm.xlu1 %4214, %v4877_v38   ;;  %v4978_v8 = vpop.permute.xlu0 %1131 }
 0x119   : > { %v4980_v9 = vpop.permute.xlu1 %1511  ;;  %892 = vperm.xlu0 %4242, %v4921_v53   ;;  %v5054_v53 = vld [vmem:[%s4758_s24 + $0x130] sm:$0xff] }
 0x11a   : > { %4215 = vset.pattern.permute.xlu1 %v6211_v18  ;;  %v4984_v10 = vpop.permute.xlu0 %1143  ;;  %v5035_v18 = vld [vmem:[%s4758_s24 + $0x128] sm:$0xff]  ;;  %6252 = vst [vmem:[#allocation23_spill] sm:$0xff] %v5054_v53 }
 0x11b   : > { %1571 = vperm.xlu1 %4215, %v4816_v22   ;;  %v5012_v22 = vld [vmem:[%s4758_s24 + $0x188] sm:$0xff]  ;;  %6248 = vst [vmem:[#allocation20_spill] sm:$0xff] %v5035_v18 }
 0x11d   : > { %v4987_v11 = vpop.permute.xlu1 %1515  ;;  %917 = vperm.xlu0 %4242, %v4938_v59  }
 0x11e   : > { %v4990_v12 = vpop.permute.xlu0 %1151 }
 0x11f   : > { %1575 = vperm.xlu1 %4215, %v4821_v23   ;;  %v1030_v23 = vlaneseq }
 0x121   : > { %922 = vperm.xlu0 %4242, %v4993_v13   ;;  %v1031_v31 = vshrl.u32 %v1030_v23, 7  ;;  %v6250_v23 = vmov 1  }
 0x122   : > { %v4998_v16 = vpop.permute.xlu1 %1135  ;;  %v5000_v17 = vpop.permute.xlu0 %1155 }
 0x123   : > { %4216 = vset.pattern.permute.xlu1 %v6219_v3  ;;  %v5027_v33 = vsub.s32 1, %v1031_v31 }
 0x124   : > { %832 = vperm.xlu1 %4216, %v669_v14  }
 0x125   : > { %932 = vperm.xlu0 %4242, %v5003_v19   ;;  %6247 = vst [vmem:[#allocation19_spill] sm:$0xff] %v5027_v33 }
 0x126   : > { %v5007_v20 = vpop.permute.xlu1 %1139  ;;  %v5009_v21 = vpop.permute.xlu0 %1171 }
 0x128   : > { %4217 = vset.pattern.permute.xlu1 %v6213_v15  ;;  %v5037_v15 = vsub.s32 0, %v1031_v31 }
 0x129   : > { %1195 = vperm.xlu1 %4217, %v669_v14   ;;  %957 = vperm.xlu0 %4242, %v5012_v22  }
 0x12a   : > { %v5016_v27 = vpop.permute.xlu0 %1183  ;;  %6249 = vst [vmem:[#allocation21_spill] sm:$0xff] %v5037_v15 }
 0x12b   : > { %6245 = vst [vmem:[#allocation17_spill] sm:$0xff] %v5016_v27  ;;  %v5021_v30 = vpop.permute.xlu1 %1519 }
 0x12d   : > { %1199 = vperm.xlu1 %4217, %v4886_v41   ;;  %962 = vperm.xlu0 %4242, %v5019_v29   ;;  %v709_v41 = vld [vmem:[%s6197_s1] sm:$0x7] }
 0x12e   : > { %v5025_v32 = vpop.permute.xlu0 %1187  ;;  %v5049_v56 = vrot.slane %v709_v41, %v5027_v33  ;;  %v5057_v27 = vrot.slane %v709_v41, %v5037_v15 }
 0x12f   : > { %6246 = vst [vmem:[#allocation18_spill] sm:$0xff] %v5025_v32  ;;  %v5029_v38 = vpop.permute.xlu1 %1527 }
 0x130   : > { %v1361_v61 = vmul.f32 %v5049_v56, %v4958_v1  ;;  %v1037_v33 = vmul.f32 %v5057_v27, %v4872_v36  ;;  %v1034_v1 = vmul.f32 %v5057_v27, %v4869_v35 }
 0x131   : > { %4218 = vset.pattern.permute.xlu1 %v6219_v3  ;;  %4250 = vset.pattern.permute.xlu0 %v6250_v23  ;;  %v1744_v3 = vsub.s32 2, %v1031_v31  ;;  %v1360_v31 = vmul.f32 %v5049_v56, %v4931_v57  ;;  %v6255_v57 = vmov 2  }
 0x132   : > { %847 = vperm.xlu1 %4218, %v5032_v44   ;;  %v5045_v59 = vpop.permute.xlu0 %1203  ;;  %1247 = vperm.xlu0 %4250, %v5035_v18   ;;  %v1425_v18 = vadd.f32 %v1361_v61, %v1037_v33 }
 0x133   : > { %6251 = vst [vmem:[#allocation22_spill] sm:$0xff] %v5045_v59  ;;  %v5051_v32 = vpop.permute.xlu1 %1531  ;;  %v5070_v59 = vrot.slane %v709_v41, %v1744_v3 }
 0x135   : > { %v1748_v36 = vmul.f32 %v5070_v59, %v4947_v62  ;;  %v1749_v3 = vmul.f32 %v5070_v59, %v4954_v0  ;;  %v1362_v62 = vmul.f32 %v5049_v56, %v4965_v4  ;;  %v1746_v0 = vmul.f32 %v5070_v59, %v4940_v60 }
 0x136   : > { %4219 = vset.pattern.permute.xlu1 %v6250_v23  ;;  %v5062_v28 = vpop.permute.xlu0 %1215  ;;  %1251 = vperm.xlu0 %4250, %v5054_v53   ;;  %v1036_v53 = vmul.f32 %v5057_v27, %v4866_v34  ;;  %v1038_v34 = vmul.f32 %v5057_v27, %v4883_v40  ;;  %v1041_v40 = vmul.f32 %v5057_v27, %v4890_v42 }
 0x137   : > { %6253 = vst [vmem:[#allocation24_spill] sm:$0xff] %v5062_v28  ;;  %1207 = vperm.xlu1 %4219, %v5032_v44   ;;  %v1358_v28 = vmul.f32 %v5049_v56, %v4951_v63  ;;  %v1813_v63 = vadd.f32 %v1749_v3, %v1425_v18  ;;  %v1035_v18 = vmul.f32 %v5057_v27, %v4874_v37 }
 0x138   : > { %v5072_v15 = vpop.permute.xlu1 %777  ;;  %v1424_v35 = vadd.f32 %v1360_v31, %v1036_v53  ;;  %v5101_v53 = vld [vmem:[%s6198_s2] ss:$0 sm:$0xff]  ;;  %v1359_v4 = vmul.f32 %v5049_v56, %v4923_v54  ;;  %v1040_v60 = vmul.f32 %v5057_v27, %v4892_v43  ;;  %v1365_v37 = vmul.f32 %v5049_v56, %v4971_v6 }
 0x139   : > { %v1422_v41 = vadd.f32 %v1358_v28, %v1034_v1  ;;  %v1039_v28 = vmul.f32 %v5057_v27, %v4881_v39  ;;  %v1884_v31 = vadd.f32 %v5101_v53, %v1813_v63  ;;  %v1426_v39 = vadd.f32 %v1362_v62, %v1038_v34 }
 0x13a   : > { %v5082_v51 = vpop.permute.xlu0 %1219  ;;  %1267 = vperm.xlu0 %4250, %v4993_v13   ;;  %v1812_v33 = vadd.f32 %v1748_v36, %v1424_v35  ;;  %v1364_v42 = vmul.f32 %v5049_v56, %v4967_v5  ;;  %v1750_v54 = vmul.f32 %v5070_v59, %v4974_v7  ;;  %v1042_v43 = vmul.f32 %v5057_v27, %v4902_v47 }
 0x13b   : > { %6254 = vst [vmem:[#allocation25_spill] sm:$0xff] %v5082_v51  ;;  %4220 = vset.pattern.permute.xlu1 %v6255_v57  ;;  %v1366_v6 = vmul.f32 %v5049_v56, %v4978_v8  ;;  %v1753_v3 = vmul.f32 %v5070_v59, %v4987_v11  ;;  %v1045_v5 = vmul.f32 %v5057_v27, %v4909_v49  ;;  %v1948_v47 = vmax.f32 %v1884_v31, 0.0 }
 0x13c   : > { %1583 = vperm.xlu1 %4220, %v669_v14   ;;  %v1810_v14 = vadd.f32 %v1746_v0, %v1422_v41  ;;  %v1883_v1 = vadd.f32 %v5101_v53, %v1812_v33  ;;  %v1423_v7 = vadd.f32 %v1359_v4, %v1035_v18  ;;  %v1363_v41 = vmul.f32 %v5049_v56, %v4961_v2  ;;  %v5144_v18 = vld [vmem:[%s4758_s24 + $0x168] sm:$0xff] }
 0x13d   : > { %v5088_v61 = vpop.permute.xlu1 %1147  ;;  %v1429_v63 = vadd.f32 %v1365_v37, %v1041_v40  ;;  %v1752_v8 = vmul.f32 %v5070_v59, %v4980_v9  ;;  %v1428_v33 = vadd.f32 %v1364_v42, %v1040_v60  ;;  %v1814_v62 = vadd.f32 %v1750_v54, %v1426_v39 }
 0x13e   : > { %v5094_v51 = vpop.permute.xlu0 %1235  ;;  %v1881_v11 = vadd.f32 %v5101_v53, %v1810_v14  ;;  %v1947_v34 = vmax.f32 %v1883_v1, 0.0  ;;  %v1430_v2 = vadd.f32 %v1366_v6, %v1042_v43  ;;  %v1754_v40 = vmul.f32 %v5070_v59, %v5021_v30  ;;  %1279 = vperm.xlu0 %4250, %v5144_v18   ;;  %v5163_v6 = vld [vmem:[%s4758_s24 + $0x170] sm:$0xff] }
 0x13f   : > { %v1817_v4 = vadd.f32 %v1753_v3, %v1429_v63  ;;  %v1044_v9 = vmul.f32 %v5057_v27, %v4911_v50  ;;  %v1427_v60 = vadd.f32 %v1363_v41, %v1039_v28  ;;  %v6256_v37 = vmov 0  }
 0x140   : > { %1591 = vperm.xlu1 %4220, %v4825_v24   ;;  %v1043_v24 = vmul.f32 %v5057_v27, %v4900_v46  ;;  %v1816_v39 = vadd.f32 %v1752_v8, %v1428_v33  ;;  %v1945_v30 = vmax.f32 %v1881_v11, 0.0  ;;  %v2010_v42 = vpack.c.bf16 %v1948_v47, %v1947_v34 }
 0x141   : > { %v1885_v54 = vadd.f32 %v5101_v53, %v1814_v62  ;;  %v1369_v50 = vmul.f32 %v5049_v56, %v4984_v10  ;;  %v1888_v3 = vadd.f32 %v5101_v53, %v1817_v4  ;;  %v1370_v47 = vmul.f32 %v5049_v56, %v5088_v61 }
 0x142   : > { %v5122_v36 = vpop.permute.xlu1 %782  ;;  %1283 = vperm.xlu0 %4250, %v5163_v6   ;;  %v1887_v11 = vadd.f32 %v5101_v53, %v1816_v39  ;;  %v1047_v34 = vmul.f32 %v5057_v27, %v5072_v15  ;;  %v1756_v61 = vmul.f32 %v5070_v59, %v5029_v38 }
 0x143   : > { %v1492_v35 = vpop.permute.xlu0 %1491  ;;  %v1949_v33 = vmax.f32 %v1885_v54, 0.0 }
 0x144   : > { %v1747_v46 = vmul.f32 %v5070_v59, %v1492_v35  ;;  %1595 = vperm.xlu1 %4220, %v5032_v44   ;;  %v1367_v44 = vmul.f32 %v5049_v56, %v4998_v16  ;;  %v1046_v16 = vmul.f32 %v5057_v27, %v4918_v52  ;;  %v1368_v52 = vmul.f32 %v5049_v56, %v5007_v20 }
 0x145   : > { %v1757_v20 = vmul.f32 %v5070_v59, %v5051_v32 }
 0x146   : > { %v1811_v0 = vadd.f32 %v1747_v46, %v1423_v7  ;;  %v5141_v49 = vpop.permute.xlu1 %787  ;;  %v1431_v35 = vadd.f32 %v1367_v44, %v1043_v24  ;;  %v1818_v7 = vadd.f32 %v1754_v40, %v1430_v2  ;;  %v1371_v24 = vmul.f32 %v5049_v56, %v4990_v12  ;;  %1299 = vperm.xlu0 %4250, %v5019_v29   ;;  %v5196_v29 = vld [vmem:[%s4758_s24 + $0x1a8] sm:$0xff] }
 0x147   : > { %v1508_v31 = vpop.permute.xlu0 %1507  ;;  %v1433_v2 = vadd.f32 %v1369_v50, %v1045_v5  ;;  %v1952_v12 = vmax.f32 %v1888_v3, 0.0  ;;  %v1432_v4 = vadd.f32 %v1368_v52, %v1044_v9  ;;  %v1434_v44 = vadd.f32 %v1370_v47, %v1046_v16 }
 0x148   : > { %v1751_v14 = vmul.f32 %v5070_v59, %v1508_v31  ;;  %4221 = vset.pattern.permute.xlu1 %v6256_v37  ;;  %v1882_v1 = vadd.f32 %v5101_v53, %v1811_v0  ;;  %v1889_v32 = vadd.f32 %v5101_v53, %v1818_v7  ;;  %v1435_v5 = vadd.f32 %v1371_v24, %v1047_v34 }
 0x149   : > { %857 = vperm.xlu1 %4221, %v4829_v25   ;;  %v1820_v39 = vadd.f32 %v1756_v61, %v1432_v4  ;;  %v1048_v16 = vmul.f32 %v5057_v27, %v5122_v36  ;;  %v1049_v52 = vmul.f32 %v5057_v27, %v5141_v49 }
 0x14a   : > { %v1815_v28 = vadd.f32 %v1751_v14, %v1427_v60  ;;  %v1946_v43 = vmax.f32 %v1882_v1, 0.0  ;;  %v1951_v60 = vmax.f32 %v1887_v11, 0.0  ;;  %v1821_v14 = vadd.f32 %v1757_v20, %v1433_v2  ;;  %1311 = vperm.xlu0 %4250, %v5196_v29  }
 0x14b   : > { %v1160_v41 = vpop.permute.xlu1 %1159  ;;  %v1524_v46 = vpop.permute.xlu0 %1523  ;;  %v1372_v1 = vmul.f32 %v5049_v56, %v5000_v17  ;;  %v1953_v17 = vmax.f32 %v1889_v32, 0.0 }
 0x14c   : > { %v1886_v10 = vadd.f32 %v5101_v53, %v1815_v28  ;;  %v1755_v63 = vmul.f32 %v5070_v59, %v1524_v46  ;;  %v2009_v8 = vpack.c.bf16 %v1946_v43, %v1945_v30  ;;  %v1373_v54 = vmul.f32 %v5049_v56, %v1160_v41 }
 0x14d   : > { %4222 = vset.pattern.permute.xlu1 %v6250_v23  ;;  %v2012_v3 = vpack.c.bf16 %v1952_v12, %v1951_v60  ;;  %v1051_v60 = vmul.f32 %v5057_v27, %v4926_v55  ;;  %v1376_v55 = vmul.f32 %v5049_v56, %v5009_v21 }
 0x14e   : > { %v1950_v62 = vmax.f32 %v1886_v10, 0.0  ;;  %v1819_v0 = vadd.f32 %v1755_v63, %v1431_v35  ;;  %1211 = vperm.xlu1 %4222, %v4896_v45   ;;  %4021 = vmatprep.mubr.msk.bf16.mxu0 %vm2080_vm0, %v2009_v8  ;;  %v1892_v35 = vadd.f32 %v5101_v53, %v1821_v14  ;;  %v5211_v10 = vld [vmem:[%s4758_s24 + $0x1b0] sm:$0xff]  ;;  %v1891_v63 = vadd.f32 %v5101_v53, %v1820_v39 }
 0x14f   : > { %4022 = vmatmul.mubr.msk.bf16.vlgmr.msra.gmra.mxu0 %vm2080_vm0, %v2010_v42  ;;  %v1536_v15 = vpop.permute.xlu0 %1535  ;;  %v1436_v8 = vadd.f32 %v1372_v1, %v1048_v16  ;;  %v1437_v11 = vadd.f32 %v1373_v54, %v1049_v52  ;;  %1315 = vperm.xlu0 %4250, %v5211_v10  }
 0x150   : > { %v2011_v40 = vpack.c.bf16 %v1950_v62, %v1949_v33  ;;  %v1890_v38 = vadd.f32 %v5101_v53, %v1819_v0  ;;  %v1758_v31 = vmul.f32 %v5070_v59, %v1536_v15  ;;  %v1540_v45 = vpop.permute.xlu1 %1539  ;;  %v1956_v49 = vmax.f32 %v1892_v35, 0.0  ;;  %v680_v35 = vld [vmem:[%s4758_s24 + $0x118] sm:$0xff] }
 0x151   : > { %v1759_v9 = vmul.f32 %v5070_v59, %v1540_v45  ;;  %v1955_v62 = vmax.f32 %v1891_v63, 0.0  ;;  %v677_v45 = vld [vmem:[%s4758_s24 + $0x100] sm:$0xff] }
 0x152   : > { %v1954_v30 = vmax.f32 %v1890_v38, 0.0  ;;  %v1822_v42 = vadd.f32 %v1758_v31, %v1434_v44  ;;  %4223 = vset.pattern.permute.xlu1 %v6256_v37  ;;  %4025 = vmatprep.mubr.msk.bf16.mxu0 %vm2080_vm0, %v2011_v40  ;;  %v5229_v40 = vld [vmem:[%s4758_s24 + $0x178] sm:$0xff] }
 0x153   : > { %v1823_v50 = vadd.f32 %v1759_v9, %v1435_v5  ;;  %862 = vperm.xlu1 %4223, %v4834_v26   ;;  %v1548_v28 = vpop.permute.xlu0 %1547  ;;  %4257 = vset.pattern.permute.xlu0 %v6255_v57  ;;  %v2014_v12 = vpack.c.bf16 %v1956_v49, %v1955_v62 }
 0x154   : > { %v1544_v43 = vpop.permute.xlu1 %1543  ;;  %v1761_v7 = vmul.f32 %v5070_v59, %v1548_v28  ;;  %v2013_v46 = vpack.c.bf16 %v1954_v30, %v1953_v17  ;;  %v1893_v41 = vadd.f32 %v5101_v53, %v1822_v42  ;;  %1663 = vperm.xlu0 %4257, %v5003_v19  }
 0x155   : > { %v1760_v36 = vmul.f32 %v5070_v59, %v1544_v43  ;;  %v1894_v47 = vadd.f32 %v5101_v53, %v1823_v50  ;;  %v6257_v50 = vld [vmem:[#allocation12_spill] sm:$0xff] }
 0x156   : > { %v1825_v24 = vadd.f32 %v1761_v7, %v1437_v11  ;;  %v1957_v33 = vmax.f32 %v1893_v41, 0.0 }
 0x157   : > { %867 = vperm.xlu1 %4223, %v4905_v48   ;;  %4026 = vmatmul.mubr.msk.bf16.gmra.mxu0 %vm2080_vm0, %v2012_v3  ;;  %v1824_v20 = vadd.f32 %v1760_v36, %v1436_v8  ;;  %v1958_v61 = vmax.f32 %v1894_v47, 0.0 }
 0x158   : > { %4029 = vmatprep.mubr.msk.bf16.mxu0 %vm2080_vm0, %v2013_v46  ;;  %v1896_v0 = vadd.f32 %v5101_v53, %v1825_v24  ;;  %1675 = vperm.xlu0 %4257, %v5229_v40  }
 0x159   : > { %v793_v34 = vpop.permute.xlu1 %792  ;;  %v1895_v2 = vadd.f32 %v5101_v53, %v1824_v20  ;;  %v2015_v32 = vpack.c.bf16 %v1958_v61, %v1957_v33 }
 0x15a   : > { %v1960_v15 = vmax.f32 %v1896_v0, 0.0  ;;  %v1050_v39 = vmul.f32 %v5057_v27, %v793_v34 }
 0x15b   : > { %4224 = vset.pattern.permute.xlu1 %v6250_v23 }
 0x15c   : > { %1223 = vperm.xlu1 %4224, %v4905_v48   ;;  %v1959_v48 = vmax.f32 %v1895_v2, 0.0  ;;  %1683 = vperm.xlu0 %4257, %v5012_v22   ;;  %v1052_v22 = vmul.f32 %v5057_v27, %v4935_v58 }
 0x15e   : > { %v1164_v4 = vpop.permute.xlu1 %1163  ;;  %v2016_v38 = vpack.c.bf16 %v1960_v15, %v1959_v48  ;;  %v1440_v28 = vadd.f32 %v1376_v55, %v1052_v22  ;;  %v6261_v22 = vld [vmem:[#allocation17_spill] sm:$0xff] }
 0x15f   : > { %4030 = vmatmul.mubr.msk.bf16.gmra.mxu0 %vm2080_vm0, %v2014_v12  ;;  %v1374_v1 = vmul.f32 %v5049_v56, %v1164_v4  ;;  %v1379_v55 = vmul.f32 %v5049_v56, %v6261_v22  ;;  %v4277_v22 = vld [vmem:[%s6201_s5 + $0x74] ss:$8 sps:$4 sm:$0xff]  }
 0x160   : > { %4225 = vset.pattern.permute.xlu1 %v6255_v57  ;;  %4033 = vmatprep.mubr.msk.bf16.mxu0 %vm2080_vm0, %v2015_v32  ;;  %v6258_v32 = vld [vmem:[#allocation11_spill] sm:$0xff] }
 0x161   : > { %1603 = vperm.xlu1 %4225, %v4829_v25   ;;  %v1556_v25 = vpop.permute.xlu0 %1555  ;;  %v1438_v16 = vadd.f32 %v1374_v1, %v1050_v39  ;;  %v5279_v1 = vld [vmem:[%s4758_s24 + $0x1a0] sm:$0xff]  ;;  %4085 = vmatprep.subr.bf16.mxu1 %v4277_v22 }
 0x162   : > { %v1168_v44 = vpop.permute.xlu1 %1167  ;;  %v1763_v9 = vmul.f32 %v5070_v59, %v1556_v25  ;;  %1695 = vperm.xlu0 %4257, %v5279_v1   ;;  %2670 = vmatprep.subr.bf16.mxu0 %v4277_v22 }
 0x163   : > { %v1375_v14 = vmul.f32 %v5049_v56, %v1168_v44 }
 0x165   : > { %1607 = vperm.xlu1 %4225, %v4834_v26   ;;  %v1439_v5 = vadd.f32 %v1375_v14, %v1051_v60  ;;  %v1568_v52 = vpop.permute.xlu0 %1567 }
 0x167   : > { %v808_v31 = vpop.permute.xlu1 %807  ;;  %4034 = vmatmul.mubr.msk.bf16.gmra.mxu0 %vm2080_vm0, %v2016_v38  ;;  %v1827_v30 = vadd.f32 %v1763_v9, %v1439_v5  ;;  %v6259_v38 = vld [vmem:[#allocation16_spill] sm:$0xff]  ;;  %v1766_v5 = vmul.f32 %v5070_v59, %v1568_v52 }
 0x168   : > { %v1053_v46 = vmul.f32 %v5057_v27, %v808_v31  ;;  %v1054_v31 = vmul.f32 %v5057_v27, %v6259_v38 }
 0x169   : > { %4226 = vset.pattern.permute.xlu1 %v6256_v37  ;;  %v1898_v17 = vadd.f32 %v5101_v53, %v1827_v30  ;;  %v1580_v24 = vpop.permute.xlu0 %1579 }
 0x16a   : > { %872 = vperm.xlu1 %4226, %v677_v45  }
 0x16b   : > { %v1962_v36 = vmax.f32 %v1898_v17, 0.0 }
 0x16c   : > { %v1176_v26 = vpop.permute.xlu1 %1175 }
 0x16d   : > { %v1377_v58 = vmul.f32 %v5049_v56, %v1176_v26  ;;  %v5263_v2 = vpop.permute.xlu0 %1587 }
 0x16e   : > { %4227 = vset.pattern.permute.xlu1 %v6250_v23 }
 0x16f   : > { %1227 = vperm.xlu1 %4227, %v677_v45   ;;  %v1441_v8 = vadd.f32 %v1377_v58, %v1053_v46 }
 0x171   : > { %v1552_v42 = vpop.permute.xlu1 %1551  ;;  %v5267_v15 = vpop.permute.xlu0 %1599 }
 0x172   : > { %v1762_v54 = vmul.f32 %v5070_v59, %v1552_v42 }
 0x173   : > { %1231 = vperm.xlu1 %4227, %v6257_v50   ;;  %v1769_v50 = vmul.f32 %v5070_v59, %v1580_v24 }
 0x174   : > { %v1826_v43 = vadd.f32 %v1762_v54, %v1438_v16  ;;  %v6262_v16 = vld [vmem:[#allocation13_spill] sm:$0xff] }
 0x175   : > { %v1560_v3 = vpop.permute.xlu1 %1559  ;;  %v5272_v14 = vpop.permute.xlu0 %1611 }
 0x176   : > { %v1897_v21 = vadd.f32 %v5101_v53, %v1826_v43  ;;  %v1764_v7 = vmul.f32 %v5070_v59, %v1560_v3  ;;  %v5292_v43 = vld [vmem:[%s4758_s24 + $0x1b8] sm:$0xff] }
 0x177   : > { %4228 = vset.pattern.permute.xlu1 %v6256_v37  ;;  %v6263_v3 = vld [vmem:[#allocation18_spill] sm:$0xff]  ;;  %1707 = vperm.xlu0 %4257, %v5292_v43  }
 0x178   : > { %v1961_v41 = vmax.f32 %v1897_v21, 0.0  ;;  %v1828_v47 = vadd.f32 %v1764_v7, %v1440_v28  ;;  %887 = vperm.xlu1 %4228, %v680_v35  }
 0x179   : > { %v1564_v63 = vpop.permute.xlu1 %1563  ;;  %v5286_v42 = vpop.permute.xlu0 %1619 }
 0x17a   : > { %v1765_v11 = vmul.f32 %v5070_v59, %v1564_v63  ;;  %v2017_v49 = vpack.c.bf16 %v1962_v36, %v1961_v41  ;;  %v1899_v20 = vadd.f32 %v5101_v53, %v1828_v47  ;;  %v6264_v41 = vld [vmem:[#allocation23_spill] sm:$0xff] }
 0x17c   : > { %v1829_v34 = vadd.f32 %v1765_v11, %v1441_v8  ;;  %4230 = vset.pattern.permute.xlu1 %v6250_v23  ;;  %4037 = vmatprep.mubr.msk.bf16.mxu0 %vm2080_vm0, %v2017_v49  ;;  %v1963_v62 = vmax.f32 %v1899_v20, 0.0  ;;  %v5305_v8 = vld [vmem:[%s4758_s24 + $0x1c8] sm:$0xff] }
 0x17d   : > { %1239 = vperm.xlu1 %4230, %v680_v35   ;;  %v5302_v47 = vpop.permute.xlu0 %1631  ;;  %1715 = vperm.xlu0 %4257, %v5305_v8  }
 0x17e   : > { %v1900_v33 = vadd.f32 %v5101_v53, %v1829_v34  ;;  %v818_v61 = vpop.permute.xlu1 %817 }
 0x17f   : > { %v1055_v39 = vmul.f32 %v5057_v27, %v818_v61 }
 0x180   : > { %v1964_v0 = vmax.f32 %v1900_v33, 0.0 }
 0x181   : > { %4231 = vset.pattern.permute.xlu1 %v6255_v57  ;;  %v1443_v52 = vadd.f32 %v1379_v55, %v1055_v39  ;;  %4265 = vset.pattern.permute.xlu0 %v6256_v37 }
 0x182   : > { %1615 = vperm.xlu1 %4231, %v677_v45   ;;  %v2018_v12 = vpack.c.bf16 %v1964_v0, %v1963_v62  ;;  %v6260_v45 = vld [vmem:[#allocation20_spill] sm:$0xff]  ;;  %v6265_v62 = vld [vmem:[#allocation14_spill] sm:$0xff]  ;;  %972 = vperm.xlu0 %4265, %v5279_v1  }
 0x183   : > { %v1180_v4 = vpop.permute.xlu1 %1179 }
 0x184   : > { %4038 = vmatmul.mubr.msk.bf16.gmra.mxu0 %vm2080_vm0, %v2018_v12  ;;  %v1378_v60 = vmul.f32 %v5049_v56, %v1180_v4  ;;  %v5313_v4 = vpop.permute.xlu0 %1643 }
 0x186   : > { %1623 = vperm.xlu1 %4231, %v6258_v32   ;;  %v1442_v25 = vadd.f32 %v1378_v60, %v1054_v31  ;;  %997 = vperm.xlu0 %4265, %v5305_v8  }
 0x188   : > { %v823_v48 = vpop.permute.xlu1 %822  ;;  %v1830_v54 = vadd.f32 %v1766_v5, %v1442_v25  ;;  %v5321_v60 = vpop.permute.xlu0 %1651 }
 0x189   : > { %v1056_v58 = vmul.f32 %v5057_v27, %v823_v48 }
 0x18a   : > { %1627 = vperm.xlu1 %4231, %v680_v35   ;;  %v1380_v35 = vmul.f32 %v5049_v56, %v6263_v3  ;;  %v1901_v7 = vadd.f32 %v5101_v53, %v1830_v54 }
 0x18c   : > { %v828_v44 = vpop.permute.xlu1 %827  ;;  %v1444_v11 = vadd.f32 %v1380_v35, %v1056_v58  ;;  %v1965_v20 = vmax.f32 %v1901_v7, 0.0  ;;  %v838_v5 = vpop.permute.xlu0 %837  ;;  %v6266_v35 = vld [vmem:[#allocation22_spill] sm:$0xff] }
 0x18d   : > { %v1057_v30 = vmul.f32 %v5057_v27, %v828_v44  ;;  %v1059_v39 = vmul.f32 %v5057_v27, %v838_v5  ;;  %v4291_v5 = vld [vmem:[%s6201_s5 + $0x30] ss:$8 sps:$4 sm:$0xff]  }
 0x18e   : > { %4232 = vset.pattern.permute.xlu1 %v6256_v37 }
 0x18f   : > { %897 = vperm.xlu1 %4232, %v6260_v45  }
 0x191   : > { %v1192_v9 = vpop.permute.xlu1 %1191 }
 0x192   : > { %v1381_v26 = vmul.f32 %v5049_v56, %v1192_v9 }
 0x193   : > { %4233 = vset.pattern.permute.xlu1 %v6250_v23 }
 0x194   : > { %1243 = vperm.xlu1 %4233, %v6262_v16   ;;  %v1445_v28 = vadd.f32 %v1381_v26, %v1057_v30  ;;  %v5328_v26 = vld [vmem:[%s4758_s24 + $0x140] sm:$0xff]  ;;  %v4279_v30 = vld [vmem:[%s6201_s5 + $0x70] ss:$8 sps:$4 sm:$0xff]   ;;  %v1771_v16 = vmul.f32 %v5070_v59, %v5263_v2  ;;  %v4283_v2 = vld [vmem:[%s6201_s5 + $0x54] ss:$8 sps:$4 sm:$0xff]  }
 0x195   : > { %4093 = vmatpush1.bf16.msra.mxu1 %v4279_v30  ;;  %2671 = vmatpush1.bf16.msra.mxu0 %v4279_v30 }
 0x196   : > { %v1572_v17 = vpop.permute.xlu1 %1571  ;;  %v1833_v36 = vadd.f32 %v1769_v50, %v1445_v28  ;;  %v4282_v28 = vld [vmem:[%s6201_s5 + $0x60] ss:$8 sps:$4 sm:$0xff]  }
 0x197   : > { %v1767_v21 = vmul.f32 %v5070_v59, %v1572_v17  ;;  %v843_v17 = vpop.permute.xlu0 %842 }
 0x198   : > { %4234 = vset.pattern.permute.xlu1 %v6256_v37  ;;  %v1904_v34 = vadd.f32 %v5101_v53, %v1833_v36  ;;  %v1060_v7 = vmul.f32 %v5057_v27, %v843_v17  ;;  %v4285_v36 = vld [vmem:[%s6201_s5 + $0x50] ss:$8 sps:$4 sm:$0xff]   ;;  %v4295_v17 = vld [vmem:[%s6201_s5 + $0x14] ss:$8 sps:$4 sm:$0xff]  }
 0x199   : > { %v1831_v46 = vadd.f32 %v1767_v21, %v1443_v52  ;;  %902 = vperm.xlu1 %4234, %v6264_v41   ;;  %v1384_v52 = vmul.f32 %v5049_v56, %v6266_v35  ;;  %v4297_v35 = vld [vmem:[%s6201_s5 + $0x10] ss:$8 sps:$4 sm:$0xff]  }
 0x19a   : > { %v1576_v63 = vpop.permute.xlu1 %1575  ;;  %v1968_v48 = vmax.f32 %v1904_v34, 0.0 }
 0x19b   : > { %v1902_v49 = vadd.f32 %v5101_v53, %v1831_v46  ;;  %v1768_v24 = vmul.f32 %v5070_v59, %v1576_v63  ;;  %v1448_v34 = vadd.f32 %v1384_v52, %v1060_v7  ;;  %v4300_v7 = vld [vmem:[%s6201_s5] ss:$8 sps:$4 sm:$0xff]  }
 0x19d   : > { %v1966_v33 = vmax.f32 %v1902_v49, 0.0  ;;  %v1832_v61 = vadd.f32 %v1768_v24, %v1444_v11  ;;  %907 = vperm.xlu1 %4234, %v6265_v62   ;;  %v6267_v11 = vld [vmem:[#allocation15_spill] sm:$0xff] }
 0x19e   : > { %v4286_v49 = vld [vmem:[%s6201_s5 + $0x44] ss:$8 sps:$4 sm:$0xff]  }
 0x19f   : > { %v1903_v0 = vadd.f32 %v5101_v53, %v1832_v61  ;;  %v833_v12 = vpop.permute.xlu1 %832  ;;  %v2019_v32 = vpack.c.bf16 %v1966_v33, %v1965_v20  ;;  %v4288_v33 = vld [vmem:[%s6201_s5 + $0x40] ss:$8 sps:$4 sm:$0xff]  }
 0x1a0   : > { %v1058_v58 = vmul.f32 %v5057_v27, %v833_v12 }
 0x1a1   : > { %v1967_v44 = vmax.f32 %v1903_v0, 0.0  ;;  %4235 = vset.pattern.permute.xlu1 %v6250_v23  ;;  %4041 = vmatprep.mubr.msk.bf16.mxu0 %vm2080_vm0, %v2019_v32 }
 0x1a2   : > { %1255 = vperm.xlu1 %4235, %v6265_v62   ;;  %v688_v62 = vld [vmem:[%s4758_s24 + $0x158] sm:$0xff] }
 0x1a3   : > { %v2020_v38 = vpack.c.bf16 %v1968_v48, %v1967_v44  ;;  %v4289_v48 = vld [vmem:[%s6201_s5 + $0x34] ss:$8 sps:$4 sm:$0xff]  }
 0x1a4   : > { %v1196_v31 = vpop.permute.xlu1 %1195 }
 0x1a5   : > { %4042 = vmatmul.mubr.msk.bf16.gmra.mxu0 %vm2080_vm0, %v2020_v38  ;;  %v1382_v3 = vmul.f32 %v5049_v56, %v1196_v31 }
 0x1a6   : > { %4236 = vset.pattern.permute.xlu1 %v6255_v57 }
 0x1a7   : > { %1635 = vperm.xlu1 %4236, %v6260_v45   ;;  %v4280_v45 = vld [vmem:[%s6201_s5 + $0x64] ss:$8 sps:$4 sm:$0xff]  }
 0x1a8   : > { %v1200_v25 = vpop.permute.xlu1 %1199  ;;  %4086 = vmatprep.subr.bf16.mxu1 %v4280_v45  ;;  %2672 = vmatprep.subr.bf16.mxu0 %v4280_v45 }
 0x1a9   : > { %v1383_v55 = vmul.f32 %v5049_v56, %v1200_v25  ;;  %4094 = vmatpush1.bf16.msra.mxu1 %v4282_v28  ;;  %2673 = vmatpush1.bf16.msra.mxu0 %v4282_v28 }
 0x1aa   : > { %4087 = vmatprep.subr.bf16.mxu1 %v4283_v2  ;;  %2674 = vmatprep.subr.bf16.mxu0 %v4283_v2 }
 0x1ab   : > { %1639 = vperm.xlu1 %4236, %v6264_v41   ;;  %v1447_v54 = vadd.f32 %v1383_v55, %v1059_v39  ;;  %v1446_v41 = vadd.f32 %v1382_v3, %v1058_v58 }
 0x1ad   : > { %v848_v9 = vpop.permute.xlu1 %847  ;;  %v1835_v21 = vadd.f32 %v1771_v16, %v1447_v54  ;;  %4095 = vmatpush1.bf16.msra.mxu1 %v4285_v36  ;;  %2675 = vmatpush1.bf16.msra.mxu0 %v4285_v36  ;;  %v4294_v54 = vld [vmem:[%s6201_s5 + $0x20] ss:$8 sps:$4 sm:$0xff]  }
 0x1ae   : > { %4088 = vmatprep.subr.bf16.mxu1 %v4286_v49  ;;  %2676 = vmatprep.subr.bf16.mxu0 %v4286_v49  ;;  %v1061_v38 = vmul.f32 %v5057_v27, %v848_v9  ;;  %v4292_v9 = vld [vmem:[%s6201_s5 + $0x24] ss:$8 sps:$4 sm:$0xff]   ;;  %v1774_v49 = vmul.f32 %v5070_v59, %v5267_v15 }
 0x1af   : > { %4237 = vset.pattern.permute.xlu1 %v6256_v37  ;;  %v1906_v24 = vadd.f32 %v5101_v53, %v1835_v21  ;;  %v4298_v21 = vld [vmem:[%s6201_s5 + $0x4] ss:$8 sps:$4 sm:$0xff]  }
 0x1b0   : > { %912 = vperm.xlu1 %4237, %v5328_v26  }
 0x1b1   : > { %4096 = vmatpush1.bf16.msra.mxu1 %v4288_v33  ;;  %v1970_v44 = vmax.f32 %v1906_v24, 0.0  ;;  %2677 = vmatpush1.bf16.msra.mxu0 %v4288_v33  ;;  %v6268_v33 = vld [vmem:[#allocation24_spill] sm:$0xff] }
 0x1b2   : > { %v1208_v50 = vpop.permute.xlu1 %1207  ;;  %4089 = vmatprep.subr.bf16.mxu1 %v4289_v48  ;;  %2678 = vmatprep.subr.bf16.mxu0 %v4289_v48 }
 0x1b3   : > { %v1385_v0 = vmul.f32 %v5049_v56, %v1208_v50 }
 0x1b4   : > { %4238 = vset.pattern.permute.xlu1 %v6250_v23 }
 0x1b5   : > { %1259 = vperm.xlu1 %4238, %v5328_v26   ;;  %v1449_v55 = vadd.f32 %v1385_v0, %v1061_v38  ;;  %4097 = vmatpush1.bf16.msra.mxu1 %v4291_v5 }
 0x1b6   : > { %4090 = vmatprep.subr.bf16.mxu1 %v4292_v9  ;;  %2679 = vmatpush1.bf16.msra.mxu0 %v4291_v5 }
 0x1b7   : > { %v1584_v46 = vpop.permute.xlu1 %1583  ;;  %2680 = vmatprep.subr.bf16.mxu0 %v4292_v9 }
 0x1b8   : > { %v1770_v63 = vmul.f32 %v5070_v59, %v1584_v46  ;;  %v853_v46 = vpop.permute.xlu0 %852 }
 0x1b9   : > { %1263 = vperm.xlu1 %4238, %v6267_v11   ;;  %4098 = vmatpush1.bf16.msra.mxu1 %v4294_v54 }
 0x1ba   : > { %v1834_v20 = vadd.f32 %v1770_v63, %v1446_v41  ;;  %4091 = vmatprep.subr.bf16.mxu1 %v4295_v17  ;;  %2681 = vmatpush1.bf16.msra.mxu0 %v4294_v54  ;;  %v5414_v41 = vld [vmem:[%s4758_s24 + $0x1e0] sm:$0xff] }
 0x1bb   : > { %v1592_v61 = vpop.permute.xlu1 %1591  ;;  %2682 = vmatprep.subr.bf16.mxu0 %v4295_v17 }
 0x1bc   : > { %v1905_v12 = vadd.f32 %v5101_v53, %v1834_v20  ;;  %v1772_v32 = vmul.f32 %v5070_v59, %v1592_v61  ;;  %v1387_v61 = vmul.f32 %v5049_v56, %v6268_v33 }
 0x1bd   : > { %4239 = vset.pattern.permute.xlu1 %v6256_v37  ;;  %4099 = vmatpush1.bf16.msra.mxu1 %v4297_v35 }
 0x1be   : > { %v1969_v31 = vmax.f32 %v1905_v12, 0.0  ;;  %v1836_v25 = vadd.f32 %v1772_v32, %v1448_v34  ;;  %927 = vperm.xlu1 %4239, %v688_v62   ;;  %4092 = vmatprep.subr.bf16.mxu1 %v4298_v21  ;;  %v1777_v12 = vmul.f32 %v5070_v59, %v5272_v14 }
 0x1bf   : > { %v1596_v22 = vpop.permute.xlu1 %1595  ;;  %2683 = vmatpush1.bf16.msra.mxu0 %v4297_v35 }
 0x1c0   : > { %v1773_v39 = vmul.f32 %v5070_v59, %v1596_v22  ;;  %v2021_v30 = vpack.c.bf16 %v1970_v44, %v1969_v31  ;;  %v1907_v45 = vadd.f32 %v5101_v53, %v1836_v25  ;;  %2684 = vmatprep.subr.bf16.mxu0 %v4298_v21  ;;  %v6269_v44 = vld [vmem:[#allocation25_spill] sm:$0xff]  ;;  %v5440_v22 = vld [vmem:[%s4758_s24 + $0x1e8] sm:$0xff] }
 0x1c1   : > { %4100 = vmatpush1.bf16.msra.mxu1 %v4300_v7  ;;  %v1388_v38 = vmul.f32 %v5049_v56, %v6269_v44  ;;  %v4301_v44 = vld [vmem:[%s4758_s24 + $0x188] sm:$0xff] }
 0x1c2   : > { %v1837_v16 = vadd.f32 %v1773_v39, %v1449_v55  ;;  %4240 = vset.pattern.permute.xlu1 %v6250_v23  ;;  %4045 = vmatprep.mubr.msk.bf16.mxu0 %vm2080_vm0, %v2021_v30  ;;  %v1971_v3 = vmax.f32 %v1907_v45, 0.0 }
 0x1c3   : > { %1271 = vperm.xlu1 %4240, %v688_v62   ;;  %2685 = vmatpush1.bf16.msra.mxu0 %v4300_v7 }
 0x1c4   : > { %v1908_v50 = vadd.f32 %v5101_v53, %v1837_v16  ;;  %v858_v28 = vpop.permute.xlu1 %857  ;;  %v5448_v16 = vld [vmem:[%s4758_s24 + $0x1f0] sm:$0xff] }
 0x1c6   : > { %v1972_v2 = vmax.f32 %v1908_v50, 0.0 }
 0x1c7   : > { %4241 = vset.pattern.permute.xlu1 %v6255_v57 }
 0x1c8   : > { %1647 = vperm.xlu1 %4241, %v5328_v26   ;;  %v2022_v52 = vpack.c.bf16 %v1972_v2, %v1971_v3  ;;  %v5410_v26 = vld [vmem:[%s4758_s24 + $0x1d0] sm:$0xff] }
 0x1c9   : > { %v1212_v58 = vpop.permute.xlu1 %1211  ;;  %1002 = vperm.xlu0 %4265, %v5410_v26  }
 0x1ca   : > { %4046 = vmatmul.mubr.msk.bf16.gmra.mxu0 %vm2080_vm0, %v2022_v52  ;;  %v1386_v11 = vmul.f32 %v5049_v56, %v1212_v58 }
 0x1cc   : > { %1655 = vperm.xlu1 %4241, %v4993_v13   ;;  %v1062_v13 = vmul.f32 %v5057_v27, %v853_v46 }
 0x1cd   : > { %1012 = vperm.xlu0 %4265, %v5414_v41  }
 0x1ce   : > { %v863_v36 = vpop.permute.xlu1 %862  ;;  %v1450_v24 = vadd.f32 %v1386_v11, %v1062_v13  ;;  %v693_v11 = vld [vmem:[%s4758_s24 + $0x180] sm:$0xff] }
 0x1cf   : > { %v1064_v25 = vmul.f32 %v5057_v27, %v863_v36  ;;  %v878_v36 = vpop.permute.xlu0 %877 }
 0x1d0   : > { %1659 = vperm.xlu1 %4241, %v688_v62   ;;  %v1063_v62 = vmul.f32 %v5057_v27, %v858_v28  ;;  %v1838_v15 = vadd.f32 %v1774_v49, %v1450_v24  ;;  %v1067_v13 = vmul.f32 %v5057_v27, %v878_v36 }
 0x1d1   : > { %4266 = vset.pattern.permute.xlu0 %v6250_v23  ;;  %v1452_v30 = vadd.f32 %v1388_v38, %v1064_v25 }
 0x1d2   : > { %v868_v63 = vpop.permute.xlu1 %867  ;;  %1331 = vperm.xlu0 %4266, %v5410_v26   ;;  %v1451_v31 = vadd.f32 %v1387_v61, %v1063_v62 }
 0x1d3   : > { %v1065_v0 = vmul.f32 %v5057_v27, %v868_v63  ;;  %v5463_v63 = vld [vmem:[%s4758_s24 + $0x1f8] sm:$0xff]  ;;  %v883_v49 = vpop.permute.xlu0 %882 }
 0x1d4   : > { %4243 = vset.pattern.permute.xlu1 %v6256_v37 }
 0x1d5   : > { %937 = vperm.xlu1 %4243, %v5144_v18  }
 0x1d6   : > { %1343 = vperm.xlu0 %4266, %v5440_v22  }
 0x1d7   : > { %v1224_v20 = vpop.permute.xlu1 %1223 }
 0x1d8   : > { %v1389_v34 = vmul.f32 %v5049_v56, %v1224_v20 }
 0x1d9   : > { %4244 = vset.pattern.permute.xlu1 %v6250_v23 }
 0x1da   : > { %1275 = vperm.xlu1 %4244, %v5003_v19   ;;  %v1453_v32 = vadd.f32 %v1389_v34, %v1065_v0  ;;  %v1909_v19 = vadd.f32 %v5101_v53, %v1838_v15  ;;  %1347 = vperm.xlu0 %4266, %v5448_v16   ;;  %v5473_v34 = vpop.permute.xlu0 %892  ;;  %v1068_v15 = vmul.f32 %v5057_v27, %v883_v49  ;;  %v5505_v49 = vld [vmem:[%s6200_s4] ss:$0 sm:$0xff] }
 0x1dc   : > { %v1604_v48 = vpop.permute.xlu1 %1603  ;;  %v1841_v55 = vadd.f32 %v1777_v12, %v1453_v32  ;;  %v1973_v54 = vmax.f32 %v1909_v19, 0.0  ;;  %v1392_v12 = vmul.f32 %v5049_v56, %v5094_v51 }
 0x1dd   : > { %v1775_v5 = vmul.f32 %v5070_v59, %v1604_v48 }
 0x1de   : > { %4245 = vset.pattern.permute.xlu1 %v6256_v37  ;;  %v1912_v50 = vadd.f32 %v5101_v53, %v1841_v55  ;;  %4271 = vset.pattern.permute.xlu0 %v6255_v57  ;;  %v5481_v32 = vpop.permute.xlu0 %917  ;;  %v1456_v19 = vadd.f32 %v1392_v12, %v1068_v15 }
 0x1df   : > { %v1839_v14 = vadd.f32 %v1775_v5, %v1451_v31  ;;  %942 = vperm.xlu1 %4245, %v5163_v6   ;;  %1727 = vperm.xlu0 %4271, %v5414_v41   ;;  %v696_v5 = vld [vmem:[%s4758_s24 + $0x198] sm:$0xff] }
 0x1e0   : > { %v1608_v39 = vpop.permute.xlu1 %1607  ;;  %v1976_v52 = vmax.f32 %v1912_v50, 0.0 }
 0x1e1   : > { %v1910_v9 = vadd.f32 %v5101_v53, %v1839_v14  ;;  %v1776_v45 = vmul.f32 %v5070_v59, %v1608_v39 }
 0x1e3   : > { %v1974_v28 = vmax.f32 %v1910_v9, 0.0  ;;  %v1840_v17 = vadd.f32 %v1776_v45, %v1452_v30  ;;  %947 = vperm.xlu1 %4245, %v5229_v40   ;;  %1739 = vperm.xlu0 %4271, %v5463_v63   ;;  %v5492_v9 = vpop.permute.xlu0 %922 }
 0x1e5   : > { %v1911_v3 = vadd.f32 %v5101_v53, %v1840_v17  ;;  %v873_v2 = vpop.permute.xlu1 %872  ;;  %v2023_v35 = vpack.c.bf16 %v1974_v28, %v1973_v54 }
 0x1e6   : > { %v1066_v61 = vmul.f32 %v5057_v27, %v873_v2 }
 0x1e7   : > { %v1975_v58 = vmax.f32 %v1911_v3, 0.0  ;;  %4246 = vset.pattern.permute.xlu1 %v6250_v23  ;;  %4049 = vmatprep.mubr.msk.bf16.mxu0 %vm2080_vm0, %v2023_v35 }
 0x1e8   : > { %1287 = vperm.xlu1 %4246, %v5229_v40  }
 0x1e9   : > { %v2024_v21 = vpack.c.bf16 %v1976_v52, %v1975_v58  ;;  %v5498_v52 = vpop.permute.xlu0 %932 }
 0x1ea   : > { %v1228_v7 = vpop.permute.xlu1 %1227 }
 0x1eb   : > { %4050 = vmatmul.mubr.msk.bf16.gmra.mxu0 %vm2080_vm0, %v2024_v21 }
 0x1ec   : > { %4247 = vset.pattern.permute.xlu1 %v6255_v57 }
 0x1ed   : > { %1667 = vperm.xlu1 %4247, %v5144_v18   ;;  %v1779_v18 = vmul.f32 %v5070_v59, %v5286_v42 }
 0x1ee   : > { %v1232_v46 = vpop.permute.xlu1 %1231 }
 0x1ef   : > { %v1391_v24 = vmul.f32 %v5049_v56, %v1232_v46 }
 0x1f1   : > { %1671 = vperm.xlu1 %4247, %v5163_v6   ;;  %v1455_v20 = vadd.f32 %v1391_v24, %v1067_v13  ;;  %v1390_v6 = vmul.f32 %v5049_v56, %v1228_v7  ;;  %v5507_v24 = vpop.permute.xlu0 %957 }
 0x1f3   : > { %v888_v40 = vpop.permute.xlu1 %887  ;;  %v1843_v62 = vadd.f32 %v1779_v18, %v1455_v20  ;;  %v1454_v42 = vadd.f32 %v1390_v6, %v1066_v61  ;;  %v4302_v20 = vld [vmem:[%s4758_s24 + $0x190] sm:$0xff] }
 0x1f4   : > { %v1069_v30 = vmul.f32 %v5057_v27, %v888_v40 }
 0x1f5   : > { %4248 = vset.pattern.permute.xlu1 %v6256_v37  ;;  %v1914_v38 = vadd.f32 %v5101_v53, %v1843_v62 }
 0x1f6   : > { %952 = vperm.xlu1 %4248, %v693_v11  }
 0x1f7   : > { %v1978_v39 = vmax.f32 %v1914_v38, 0.0 }
 0x1f8   : > { %v1240_v33 = vpop.permute.xlu1 %1239 }
 0x1f9   : > { %v1393_v55 = vmul.f32 %v5049_v56, %v1240_v33 }
 0x1fa   : > { %4249 = vset.pattern.permute.xlu1 %v6250_v23 }
 0x1fb   : > { %1291 = vperm.xlu1 %4249, %v693_v11   ;;  %v1457_v28 = vadd.f32 %v1393_v55, %v1069_v30 }
 0x1fd   : > { %v1616_v0 = vpop.permute.xlu1 %1615 }
 0x1fe   : > { %v1778_v48 = vmul.f32 %v5070_v59, %v1616_v0  ;;  %v5514_v0 = vpop.permute.xlu0 %962 }
 0x1ff   : > { %1295 = vperm.xlu1 %4249, %v4301_v44  }
 0x200   : > { %v1842_v31 = vadd.f32 %v1778_v48, %v1454_v42 }
 0x201   : > { %v1624_v25 = vpop.permute.xlu1 %1623 }
 0x202   : > { %v1913_v14 = vadd.f32 %v5101_v53, %v1842_v31  ;;  %v1780_v51 = vmul.f32 %v5070_v59, %v1624_v25  ;;  %v1248_v30 = vpop.permute.xlu0 %1247 }
 0x203   : > { %4251 = vset.pattern.permute.xlu1 %v6256_v37 }
 0x204   : > { %v1977_v45 = vmax.f32 %v1913_v14, 0.0  ;;  %v1844_v54 = vadd.f32 %v1780_v51, %v1456_v19  ;;  %967 = vperm.xlu1 %4251, %v696_v5   ;;  %v1070_v19 = vmul.f32 %v5057_v27, %v5473_v34  ;;  %v1782_v34 = vmul.f32 %v5070_v59, %v5302_v47 }
 0x205   : > { %v1628_v50 = vpop.permute.xlu1 %1627 }
 0x206   : > { %v1781_v17 = vmul.f32 %v5070_v59, %v1628_v50  ;;  %v2025_v3 = vpack.c.bf16 %v1978_v39, %v1977_v45  ;;  %v1915_v2 = vadd.f32 %v5101_v53, %v1844_v54 }
 0x208   : > { %v1845_v35 = vadd.f32 %v1781_v17, %v1457_v28  ;;  %4252 = vset.pattern.permute.xlu1 %v6250_v23  ;;  %4053 = vmatprep.mubr.msk.bf16.mxu0 %vm2080_vm0, %v2025_v3  ;;  %v1979_v7 = vmax.f32 %v1915_v2, 0.0 }
 0x209   : > { %1303 = vperm.xlu1 %4252, %v696_v5  }
 0x20a   : > { %v1916_v58 = vadd.f32 %v5101_v53, %v1845_v35  ;;  %v898_v21 = vpop.permute.xlu1 %897 }
 0x20c   : > { %v1980_v36 = vmax.f32 %v1916_v58, 0.0 }
 0x20d   : > { %4253 = vset.pattern.permute.xlu1 %v6255_v57 }
 0x20e   : > { %1679 = vperm.xlu1 %4253, %v693_v11   ;;  %v2026_v46 = vpack.c.bf16 %v1980_v36, %v1979_v7  ;;  %v1395_v7 = vmul.f32 %v5049_v56, %v1248_v30 }
 0x20f   : > { %v1244_v40 = vpop.permute.xlu1 %1243  ;;  %v4023_v13 = vpop.f32.mrf.mxu0 }
 0x210   : > { %4054 = vmatmul.mubr.msk.bf16.gmra.mxu0 %vm2080_vm0, %v2026_v46  ;;  %v2220_v53 = vadd.f32 %v4023_v13, %v5505_v49  ;;  %v1394_v55 = vmul.f32 %v5049_v56, %v1244_v40  ;;  %v1252_v40 = vpop.permute.xlu0 %1251 }
 0x211   : > { %v2211_v18 = vpop.f32.mrf.mxu0 }
 0x212   : > { %1687 = vperm.xlu1 %4253, %v4302_v20   ;;  %v2212_v11 = vadd.f32 %v5505_v49, %v2211_v18  ;;  %v2468_v12 = vmax.f32 %v2220_v53, 0.0  ;;  %v1458_v50 = vadd.f32 %v1394_v55, %v1070_v19  ;;  %v1785_v53 = vmul.f32 %v5070_v59, %v5313_v4 }
 0x213   : > { %v4024_v33 = vpop.f32.mrf.mxu0 }
 0x214   : > { %v2223_v6 = vadd.f32 %v4024_v33, %v5505_v49  ;;  %v903_v61 = vpop.permute.xlu1 %902  ;;  %v2466_v44 = vmax.f32 %v2212_v11, 0.0  ;;  %v1846_v20 = vadd.f32 %v1782_v34, %v1458_v50 }
 0x215   : > { %v2214_v62 = vpop.f32.mrf.mxu0 }
 0x216   : > { %v2469_v15 = vmax.f32 %v2223_v6, 0.0  ;;  %v2215_v42 = vadd.f32 %v5505_v49, %v2214_v62  ;;  %1691 = vperm.xlu1 %4253, %v696_v5  }
 0x217   : > { %v4027_v48 = vpop.f32.mrf.mxu0 }
 0x218   : > { %v5517_v38 = vpack.c.bf16 %v2469_v15, %v2468_v12  ;;  %v2467_v31 = vmax.f32 %v2215_v42, 0.0  ;;  %v908_v25 = vpop.permute.xlu1 %907  ;;  %v2236_v39 = vadd.f32 %v4027_v48, %v5505_v49  ;;  %v1072_v15 = vmul.f32 %v5057_v27, %v903_v61 }
 0x219   : > { %v2227_v14 = vpop.f32.mrf.mxu0  ;;  %v1073_v36 = vmul.f32 %v5057_v27, %v908_v25  ;;  %v1396_v42 = vmul.f32 %v5049_v56, %v1252_v40 }
 0x21a   : > { %v5522_v51 = vpack.c.bf16 %v2467_v31, %v2466_v44  ;;  %4254 = vset.pattern.permute.xlu1 %v6256_v37  ;;  %v2228_v45 = vadd.f32 %v5505_v49, %v2227_v14  ;;  %v2472_v3 = vmax.f32 %v2236_v39, 0.0  ;;  %v5554_v31 = vld [vmem:[%s6198_s2] ss:$0 sm:$0xff] }
 0x21b   : > { %977 = vperm.xlu1 %4254, %v5196_v29   ;;  %v4028_v5 = vpop.f32.mrf.mxu0  ;;  %v1071_v29 = vmul.f32 %v5057_v27, %v898_v21  ;;  %v1917_v25 = vadd.f32 %v5554_v31, %v1846_v20 }
 0x21c   : > { %v2239_v54 = vadd.f32 %v4028_v5, %v5505_v49  ;;  %v2470_v47 = vmax.f32 %v2228_v45, 0.0  ;;  %v1460_v45 = vadd.f32 %v1396_v42, %v1072_v15 }
 0x21d   : > { %v1256_v28 = vpop.permute.xlu1 %1255  ;;  %v2230_v17 = vpop.f32.mrf.mxu0  ;;  %v1459_v12 = vadd.f32 %v1395_v7, %v1071_v29 }
 0x21e   : > { %v2473_v2 = vmax.f32 %v2239_v54, 0.0  ;;  %v1397_v35 = vmul.f32 %v5049_v56, %v1256_v28  ;;  %v2231_v58 = vadd.f32 %v5505_v49, %v2230_v17 }
 0x21f   : > { %4255 = vset.pattern.permute.xlu1 %v6250_v23  ;;  %v4031_v46 = vpop.f32.mrf.mxu0 }
 0x220   : > { %v5537_v13 = vpack.c.bf16 %v2473_v2, %v2472_v3  ;;  %v2471_v18 = vmax.f32 %v2231_v58, 0.0  ;;  %1307 = vperm.xlu1 %4255, %v5279_v1   ;;  %v1461_v33 = vadd.f32 %v1397_v35, %v1073_v36  ;;  %v2252_v6 = vadd.f32 %v4031_v46, %v5505_v49 }
 0x221   : > { %v2243_v21 = vpop.f32.mrf.mxu0  ;;  %v1981_v2 = vmax.f32 %v1917_v25, 0.0 }
 0x222   : > { %v5542_v11 = vpack.c.bf16 %v2471_v18, %v2470_v47  ;;  %v1636_v62 = vpop.permute.xlu1 %1635  ;;  %v2244_v1 = vadd.f32 %v5505_v49, %v2243_v21  ;;  %v1849_v19 = vadd.f32 %v1785_v53, %v1461_v33  ;;  %v2476_v14 = vmax.f32 %v2252_v6, 0.0 }
 0x223   : > { %v1783_v48 = vmul.f32 %v5070_v59, %v1636_v62  ;;  %v4032_v44 = vpop.f32.mrf.mxu0 }
 0x224   : > { %v2255_v4 = vadd.f32 %v4032_v44, %v5505_v49  ;;  %4256 = vset.pattern.permute.xlu1 %v6256_v37  ;;  %v2474_v28 = vmax.f32 %v2244_v1, 0.0  ;;  %v1920_v35 = vadd.f32 %v5554_v31, %v1849_v19 }
 0x225   : > { %v1847_v61 = vadd.f32 %v1783_v48, %v1459_v12  ;;  %982 = vperm.xlu1 %4256, %v5211_v10   ;;  %v2246_v55 = vpop.f32.mrf.mxu0 }
 0x226   : > { %v2477_v39 = vmax.f32 %v2255_v4, 0.0  ;;  %v2247_v5 = vadd.f32 %v5505_v49, %v2246_v55  ;;  %v1640_v30 = vpop.permute.xlu1 %1639  ;;  %v1984_v21 = vmax.f32 %v1920_v35, 0.0 }
 0x227   : > { %v1918_v54 = vadd.f32 %v5554_v31, %v1847_v61  ;;  %v1784_v34 = vmul.f32 %v5070_v59, %v1640_v30  ;;  %v4035_v50 = vpop.f32.mrf.mxu0  ;;  %v4304_v61 = vld [vmem:[%s4758_s24 + $0x1a8] sm:$0xff]  ;;  %v1268_v30 = vpop.permute.xlu0 %1267 }
 0x228   : > { %v5561_v17 = vpack.c.bf16 %v2477_v39, %v2476_v14  ;;  %v2475_v3 = vmax.f32 %v2247_v5, 0.0  ;;  %v2268_v46 = vadd.f32 %v4035_v50, %v5505_v49  ;;  %v5584_v39 = vld [vmem:[%s4758_s24 + $0x1c0] sm:$0xff] }
 0x229   : > { %v1982_v58 = vmax.f32 %v1918_v54, 0.0  ;;  %v1848_v29 = vadd.f32 %v1784_v34, %v1460_v45  ;;  %987 = vperm.xlu1 %4256, %v5292_v43   ;;  %v2259_v7 = vpop.f32.mrf.mxu0  ;;  %v1787_v34 = vmul.f32 %v5070_v59, %v5321_v60 }
 0x22a   : > { %v5565_v36 = vpack.c.bf16 %v2475_v3, %v2474_v28  ;;  %v2260_v20 = vadd.f32 %v5505_v49, %v2259_v7  ;;  %v2480_v12 = vmax.f32 %v2268_v46, 0.0  ;;  %v1400_v3 = vmul.f32 %v5049_v56, %v1268_v30 }
 0x22b   : > { %v2027_v40 = vpack.c.bf16 %v1982_v58, %v1981_v2  ;;  %v1919_v47 = vadd.f32 %v5554_v31, %v1848_v29  ;;  %v913_v18 = vpop.permute.xlu1 %912  ;;  %v4036_v53 = vpop.f32.mrf.mxu0 }
 0x22c   : > { %v2271_v33 = vadd.f32 %v4036_v53, %v5505_v49  ;;  %v2478_v44 = vmax.f32 %v2260_v20, 0.0  ;;  %v1074_v50 = vmul.f32 %v5057_v27, %v913_v18  ;;  %v5600_v2 = vpop.permute.xlu0 %1279  ;;  %v704_v53 = vld [vmem:[%s4758_s24 + $0x1d8] sm:$0xff] }
 0x22d   : > { %v1983_v6 = vmax.f32 %v1919_v47, 0.0  ;;  %4258 = vset.pattern.permute.xlu1 %v6250_v23  ;;  %v2262_v62 = vpop.f32.mrf.mxu0  ;;  %4057 = vmatprep.mubr.msk.bf16.mxu0 %vm2080_vm0, %v2027_v40 }
 0x22e   : > { %v2481_v15 = vmax.f32 %v2271_v33, 0.0  ;;  %v2263_v42 = vadd.f32 %v5505_v49, %v2262_v62  ;;  %1319 = vperm.xlu1 %4258, %v5292_v43   ;;  %v1075_v43 = vmul.f32 %v5057_v27, %v5481_v32  ;;  %v1076_v32 = vmul.f32 %v5057_v27, %v5492_v9 }
 0x22f   : > { %v2028_v48 = vpack.c.bf16 %v1984_v21, %v1983_v6 }
 0x230   : > { %v5575_v1 = vpack.c.bf16 %v2481_v15, %v2480_v12  ;;  %v2479_v4 = vmax.f32 %v2263_v42, 0.0  ;;  %v1260_v25 = vpop.permute.xlu1 %1259  ;;  %v1464_v46 = vadd.f32 %v1400_v3, %v1076_v32  ;;  %v5610_v6 = vpop.permute.xlu0 %1283 }
 0x231   : > { %4058 = vmatmul.mubr.msk.bf16.gmra.mxu0 %vm2080_vm0, %v2028_v48 }
 0x232   : > { %v5578_v19 = vpack.c.bf16 %v2479_v4, %v2478_v44  ;;  %4259 = vset.pattern.permute.xlu1 %v6255_v57 }
 0x233   : > { %1699 = vperm.xlu1 %4259, %v4304_v61  }
 0x234   : > { %v1264_v55 = vpop.permute.xlu1 %1263 }
 0x235   : > { %v1399_v5 = vmul.f32 %v5049_v56, %v1264_v55 }
 0x237   : > { %1703 = vperm.xlu1 %4259, %v5211_v10   ;;  %v1463_v45 = vadd.f32 %v1399_v5, %v1075_v43  ;;  %v1398_v10 = vmul.f32 %v5049_v56, %v1260_v25 }
 0x239   : > { %v928_v14 = vpop.permute.xlu1 %927  ;;  %v1851_v28 = vadd.f32 %v1787_v34, %v1463_v45  ;;  %v1462_v58 = vadd.f32 %v1398_v10, %v1074_v50 }
 0x23a   : > { %v1077_v42 = vmul.f32 %v5057_v27, %v928_v14  ;;  %v5619_v14 = vpop.permute.xlu0 %1299 }
 0x23b   : > { %4260 = vset.pattern.permute.xlu1 %v6256_v37  ;;  %v1922_v7 = vadd.f32 %v5554_v31, %v1851_v28 }
 0x23c   : > { %992 = vperm.xlu1 %4260, %v5584_v39  }
 0x23d   : > { %v1986_v15 = vmax.f32 %v1922_v7, 0.0 }
 0x23e   : > { %v1272_v54 = vpop.permute.xlu1 %1271  ;;  %v5628_v7 = vpop.permute.xlu0 %1311 }
 0x23f   : > { %v1401_v20 = vmul.f32 %v5049_v56, %v1272_v54 }
 0x240   : > { %4261 = vset.pattern.permute.xlu1 %v6250_v23 }
 0x241   : > { %1323 = vperm.xlu1 %4261, %v5584_v39   ;;  %v1465_v5 = vadd.f32 %v1401_v20, %v1077_v42 }
 0x243   : > { %v1648_v35 = vpop.permute.xlu1 %1647 }
 0x244   : > { %v1786_v60 = vmul.f32 %v5070_v59, %v1648_v35  ;;  %v4039_v29 = vpop.f32.mrf.mxu0 }
 0x245   : > { %1327 = vperm.xlu1 %4261, %v5305_v8   ;;  %v2284_v47 = vadd.f32 %v4039_v29, %v5505_v49 }
 0x246   : > { %v1850_v40 = vadd.f32 %v1786_v60, %v1462_v58  ;;  %v2275_v9 = vpop.f32.mrf.mxu0 }
 0x247   : > { %v1656_v18 = vpop.permute.xlu1 %1655  ;;  %v2276_v8 = vadd.f32 %v5505_v49, %v2275_v9  ;;  %v2484_v25 = vmax.f32 %v2284_v47, 0.0 }
 0x248   : > { %v1921_v33 = vadd.f32 %v5554_v31, %v1850_v40  ;;  %v1788_v21 = vmul.f32 %v5070_v59, %v1656_v18  ;;  %v4040_v62 = vpop.f32.mrf.mxu0  ;;  %v5633_v40 = vpop.permute.xlu0 %1315  ;;  %v1078_v18 = vmul.f32 %v5057_v27, %v5498_v52 }
 0x249   : > { %v2287_v12 = vadd.f32 %v4040_v62, %v5505_v49  ;;  %4262 = vset.pattern.permute.xlu1 %v6256_v37  ;;  %v2482_v54 = vmax.f32 %v2276_v8, 0.0 }
 0x24a   : > { %v1985_v48 = vmax.f32 %v1921_v33, 0.0  ;;  %v1852_v44 = vadd.f32 %v1788_v21, %v1464_v46  ;;  %1007 = vperm.xlu1 %4262, %v704_v53   ;;  %v2278_v4 = vpop.f32.mrf.mxu0 }
 0x24b   : > { %v2485_v61 = vmax.f32 %v2287_v12, 0.0  ;;  %v2279_v55 = vadd.f32 %v5505_v49, %v2278_v4  ;;  %v1660_v43 = vpop.permute.xlu1 %1659 }
 0x24c   : > { %v2029_v30 = vpack.c.bf16 %v1986_v15, %v1985_v48  ;;  %v1789_v45 = vmul.f32 %v5070_v59, %v1660_v43  ;;  %v1923_v32 = vadd.f32 %v5554_v31, %v1852_v44  ;;  %v1664_v33 = vpop.permute.xlu0 %1663 }
 0x24d   : > { %v2539_v34 = vpack.c.bf16 %v2485_v61, %v2484_v25  ;;  %v2483_v10 = vmax.f32 %v2279_v55, 0.0  ;;  %v1790_v21 = vmul.f32 %v5070_v59, %v1664_v33  ;;  %v1404_v61 = vmul.f32 %v5049_v56, %v5610_v6 }
 0x24e   : > { %v1853_v50 = vadd.f32 %v1789_v45, %v1465_v5  ;;  %4263 = vset.pattern.permute.xlu1 %v6250_v23  ;;  %4061 = vmatprep.mubr.msk.bf16.mxu0 %vm2080_vm0, %v2029_v30  ;;  %v1987_v58 = vmax.f32 %v1923_v32, 0.0 }
 0x24f   : > { %v5623_v28 = vpack.c.bf16 %v2483_v10, %v2482_v54  ;;  %1335 = vperm.xlu1 %4263, %v704_v53   ;;  %2793 = vmatmul.mubr.bf16.vlgmr.msra.gmra.mxu1 %v2539_v34 }
 0x250   : > { %v1924_v3 = vadd.f32 %v5554_v31, %v1853_v50  ;;  %v938_v35 = vpop.permute.xlu1 %937  ;;  %2802 = vmatprep.mubr.bf16.mxu1 %v6256_v37  ;;  %v1676_v8 = vpop.permute.xlu0 %1675 }
 0x251   : > { %v1079_v12 = vmul.f32 %v5057_v27, %v938_v35  ;;  %v1793_v44 = vmul.f32 %v5070_v59, %v1676_v8 }
 0x252   : > { %v1988_v60 = vmax.f32 %v1924_v3, 0.0 }
 0x253   : > { %4264 = vset.pattern.permute.xlu1 %v6255_v57 }
 0x254   : > { %v2030_v29 = vpack.c.bf16 %v1988_v60, %v1987_v58  ;;  %1711 = vperm.xlu1 %4264, %v5584_v39  }
 0x255   : > { %v1276_v46 = vpop.permute.xlu1 %1275 }
 0x256   : > { %4062 = vmatmul.mubr.msk.bf16.gmra.mxu0 %vm2080_vm0, %v2030_v29  ;;  %v1402_v20 = vmul.f32 %v5049_v56, %v1276_v46 }
 0x258   : > { %1719 = vperm.xlu1 %4264, %v5410_v26   ;;  %v1466_v39 = vadd.f32 %v1402_v20, %v1078_v18 }
 0x25a   : > { %v943_v9 = vpop.permute.xlu1 %942  ;;  %v1854_v42 = vadd.f32 %v1790_v21, %v1466_v39 }
 0x25c   : > { %1723 = vperm.xlu1 %4264, %v704_v53   ;;  %v1403_v53 = vmul.f32 %v5049_v56, %v5600_v2  ;;  %v1080_v2 = vmul.f32 %v5057_v27, %v943_v9 }
 0x25e   : > { %v948_v47 = vpop.permute.xlu1 %947  ;;  %v1467_v55 = vadd.f32 %v1403_v53, %v1079_v12  ;;  %v1468_v32 = vadd.f32 %v1404_v61, %v1080_v2 }
 0x25f   : > { %v1081_v52 = vmul.f32 %v5057_v27, %v948_v47 }
 0x260   : > { %4267 = vset.pattern.permute.xlu1 %v6256_v37 }
 0x261   : > { %1017 = vperm.xlu1 %4267, %v5440_v22  }
 0x263   : > { %v1288_v62 = vpop.permute.xlu1 %1287 }
 0x264   : > { %v1405_v26 = vmul.f32 %v5049_v56, %v1288_v62 }
 0x265   : > { %4268 = vset.pattern.permute.xlu1 %v6250_v23  ;;  %v4043_v15 = vpop.f32.mrf.mxu0 }
 0x266   : > { %1339 = vperm.xlu1 %4268, %v5414_v41   ;;  %v1469_v48 = vadd.f32 %v1405_v26, %v1081_v52  ;;  %v1925_v41 = vadd.f32 %v5554_v31, %v1854_v42  ;;  %v2300_v21 = vadd.f32 %v4043_v15, %v5505_v49 }
 0x267   : > { %v2291_v4 = vpop.f32.mrf.mxu0 }
 0x268   : > { %v1668_v25 = vpop.permute.xlu1 %1667  ;;  %v2292_v30 = vadd.f32 %v5505_v49, %v2291_v4  ;;  %v1857_v45 = vadd.f32 %v1793_v44, %v1469_v48  ;;  %v1989_v60 = vmax.f32 %v1925_v41, 0.0  ;;  %v2488_v12 = vmax.f32 %v2300_v21, 0.0  ;;  %v1684_v48 = vpop.permute.xlu0 %1683 }
 0x269   : > { %v1791_v43 = vmul.f32 %v5070_v59, %v1668_v25  ;;  %v4044_v5 = vpop.f32.mrf.mxu0  ;;  %v1083_v44 = vmul.f32 %v5057_v27, %v5507_v24  ;;  %v1795_v25 = vmul.f32 %v5070_v59, %v1684_v48 }
 0x26a   : > { %4269 = vset.pattern.permute.xlu1 %v6256_v37  ;;  %v2486_v35 = vmax.f32 %v2292_v30, 0.0  ;;  %v1928_v29 = vadd.f32 %v5554_v31, %v1857_v45  ;;  %v2303_v47 = vadd.f32 %v4044_v5, %v5505_v49 }
 0x26b   : > { %v1855_v54 = vadd.f32 %v1791_v43, %v1467_v55  ;;  %1022 = vperm.xlu1 %4269, %v5448_v16   ;;  %v2294_v34 = vpop.f32.mrf.mxu0  ;;  %v1408_v43 = vmul.f32 %v5049_v56, %v5619_v14 }
 0x26c   : > { %v2295_v10 = vadd.f32 %v5505_v49, %v2294_v34  ;;  %v1672_v6 = vpop.permute.xlu1 %1671  ;;  %v1992_v62 = vmax.f32 %v1928_v29, 0.0  ;;  %v2489_v8 = vmax.f32 %v2303_v47, 0.0  ;;  %v1696_v29 = vpop.permute.xlu0 %1695 }
 0x26d   : > { %v1926_v50 = vadd.f32 %v5554_v31, %v1855_v54  ;;  %v1792_v3 = vmul.f32 %v5070_v59, %v1672_v6 }
 0x26e   : > { %v2487_v58 = vmax.f32 %v2295_v10, 0.0  ;;  %v2541_v42 = vpack.c.bf16 %v2489_v8, %v2488_v12 }
 0x26f   : > { %v1990_v46 = vmax.f32 %v1926_v50, 0.0  ;;  %v1856_v9 = vadd.f32 %v1792_v3, %v1468_v32  ;;  %1027 = vperm.xlu1 %4269, %v5463_v63  }
 0x270   : > { %v2540_v18 = vpack.c.bf16 %v2487_v58, %v2486_v35 }
 0x271   : > { %v2031_v20 = vpack.c.bf16 %v1990_v46, %v1989_v60  ;;  %v1927_v33 = vadd.f32 %v5554_v31, %v1856_v9  ;;  %v953_v39 = vpop.permute.xlu1 %952 }
 0x272   : > { %2803 = vmatmul.mubr.bf16.gmra.mxu1 %v2540_v18 }
 0x273   : > { %v1991_v26 = vmax.f32 %v1927_v33, 0.0  ;;  %4270 = vset.pattern.permute.xlu1 %v6250_v23  ;;  %4065 = vmatprep.mubr.msk.bf16.mxu0 %vm2080_vm0, %v2031_v20 }
 0x274   : > { %1351 = vperm.xlu1 %4270, %v5463_v63   ;;  %2812 = vmatprep.mubr.bf16.mxu1 %v6256_v37 }
 0x275   : > { %v2032_v53 = vpack.c.bf16 %v1992_v62, %v1991_v26 }
 0x276   : > { %v1292_v52 = vpop.permute.xlu1 %1291 }
 0x277   : > { %4066 = vmatmul.mubr.msk.bf16.gmra.mxu0 %vm2080_vm0, %v2032_v53 }
 0x278   : > { %4272 = vset.pattern.permute.xlu1 %v6255_v57  ;;  %v1406_v57 = vmul.f32 %v5049_v56, %v1292_v52  ;;  %v1708_v52 = vpop.permute.xlu0 %1707 }
 0x279   : > { %1731 = vperm.xlu1 %4272, %v5440_v22   ;;  %v1082_v22 = vmul.f32 %v5057_v27, %v953_v39 }
 0x27a   : > { %v1296_v15 = vpop.permute.xlu1 %1295  ;;  %2813 = vmatmul.mubr.bf16.gmra.mxu1 %v2541_v42 }
 0x27b   : > { %2822 = vmatprep.mubr.bf16.mxu1 %v6256_v37  ;;  %v1407_v63 = vmul.f32 %v5049_v56, %v1296_v15  ;;  %v1470_v5 = vadd.f32 %v1406_v57, %v1082_v22 }
 0x27d   : > { %1735 = vperm.xlu1 %4272, %v5448_v16   ;;  %v1471_v4 = vadd.f32 %v1407_v63, %v1083_v44  ;;  %v1084_v16 = vmul.f32 %v5057_v27, %v5514_v0 }
 0x27f   : > { %v968_v23 = vpop.permute.xlu1 %967  ;;  %v1859_v55 = vadd.f32 %v1795_v25, %v1471_v4  ;;  %v1472_v10 = vadd.f32 %v1408_v43, %v1084_v16 }
 0x280   : > { %v1085_v35 = vmul.f32 %v5057_v27, %v968_v23 }
 0x281   : > { %v1930_v41 = vadd.f32 %v5554_v31, %v1859_v55 }
 0x283   : > { %v1994_v14 = vmax.f32 %v1930_v41, 0.0 }
 0x284   : > { %v1304_v61 = vpop.permute.xlu1 %1303 }
 0x285   : > { %v1409_v6 = vmul.f32 %v5049_v56, %v1304_v61  ;;  %v5699_v61 = vpop.permute.xlu0 %1715 }
 0x287   : > { %v1473_v18 = vadd.f32 %v1409_v6, %v1085_v35  ;;  %v1801_v6 = vmul.f32 %v5070_v59, %v1708_v52 }
 0x289   : > { %v1680_v2 = vpop.permute.xlu1 %1679  ;;  %v973_v55 = vpop.permute.xlu0 %972 }
 0x28a   : > { %v1794_v30 = vmul.f32 %v5070_v59, %v1680_v2  ;;  %v4047_v24 = vpop.f32.mrf.mxu0  ;;  %v1086_v43 = vmul.f32 %v5057_v27, %v973_v55 }
 0x28b   : > { %v2316_v15 = vadd.f32 %v4047_v24, %v5505_v49 }
 0x28c   : > { %v1858_v45 = vadd.f32 %v1794_v30, %v1470_v5  ;;  %v2307_v54 = vpop.f32.mrf.mxu0  ;;  %v1798_v5 = vmul.f32 %v5070_v59, %v1696_v29 }
 0x28d   : > { %v1688_v34 = vpop.permute.xlu1 %1687  ;;  %v2308_v3 = vadd.f32 %v5505_v49, %v2307_v54  ;;  %v2492_v4 = vmax.f32 %v2316_v15, 0.0  ;;  %v998_v55 = vpop.permute.xlu0 %997 }
 0x28e   : > { %v1929_v32 = vadd.f32 %v5554_v31, %v1858_v45  ;;  %v1796_v50 = vmul.f32 %v5070_v59, %v1688_v34  ;;  %v4048_v0 = vpop.f32.mrf.mxu0 }
 0x28f   : > { %v2490_v39 = vmax.f32 %v2308_v3, 0.0  ;;  %v2319_v8 = vadd.f32 %v4048_v0, %v5505_v49 }
 0x290   : > { %v1993_v58 = vmax.f32 %v1929_v32, 0.0  ;;  %v1860_v60 = vadd.f32 %v1796_v50, %v1472_v10  ;;  %v2310_v46 = vpop.f32.mrf.mxu0  ;;  %v1411_v10 = vmul.f32 %v5049_v56, %v5628_v7 }
 0x291   : > { %v2311_v9 = vadd.f32 %v5505_v49, %v2310_v46  ;;  %v1692_v47 = vpop.permute.xlu1 %1691  ;;  %v2493_v48 = vmax.f32 %v2319_v8, 0.0  ;;  %v1412_v46 = vmul.f32 %v5049_v56, %v5633_v40 }
 0x292   : > { %v2033_v20 = vpack.c.bf16 %v1994_v14, %v1993_v58  ;;  %v1797_v33 = vmul.f32 %v5070_v59, %v1692_v47  ;;  %v1931_v62 = vadd.f32 %v5554_v31, %v1860_v60 }
 0x293   : > { %v2491_v21 = vmax.f32 %v2311_v9, 0.0  ;;  %v2543_v57 = vpack.c.bf16 %v2493_v48, %v2492_v4 }
 0x294   : > { %v1861_v26 = vadd.f32 %v1797_v33, %v1473_v18  ;;  %4069 = vmatprep.mubr.msk.bf16.mxu0 %vm2080_vm0, %v2033_v20  ;;  %v1995_v23 = vmax.f32 %v1931_v62, 0.0 }
 0x295   : > { %v2542_v53 = vpack.c.bf16 %v2491_v21, %v2490_v39 }
 0x296   : > { %v1932_v12 = vadd.f32 %v5554_v31, %v1861_v26  ;;  %v978_v42 = vpop.permute.xlu1 %977 }
 0x297   : > { %2823 = vmatmul.mubr.bf16.gmra.mxu1 %v2542_v53  ;;  %v1087_v45 = vmul.f32 %v5057_v27, %v978_v42 }
 0x298   : > { %v1996_v63 = vmax.f32 %v1932_v12, 0.0  ;;  %2832 = vmatprep.mubr.bf16.mxu1 %v6256_v37 }
 0x299   : > { %v1475_v14 = vadd.f32 %v1411_v10, %v1087_v45 }
 0x29a   : > { %v2034_v44 = vpack.c.bf16 %v1996_v63, %v1995_v23 }
 0x29b   : > { %v1308_v25 = vpop.permute.xlu1 %1307 }
 0x29c   : > { %4070 = vmatmul.mubr.msk.bf16.gmra.mxu0 %vm2080_vm0, %v2034_v44  ;;  %v1410_v16 = vmul.f32 %v5049_v56, %v1308_v25 }
 0x29e   : > { %v1474_v30 = vadd.f32 %v1410_v16, %v1086_v43 }
 0x29f   : > { %2833 = vmatmul.mubr.bf16.gmra.mxu1 %v2543_v57 }
 0x2a0   : > { %v983_v22 = vpop.permute.xlu1 %982  ;;  %2842 = vmatprep.mubr.bf16.mxu1 %v6256_v37  ;;  %v1862_v32 = vadd.f32 %v1798_v5, %v1474_v30  ;;  %v1003_v5 = vpop.permute.xlu0 %1002 }
 0x2a1   : > { %v1088_v35 = vmul.f32 %v5057_v27, %v983_v22 }
 0x2a2   : > { %v1933_v9 = vadd.f32 %v5554_v31, %v1862_v32  ;;  %v1803_v32 = vmul.f32 %v5070_v59, %v5699_v61 }
 0x2a3   : > { %v1476_v39 = vadd.f32 %v1412_v46, %v1088_v35 }
 0x2a4   : > { %v988_v2 = vpop.permute.xlu1 %987  ;;  %v1997_v53 = vmax.f32 %v1933_v9, 0.0 }
 0x2a5   : > { %v1089_v54 = vmul.f32 %v5057_v27, %v988_v2 }
 0x2a9   : > { %v1320_v24 = vpop.permute.xlu1 %1319 }
 0x2aa   : > { %v1413_v41 = vmul.f32 %v5049_v56, %v1320_v24 }
 0x2ab   : > { %v4051_v34 = vpop.f32.mrf.mxu0 }
 0x2ac   : > { %v1477_v50 = vadd.f32 %v1413_v41, %v1089_v54  ;;  %v2332_v44 = vadd.f32 %v4051_v34, %v5505_v49  ;;  %v5729_v41 = vpop.permute.xlu0 %1012  ;;  %v1091_v54 = vmul.f32 %v5057_v27, %v998_v55 }
 0x2ad   : > { %v2323_v0 = vpop.f32.mrf.mxu0 }
 0x2ae   : > { %v1700_v3 = vpop.permute.xlu1 %1699  ;;  %v2324_v29 = vadd.f32 %v5505_v49, %v2323_v0  ;;  %v1865_v7 = vadd.f32 %v1801_v6, %v1477_v50  ;;  %v2496_v2 = vmax.f32 %v2332_v44, 0.0 }
 0x2af   : > { %v1799_v58 = vmul.f32 %v5070_v59, %v1700_v3  ;;  %v4052_v60 = vpop.f32.mrf.mxu0 }
 0x2b0   : > { %v2494_v26 = vmax.f32 %v2324_v29, 0.0  ;;  %v1936_v12 = vadd.f32 %v5554_v31, %v1865_v7  ;;  %v2335_v42 = vadd.f32 %v4052_v60, %v5505_v49  ;;  %v1332_v6 = vpop.permute.xlu0 %1331 }
 0x2b1   : > { %v1863_v47 = vadd.f32 %v1799_v58, %v1475_v14  ;;  %v2326_v18 = vpop.f32.mrf.mxu0  ;;  %v1092_v14 = vmul.f32 %v5057_v27, %v1003_v5  ;;  %v1416_v35 = vmul.f32 %v5049_v56, %v1332_v6 }
 0x2b2   : > { %v2327_v20 = vadd.f32 %v5505_v49, %v2326_v18  ;;  %v1704_v33 = vpop.permute.xlu1 %1703  ;;  %v2000_v4 = vmax.f32 %v1936_v12, 0.0  ;;  %v2497_v57 = vmax.f32 %v2335_v42, 0.0 }
 0x2b3   : > { %v1934_v21 = vadd.f32 %v5554_v31, %v1863_v47  ;;  %v1800_v62 = vmul.f32 %v5070_v59, %v1704_v33  ;;  %v1480_v47 = vadd.f32 %v1416_v35, %v1092_v14  ;;  %v1094_v14 = vmul.f32 %v5057_v27, %v5729_v41 }
 0x2b4   : > { %v2495_v8 = vmax.f32 %v2327_v20, 0.0  ;;  %v2545_v43 = vpack.c.bf16 %v2497_v57, %v2496_v2 }
 0x2b5   : > { %v1998_v52 = vmax.f32 %v1934_v21, 0.0  ;;  %v1864_v40 = vadd.f32 %v1800_v62, %v1476_v39 }
 0x2b6   : > { %v2544_v15 = vpack.c.bf16 %v2495_v8, %v2494_v26 }
 0x2b7   : > { %v2035_v23 = vpack.c.bf16 %v1998_v52, %v1997_v53  ;;  %v1935_v63 = vadd.f32 %v5554_v31, %v1864_v40  ;;  %v993_v48 = vpop.permute.xlu1 %992 }
 0x2b8   : > { %2843 = vmatmul.mubr.bf16.gmra.mxu1 %v2544_v15  ;;  %v1090_v0 = vmul.f32 %v5057_v27, %v993_v48 }
 0x2b9   : > { %v1999_v25 = vmax.f32 %v1935_v63, 0.0  ;;  %4073 = vmatprep.mubr.msk.bf16.mxu0 %vm2080_vm0, %v2035_v23  ;;  %2852 = vmatprep.mubr.bf16.mxu1 %v6256_v37 }
 0x2bb   : > { %v2036_v22 = vpack.c.bf16 %v2000_v4, %v1999_v25 }
 0x2bc   : > { %v1324_v16 = vpop.permute.xlu1 %1323 }
 0x2bd   : > { %4074 = vmatmul.mubr.msk.bf16.gmra.mxu0 %vm2080_vm0, %v2036_v22  ;;  %v1414_v50 = vmul.f32 %v5049_v56, %v1324_v16 }
 0x2bf   : > { %v1478_v60 = vadd.f32 %v1414_v50, %v1090_v0 }
 0x2c0   : > { %v1328_v30 = vpop.permute.xlu1 %1327  ;;  %2853 = vmatmul.mubr.bf16.gmra.mxu1 %v2545_v43 }
 0x2c1   : > { %2862 = vmatprep.mubr.bf16.mxu1 %v6256_v37  ;;  %v1415_v45 = vmul.f32 %v5049_v56, %v1328_v30 }
 0x2c3   : > { %v1479_v34 = vadd.f32 %v1415_v45, %v1091_v54  ;;  %v1344_v45 = vpop.permute.xlu0 %1343 }
 0x2c5   : > { %v1008_v24 = vpop.permute.xlu1 %1007  ;;  %v1867_v3 = vadd.f32 %v1803_v32, %v1479_v34 }
 0x2c6   : > { %v1093_v8 = vmul.f32 %v5057_v27, %v1008_v24 }
 0x2c7   : > { %v1938_v9 = vadd.f32 %v5554_v31, %v1867_v3  ;;  %v1348_v6 = vpop.permute.xlu0 %1347 }
 0x2c9   : > { %v2002_v26 = vmax.f32 %v1938_v9, 0.0  ;;  %v1419_v9 = vmul.f32 %v5049_v56, %v1344_v45 }
 0x2ca   : > { %v1336_v10 = vpop.permute.xlu1 %1335 }
 0x2cb   : > { %v1417_v20 = vmul.f32 %v5049_v56, %v1336_v10  ;;  %v1728_v3 = vpop.permute.xlu0 %1727 }
 0x2cd   : > { %v1481_v15 = vadd.f32 %v1417_v20, %v1093_v8 }
 0x2cf   : > { %v1712_v58 = vpop.permute.xlu1 %1711 }
 0x2d0   : > { %v1802_v29 = vmul.f32 %v5070_v59, %v1712_v58  ;;  %v4055_v46 = vpop.f32.mrf.mxu0  ;;  %v1806_v58 = vmul.f32 %v5070_v59, %v1728_v3 }
 0x2d1   : > { %v2348_v16 = vadd.f32 %v4055_v46, %v5505_v49  ;;  %v1740_v46 = vpop.permute.xlu0 %1739 }
 0x2d2   : > { %v1866_v7 = vadd.f32 %v1802_v29, %v1478_v60  ;;  %v2339_v18 = vpop.f32.mrf.mxu0 }
 0x2d3   : > { %v1720_v61 = vpop.permute.xlu1 %1719  ;;  %v2340_v62 = vadd.f32 %v5505_v49, %v2339_v18  ;;  %v2500_v54 = vmax.f32 %v2348_v16, 0.0 }
 0x2d4   : > { %v1937_v33 = vadd.f32 %v5554_v31, %v1866_v7  ;;  %v1804_v39 = vmul.f32 %v5070_v59, %v1720_v61  ;;  %v4056_v21 = vpop.f32.mrf.mxu0 }
 0x2d5   : > { %v2498_v48 = vmax.f32 %v2340_v62, 0.0  ;;  %v2351_v57 = vadd.f32 %v4056_v21, %v5505_v49  ;;  %v1420_v62 = vmul.f32 %v5049_v56, %v1348_v6 }
 0x2d6   : > { %v2001_v53 = vmax.f32 %v1937_v33, 0.0  ;;  %v1868_v12 = vadd.f32 %v1804_v39, %v1480_v47  ;;  %v2342_v52 = vpop.f32.mrf.mxu0  ;;  %v1809_v33 = vmul.f32 %v5070_v59, %v1740_v46 }
 0x2d7   : > { %v2343_v40 = vadd.f32 %v5505_v49, %v2342_v52  ;;  %v1724_v42 = vpop.permute.xlu1 %1723  ;;  %v2501_v30 = vmax.f32 %v2351_v57, 0.0 }
 0x2d8   : > { %v2037_v23 = vpack.c.bf16 %v2002_v26, %v2001_v53  ;;  %v1805_v63 = vmul.f32 %v5070_v59, %v1724_v42  ;;  %v1939_v4 = vadd.f32 %v5554_v31, %v1868_v12 }
 0x2d9   : > { %v2499_v44 = vmax.f32 %v2343_v40, 0.0  ;;  %v2547_v10 = vpack.c.bf16 %v2501_v30, %v2500_v54 }
 0x2da   : > { %v1869_v25 = vadd.f32 %v1805_v63, %v1481_v15  ;;  %4077 = vmatprep.mubr.msk.bf16.mxu0 %vm2080_vm0, %v2037_v23  ;;  %v2003_v43 = vmax.f32 %v1939_v4, 0.0 }
 0x2db   : > { %v2546_v22 = vpack.c.bf16 %v2499_v44, %v2498_v48 }
 0x2dc   : > { %v1940_v55 = vadd.f32 %v5554_v31, %v1869_v25  ;;  %v1018_v2 = vpop.permute.xlu1 %1017 }
 0x2dd   : > { %2863 = vmatmul.mubr.bf16.gmra.mxu1 %v2546_v22  ;;  %v1095_v7 = vmul.f32 %v5057_v27, %v1018_v2 }
 0x2de   : > { %v2004_v5 = vmax.f32 %v1940_v55, 0.0  ;;  %2872 = vmatprep.mubr.bf16.mxu1 %v6256_v37 }
 0x2df   : > { %v1483_v21 = vadd.f32 %v1419_v9, %v1095_v7 }
 0x2e0   : > { %v2038_v24 = vpack.c.bf16 %v2004_v5, %v2003_v43 }
 0x2e1   : > { %v1340_v34 = vpop.permute.xlu1 %1339 }
 0x2e2   : > { %4078 = vmatmul.mubr.msk.bf16.gmra.mxu0 %vm2080_vm0, %v2038_v24  ;;  %v1418_v0 = vmul.f32 %v5049_v56, %v1340_v34 }
 0x2e4   : > { %v1482_v35 = vadd.f32 %v1418_v0, %v1094_v14 }
 0x2e5   : > { %2873 = vmatmul.mubr.bf16.gmra.mxu1 %v2547_v10 }
 0x2e6   : > { %v1023_v32 = vpop.permute.xlu1 %1022  ;;  %2882 = vmatprep.mubr.bf16.mxu1 %v6256_v37  ;;  %v1870_v61 = vadd.f32 %v1806_v58, %v1482_v35 }
 0x2e7   : > { %v1096_v26 = vmul.f32 %v5057_v27, %v1023_v32 }
 0x2e8   : > { %v1941_v52 = vadd.f32 %v5554_v31, %v1870_v61 }
 0x2e9   : > { %v1484_v48 = vadd.f32 %v1420_v62, %v1096_v26 }
 0x2ea   : > { %v1028_v50 = vpop.permute.xlu1 %1027  ;;  %v2005_v25 = vmax.f32 %v1941_v52, 0.0 }
 0x2eb   : > { %v1097_v47 = vmul.f32 %v5057_v27, %v1028_v50  ;;  %v6271_v50 = vld [vmem:[#allocation19_spill] sm:$0xff] }
 0x2ef   : > { %v1352_v60 = vpop.permute.xlu1 %1351 }
 0x2f0   : > { %v1421_v29 = vmul.f32 %v5049_v56, %v1352_v60 }
 0x2f1   : > { %v4059_v18 = vpop.f32.mrf.mxu0 }
 0x2f2   : > { %v1485_v20 = vadd.f32 %v1421_v29, %v1097_v47  ;;  %v2364_v30 = vadd.f32 %v4059_v18, %v5505_v49 }
 0x2f3   : > { %v2355_v39 = vpop.f32.mrf.mxu0 }
 0x2f4   : > { %v1732_v41 = vpop.permute.xlu1 %1731  ;;  %v2356_v12 = vadd.f32 %v5505_v49, %v2355_v39  ;;  %v1873_v40 = vadd.f32 %v1809_v33, %v1485_v20  ;;  %v2504_v34 = vmax.f32 %v2364_v30, 0.0  ;;  %v5806_v39 = vld [vmem:[%s6200_s4] ss:$0 sm:$0xff] }
 0x2f5   : > { %v1807_v8 = vmul.f32 %v5070_v59, %v1732_v41  ;;  %v4060_v53 = vpop.f32.mrf.mxu0 }
 0x2f6   : > { %v2502_v4 = vmax.f32 %v2356_v12, 0.0  ;;  %v1944_v57 = vadd.f32 %v5554_v31, %v1873_v40  ;;  %v2367_v2 = vadd.f32 %v4060_v53, %v5505_v49 }
 0x2f7   : > { %v1871_v42 = vadd.f32 %v1807_v8, %v1483_v21  ;;  %v2358_v15 = vpop.f32.mrf.mxu0 }
 0x2f8   : > { %v2359_v23 = vadd.f32 %v5505_v49, %v2358_v15  ;;  %v1736_v63 = vpop.permute.xlu1 %1735  ;;  %v2008_v24 = vmax.f32 %v1944_v57, 0.0  ;;  %v2578_v49 = vld [vmem:[%s6202_s6] sm:$0x3] }
 0x2f9   : > { %v1942_v44 = vadd.f32 %v5554_v31, %v1871_v42  ;;  %v1808_v56 = vmul.f32 %v5070_v59, %v1736_v63  ;;  %v2505_v59 = vmax.f32 %v2367_v2, 0.0  ;;  %v5791_v0 = vrot.slane %v2578_v49, %v6271_v50 }
 0x2fa   : > { %v2503_v27 = vmax.f32 %v2359_v23, 0.0 }
 0x2fb   : > { %v2006_v22 = vmax.f32 %v1942_v44, 0.0  ;;  %v1872_v55 = vadd.f32 %v1808_v56, %v1484_v48  ;;  %v2549_v10 = vpack.c.bf16 %v2505_v59, %v2504_v34 }
 0x2fc   : > { %v2548_v16 = vpack.c.bf16 %v2503_v27, %v2502_v4 }
 0x2fd   : > { %v2039_v43 = vpack.c.bf16 %v2006_v22, %v2005_v25  ;;  %v1943_v5 = vadd.f32 %v5554_v31, %v1872_v55  ;;  %v6270_v31 = vld [vmem:[#allocation21_spill] sm:$0xff] }
 0x2fe   : > { %2883 = vmatmul.mubr.bf16.gmra.mxu1 %v2548_v16  ;;  %v5788_v6 = vrot.slane %v2578_v49, %v6270_v31 }
 0x2ff   : > { %v2007_v45 = vmax.f32 %v1943_v5, 0.0  ;;  %4081 = vmatprep.mubr.msk.bf16.mxu0 %vm2080_vm0, %v2039_v43  ;;  %2892 = vmatprep.mubr.bf16.mxu1 %v6256_v37 }
 0x301   : > { %v2040_v54 = vpack.c.bf16 %v2008_v24, %v2007_v45 }
 0x303   : > { %4082 = vmatmul.mubr.msk.bf16.gmra.mxu0 %vm2080_vm0, %v2040_v54 }
 0x304   : > { %2702 = vmatprep.mubr.bf16.mxu0 %v6256_v37 }
 0x306   : > { %2893 = vmatmul.mubr.bf16.gmra.mxu1 %v2549_v10 }
 0x307   : > { %2902 = vmatprep.mubr.bf16.mxu1 %v6256_v37 }
 0x30b   : > { %2703 = vmatmul.mubr.bf16.vlgmr.msra.gmra.mxu0 %v5522_v51 }
 0x30c   : > { %2712 = vmatprep.mubr.bf16.mxu0 %v6256_v37 }
 0x30f   : > { %v2794_v32 = vpop.f32.mrf.mxu1 }
 0x310   : > { %v2795_v14 = vadd.f32 %v2794_v32, %v5788_v6 }
 0x311   : > { %v2796_v3 = vpop.f32.mrf.mxu1 }
 0x312   : > { %v2797_v51 = vadd.f32 %v2796_v3, %v5791_v0  ;;  %v3059_v29 = vmax.f32 %v2795_v14, 0.0 }
 0x313   : > { %2713 = vmatmul.mubr.bf16.gmra.mxu0 %v5517_v38  ;;  %v2798_v35 = vpop.f32.mrf.mxu1 }
 0x314   : > { %v2799_v58 = vadd.f32 %v2798_v35, %v5788_v6  ;;  %2722 = vmatprep.mubr.bf16.mxu0 %v6256_v37  ;;  %v3060_v47 = vmax.f32 %v2797_v51, 0.0 }
 0x315   : > { %v2800_v60 = vpop.f32.mrf.mxu1 }
 0x316   : > { %v3061_v46 = vmax.f32 %v2799_v58, 0.0  ;;  %v2801_v9 = vadd.f32 %v2800_v60, %v5791_v0  ;;  %v4063_v7 = vpop.f32.mrf.mxu0 }
 0x317   : > { %v2380_v52 = vadd.f32 %v5806_v39, %v4063_v7 }
 0x318   : > { %v5799_v18 = vpack.c.bf16 %v3061_v46, %v3059_v29  ;;  %v3062_v61 = vmax.f32 %v2801_v9, 0.0  ;;  %v2371_v20 = vpop.f32.mrf.mxu0 }
 0x319   : > { %v2372_v41 = vadd.f32 %v5806_v39, %v2371_v20  ;;  %v2508_v40 = vmax.f32 %v2380_v52, 0.0 }
 0x31a   : > { %v5801_v33 = vpack.c.bf16 %v3062_v61, %v3060_v47  ;;  %v4064_v38 = vpop.f32.mrf.mxu0 }
 0x31b   : > { %2723 = vmatmul.mubr.bf16.gmra.mxu0 %v5542_v11  ;;  %v2506_v26 = vmax.f32 %v2372_v41, 0.0  ;;  %v2383_v53 = vadd.f32 %v5806_v39, %v4064_v38 }
 0x31c   : > { %v2374_v21 = vpop.f32.mrf.mxu0  ;;  %2732 = vmatprep.mubr.bf16.mxu0 %v6256_v37 }
 0x31d   : > { %v2375_v62 = vadd.f32 %v5806_v39, %v2374_v21  ;;  %v2509_v11 = vmax.f32 %v2383_v53, 0.0 }
 0x31f   : > { %v2507_v8 = vmax.f32 %v2375_v62, 0.0  ;;  %v2551_v42 = vpack.c.bf16 %v2509_v11, %v2508_v40 }
 0x321   : > { %v2550_v12 = vpack.c.bf16 %v2507_v8, %v2506_v26 }
 0x323   : > { %2733 = vmatmul.mubr.bf16.gmra.mxu0 %v5537_v13  ;;  %2903 = vmatmul.mubr.bf16.gmra.mxu1 %v2550_v12 }
 0x324   : > { %2742 = vmatprep.mubr.bf16.mxu0 %v6256_v37  ;;  %2912 = vmatprep.mubr.bf16.mxu1 %v6256_v37 }
 0x32b   : > { %2743 = vmatmul.mubr.bf16.gmra.mxu0 %v5565_v36  ;;  %2913 = vmatmul.mubr.bf16.gmra.mxu1 %v2551_v42 }
 0x32c   : > { %2752 = vmatprep.mubr.bf16.mxu0 %v6256_v37  ;;  %2922 = vmatprep.mubr.bf16.mxu1 %v6256_v37 }
 0x332   : > { %v2804_v15 = vpop.f32.mrf.mxu1 }
 0x333   : > { %2753 = vmatmul.mubr.bf16.gmra.mxu0 %v5561_v17  ;;  %v2805_v13 = vadd.f32 %v2804_v15, %v5788_v6 }
 0x334   : > { %v2806_v23 = vpop.f32.mrf.mxu1  ;;  %2762 = vmatprep.mubr.bf16.mxu0 %v6256_v37 }
 0x335   : > { %v2807_v48 = vadd.f32 %v2806_v23, %v5791_v0  ;;  %v3063_v4 = vmax.f32 %v2805_v13, 0.0 }
 0x336   : > { %v2808_v63 = vpop.f32.mrf.mxu1 }
 0x337   : > { %v2809_v44 = vadd.f32 %v2808_v63, %v5788_v6  ;;  %v4067_v56 = vpop.f32.mrf.mxu0  ;;  %v3064_v55 = vmax.f32 %v2807_v48, 0.0 }
 0x338   : > { %v2810_v36 = vpop.f32.mrf.mxu1  ;;  %v2396_v29 = vadd.f32 %v5806_v39, %v4067_v56 }
 0x339   : > { %v3065_v27 = vmax.f32 %v2809_v44, 0.0  ;;  %v2811_v25 = vadd.f32 %v2810_v36, %v5791_v0  ;;  %v2387_v57 = vpop.f32.mrf.mxu0 }
 0x33a   : > { %v2814_v22 = vpop.f32.mrf.mxu1  ;;  %v2388_v43 = vadd.f32 %v5806_v39, %v2387_v57  ;;  %v2512_v7 = vmax.f32 %v2396_v29, 0.0 }
 0x33b   : > { %v5826_v17 = vpack.c.bf16 %v3065_v27, %v3063_v4  ;;  %v3066_v2 = vmax.f32 %v2811_v25, 0.0  ;;  %v4068_v16 = vpop.f32.mrf.mxu0  ;;  %2763 = vmatmul.mubr.bf16.gmra.mxu0 %v5578_v19  ;;  %v2815_v24 = vadd.f32 %v2814_v22, %v5788_v6 }
 0x33c   : > { %v2816_v5 = vpop.f32.mrf.mxu1  ;;  %2772 = vmatprep.mubr.bf16.mxu0 %v6256_v37  ;;  %v2510_v49 = vmax.f32 %v2388_v43, 0.0  ;;  %v2399_v14 = vadd.f32 %v5806_v39, %v4068_v16 }
 0x33d   : > { %v5831_v30 = vpack.c.bf16 %v3066_v2, %v3064_v55  ;;  %v2390_v45 = vpop.f32.mrf.mxu0  ;;  %v2817_v34 = vadd.f32 %v2816_v5, %v5791_v0  ;;  %v3067_v32 = vmax.f32 %v2815_v24, 0.0 }
 0x33e   : > { %v2391_v59 = vadd.f32 %v5806_v39, %v2390_v45  ;;  %v2818_v54 = vpop.f32.mrf.mxu1  ;;  %v2513_v9 = vmax.f32 %v2399_v14, 0.0 }
 0x33f   : > { %v2819_v10 = vadd.f32 %v2818_v54, %v5788_v6  ;;  %v3068_v51 = vmax.f32 %v2817_v34, 0.0 }
 0x340   : > { %v2511_v31 = vmax.f32 %v2391_v59, 0.0  ;;  %v2820_v19 = vpop.f32.mrf.mxu1  ;;  %v2553_v47 = vpack.c.bf16 %v2513_v9, %v2512_v7 }
 0x341   : > { %v3069_v50 = vmax.f32 %v2819_v10, 0.0  ;;  %v2821_v3 = vadd.f32 %v2820_v19, %v5791_v0 }
 0x342   : > { %v2552_v35 = vpack.c.bf16 %v2511_v31, %v2510_v49 }
 0x343   : > { %v5839_v58 = vpack.c.bf16 %v3069_v50, %v3067_v32  ;;  %v3070_v60 = vmax.f32 %v2821_v3, 0.0  ;;  %2773 = vmatmul.mubr.bf16.gmra.mxu0 %v5575_v1 }
 0x344   : > { %2923 = vmatmul.mubr.bf16.gmra.mxu1 %v2552_v35  ;;  %2782 = vmatprep.mubr.bf16.mxu0 %v6256_v37 }
 0x345   : > { %v5844_v46 = vpack.c.bf16 %v3070_v60, %v3068_v51  ;;  %2932 = vmatprep.mubr.bf16.mxu1 %v6256_v37 }
 0x34b   : > { %2783 = vmatmul.mubr.bf16.gmra.mxu0 %v5623_v28 }
 0x34c   : > { %2933 = vmatmul.mubr.bf16.gmra.mxu1 %v2553_v47 }
 0x34d   : > { %2942 = vmatprep.mubr.bf16.mxu1 %v6256_v37 }
 0x357   : > { %v2824_v61 = vpop.f32.mrf.mxu1 }
 0x358   : > { %v2825_v1 = vadd.f32 %v2824_v61, %v5788_v6 }
 0x359   : > { %v2826_v20 = vpop.f32.mrf.mxu1 }
 0x35a   : > { %v2827_v41 = vadd.f32 %v2826_v20, %v5791_v0  ;;  %v3071_v8 = vmax.f32 %v2825_v1, 0.0 }
 0x35b   : > { %v2828_v38 = vpop.f32.mrf.mxu1 }
 0x35c   : > { %v2829_v21 = vadd.f32 %v2828_v38, %v5788_v6  ;;  %v4071_v62 = vpop.f32.mrf.mxu0  ;;  %v3072_v11 = vmax.f32 %v2827_v41, 0.0 }
 0x35d   : > { %v2830_v26 = vpop.f32.mrf.mxu1  ;;  %v2412_v54 = vadd.f32 %v5806_v39, %v4071_v62 }
 0x35e   : > { %v3073_v53 = vmax.f32 %v2829_v21, 0.0  ;;  %v2831_v12 = vadd.f32 %v2830_v26, %v5791_v0  ;;  %v2403_v52 = vpop.f32.mrf.mxu0 }
 0x35f   : > { %v2834_v28 = vpop.f32.mrf.mxu1  ;;  %v2404_v23 = vadd.f32 %v5806_v39, %v2403_v52  ;;  %v2516_v19 = vmax.f32 %v2412_v54, 0.0 }
 0x360   : > { %v3175_v40 = vpack.c.bf16 %v3073_v53, %v3071_v8  ;;  %v3074_v42 = vmax.f32 %v2831_v12, 0.0  ;;  %v4072_v15 = vpop.f32.mrf.mxu0  ;;  %v2835_v48 = vadd.f32 %v2834_v28, %v5788_v6 }
 0x361   : > { %v2836_v13 = vpop.f32.mrf.mxu1  ;;  %v2514_v25 = vmax.f32 %v2404_v23, 0.0  ;;  %v2415_v43 = vadd.f32 %v5806_v39, %v4072_v15 }
 0x362   : > { %v3176_v63 = vpack.c.bf16 %v3074_v42, %v3072_v11  ;;  %v2406_v44 = vpop.f32.mrf.mxu0  ;;  %v2837_v4 = vadd.f32 %v2836_v13, %v5791_v0  ;;  %v3075_v55 = vmax.f32 %v2835_v48, 0.0 }
 0x363   : > { %v2407_v56 = vadd.f32 %v5806_v39, %v2406_v44  ;;  %v2838_v36 = vpop.f32.mrf.mxu1  ;;  %v2517_v49 = vmax.f32 %v2415_v43, 0.0 }
 0x364   : > { %v2839_v27 = vadd.f32 %v2838_v36, %v5788_v6  ;;  %v3076_v24 = vmax.f32 %v2837_v4, 0.0 }
 0x365   : > { %v2515_v57 = vmax.f32 %v2407_v56, 0.0  ;;  %v2840_v22 = vpop.f32.mrf.mxu1  ;;  %v2555_v32 = vpack.c.bf16 %v2517_v49, %v2516_v19 }
 0x366   : > { %v3077_v2 = vmax.f32 %v2839_v27, 0.0  ;;  %v2841_v16 = vadd.f32 %v2840_v22, %v5791_v0 }
 0x367   : > { %v2554_v5 = vpack.c.bf16 %v2515_v57, %v2514_v25 }
 0x368   : > { %v3177_v45 = vpack.c.bf16 %v3077_v2, %v3075_v55  ;;  %v3078_v59 = vmax.f32 %v2841_v16, 0.0 }
 0x369   : > { %2943 = vmatmul.mubr.bf16.gmra.mxu1 %v2554_v5 }
 0x36a   : > { %v3293_v34 = vmax.bf16 %v3177_v45, %v3175_v40  ;;  %v3178_v10 = vpack.c.bf16 %v3078_v59, %v3076_v24  ;;  %2952 = vmatprep.mubr.bf16.mxu1 %v6256_v37 }
 0x36c   : > { %v3306_v31 = vmax.bf16 %v3178_v10, %v3176_v63 }
 0x371   : > { %2953 = vmatmul.mubr.bf16.gmra.mxu1 %v2555_v32 }
 0x372   : > { %2962 = vmatprep.mubr.bf16.mxu1 %v6256_v37 }
 0x378   : > { %v2844_v50 = vpop.f32.mrf.mxu1 }
 0x379   : > { %v2845_v14 = vadd.f32 %v2844_v50, %v5788_v6 }
 0x37a   : > { %v2846_v3 = vpop.f32.mrf.mxu1 }
 0x37b   : > { %v2847_v51 = vadd.f32 %v2846_v3, %v5791_v0  ;;  %v3079_v7 = vmax.f32 %v2845_v14, 0.0 }
 0x37c   : > { %v2848_v35 = vpop.f32.mrf.mxu1 }
 0x37d   : > { %v2849_v60 = vadd.f32 %v2848_v35, %v5788_v6  ;;  %v4075_v29 = vpop.f32.mrf.mxu0  ;;  %v3080_v38 = vmax.f32 %v2847_v51, 0.0 }
 0x37e   : > { %v2850_v9 = vpop.f32.mrf.mxu1  ;;  %v2428_v55 = vadd.f32 %v5806_v39, %v4075_v29 }
 0x37f   : > { %v3081_v47 = vmax.f32 %v2849_v60, 0.0  ;;  %v2851_v61 = vadd.f32 %v2850_v9, %v5791_v0  ;;  %v2419_v20 = vpop.f32.mrf.mxu0 }
 0x380   : > { %v2854_v1 = vpop.f32.mrf.mxu1  ;;  %v2420_v26 = vadd.f32 %v5806_v39, %v2419_v20  ;;  %v2520_v59 = vmax.f32 %v2428_v55, 0.0 }
 0x381   : > { %v3179_v41 = vpack.c.bf16 %v3081_v47, %v3079_v7  ;;  %v3082_v21 = vmax.f32 %v2851_v61, 0.0  ;;  %v4076_v62 = vpop.f32.mrf.mxu0  ;;  %v2855_v52 = vadd.f32 %v2854_v1, %v5788_v6 }
 0x382   : > { %v2856_v8 = vpop.f32.mrf.mxu1  ;;  %v2518_v13 = vmax.f32 %v2420_v26, 0.0  ;;  %v2431_v4 = vadd.f32 %v5806_v39, %v4076_v62 }
 0x383   : > { %v3294_v53 = vmax.bf16 %v3293_v34, %v3179_v41  ;;  %v3180_v12 = vpack.c.bf16 %v3082_v21, %v3080_v38  ;;  %v2422_v28 = vpop.f32.mrf.mxu0  ;;  %v2857_v15 = vadd.f32 %v2856_v8, %v5791_v0  ;;  %v3083_v44 = vmax.f32 %v2855_v52, 0.0 }
 0x384   : > { %v2423_v11 = vadd.f32 %v5806_v39, %v2422_v28  ;;  %v2858_v40 = vpop.f32.mrf.mxu1  ;;  %v2521_v43 = vmax.f32 %v2431_v4, 0.0 }
 0x385   : > { %v3307_v42 = vmax.bf16 %v3306_v31, %v3180_v12  ;;  %v2859_v23 = vadd.f32 %v2858_v40, %v5788_v6  ;;  %v3084_v25 = vmax.f32 %v2857_v15, 0.0 }
 0x386   : > { %v2519_v63 = vmax.f32 %v2423_v11, 0.0  ;;  %v2860_v48 = vpop.f32.mrf.mxu1  ;;  %v2557_v49 = vpack.c.bf16 %v2521_v43, %v2520_v59 }
 0x387   : > { %v3085_v56 = vmax.f32 %v2859_v23, 0.0  ;;  %v2861_v36 = vadd.f32 %v2860_v48, %v5791_v0 }
 0x388   : > { %v2556_v27 = vpack.c.bf16 %v2519_v63, %v2518_v13 }
 0x389   : > { %v3181_v57 = vpack.c.bf16 %v3085_v56, %v3083_v44  ;;  %v3086_v22 = vmax.f32 %v2861_v36, 0.0 }
 0x38a   : > { %2963 = vmatmul.mubr.bf16.gmra.mxu1 %v2556_v27 }
 0x38b   : > { %v3295_v2 = vmax.bf16 %v3294_v53, %v3181_v57  ;;  %v3182_v16 = vpack.c.bf16 %v3086_v22, %v3084_v25  ;;  %2972 = vmatprep.mubr.bf16.mxu1 %v6256_v37 }
 0x38d   : > { %v3296_v5 = vunpack.i.l.bf16 %v3295_v2  ;;  %v3297_v24 = vunpack.i.h.bf16 %v3295_v2  ;;  %v3308_v45 = vmax.bf16 %v3307_v42, %v3182_v16 }
 0x38f   : > { %v3298_v54 = vmax.f32 %v3296_v5, %v3297_v24  ;;  %v3309_v34 = vunpack.i.l.bf16 %v3308_v45  ;;  %v3310_v10 = vunpack.i.h.bf16 %v3308_v45 }
 0x391   : > { %v3299_v31 = vrot.slane %v3298_v54, 4  ;;  %v3311_v19 = vmax.f32 %v3309_v34, %v3310_v10 }
 0x392   : > { %2973 = vmatmul.mubr.bf16.gmra.mxu1 %v2557_v49 }
 0x393   : > { %v3300_v32 = vmax.f32 %v3298_v54, %v3299_v31  ;;  %v3312_v50 = vrot.slane %v3311_v19, 4  ;;  %2982 = vmatprep.mubr.bf16.mxu1 %v6256_v37 }
 0x395   : > { %v3301_v3 = vrot.slane %v3300_v32, 2  ;;  %v3313_v14 = vmax.f32 %v3311_v19, %v3312_v50 }
 0x397   : > { %v3302_v35 = vmax.f32 %v3300_v32, %v3301_v3  ;;  %v3314_v51 = vrot.slane %v3313_v14, 2 }
 0x399   : > { %v3303_v60 = vrot.slane %v3302_v35, 1  ;;  %v3315_v29 = vmax.f32 %v3313_v14, %v3314_v51 }
 0x39b   : > { %v3304_v9 = vmax.f32 %v3302_v35, %v3303_v60  ;;  %v3316_v7 = vrot.slane %v3315_v29, 1 }
 0x39d   : > { %v3317_v47 = vmax.f32 %v3315_v29, %v3316_v7  ;;  %v2864_v61 = vpop.f32.mrf.mxu1  ;;  %v3305_v20 = vpack.i.bf16 %v3304_v9, %v3304_v9 }
 0x39e   : > { %v2865_v41 = vadd.f32 %v2864_v61, %v5788_v6 }
 0x39f   : > { %v3318_v1 = vpack.i.bf16 %v3317_v47, %v3317_v47  ;;  %v2866_v38 = vpop.f32.mrf.mxu1 }
 0x3a0   : > { %v2867_v26 = vadd.f32 %v2866_v38, %v5791_v0  ;;  %v3087_v52 = vmax.f32 %v2865_v41, 0.0 }
 0x3a1   : > { %v5878_v21 = vcombine.low %v3305_v20, %v3318_v1  ;;  %v2868_v62 = vpop.f32.mrf.mxu1 }
 0x3a2   : > { %v2869_v8 = vadd.f32 %v2868_v62, %v5788_v6  ;;  %v4079_v53 = vpop.f32.mrf.mxu0  ;;  %v3088_v15 = vmax.f32 %v2867_v26, 0.0 }
 0x3a3   : > { %v2870_v12 = vpop.f32.mrf.mxu1  ;;  %v2444_v49 = vadd.f32 %v5806_v39, %v4079_v53 }
 0x3a4   : > { %v3089_v28 = vmax.f32 %v2869_v8, 0.0  ;;  %v2871_v11 = vadd.f32 %v2870_v12, %v5791_v0  ;;  %v2435_v40 = vpop.f32.mrf.mxu0 }
 0x3a5   : > { %v2874_v42 = vpop.f32.mrf.mxu1  ;;  %v2436_v48 = vadd.f32 %v5806_v39, %v2435_v40  ;;  %v2524_v3 = vmax.f32 %v2444_v49, 0.0 }
 0x3a6   : > { %v3183_v23 = vpack.c.bf16 %v3089_v28, %v3087_v52  ;;  %v3090_v13 = vmax.f32 %v2871_v11, 0.0  ;;  %v4080_v63 = vpop.f32.mrf.mxu0  ;;  %v2875_v36 = vadd.f32 %v2874_v42, %v5788_v6 }
 0x3a7   : > { %v2876_v44 = vpop.f32.mrf.mxu1  ;;  %v2522_v55 = vmax.f32 %v2436_v48, 0.0  ;;  %v2447_v45 = vadd.f32 %v5806_v39, %v4080_v63 }
 0x3a8   : > { %v3184_v56 = vpack.c.bf16 %v3090_v13, %v3088_v15  ;;  %v2438_v4 = vpop.f32.mrf.mxu0  ;;  %v2877_v57 = vadd.f32 %v2876_v44, %v5791_v0  ;;  %v3091_v43 = vmax.f32 %v2875_v36, 0.0 }
 0x3a9   : > { %v2439_v27 = vadd.f32 %v5806_v39, %v2438_v4  ;;  %v2878_v25 = vpop.f32.mrf.mxu1  ;;  %v2525_v32 = vmax.f32 %v2447_v45, 0.0 }
 0x3aa   : > { %v2879_v22 = vadd.f32 %v2878_v25, %v5788_v6  ;;  %v3092_v54 = vmax.f32 %v2877_v57, 0.0 }
 0x3ab   : > { %v2523_v2 = vmax.f32 %v2439_v27, 0.0  ;;  %v2880_v16 = vpop.f32.mrf.mxu1  ;;  %v2559_v14 = vpack.c.bf16 %v2525_v32, %v2524_v3 }
 0x3ac   : > { %v3093_v5 = vmax.f32 %v2879_v22, 0.0  ;;  %v2881_v24 = vadd.f32 %v2880_v16, %v5791_v0 }
 0x3ad   : > { %v2558_v59 = vpack.c.bf16 %v2523_v2, %v2522_v55 }
 0x3ae   : > { %v3185_v34 = vpack.c.bf16 %v3093_v5, %v3091_v43  ;;  %v3094_v10 = vmax.f32 %v2881_v24, 0.0 }
 0x3af   : > { %2983 = vmatmul.mubr.bf16.gmra.mxu1 %v2558_v59 }
 0x3b0   : > { %v3319_v31 = vmax.bf16 %v3185_v34, %v3183_v23  ;;  %v3186_v19 = vpack.c.bf16 %v3094_v10, %v3092_v54  ;;  %2992 = vmatprep.mubr.bf16.mxu1 %v6256_v37 }
 0x3b2   : > { %v3332_v50 = vmax.bf16 %v3186_v19, %v3184_v56 }
 0x3b7   : > { %2993 = vmatmul.mubr.bf16.gmra.mxu1 %v2559_v14 }
 0x3b8   : > { %3002 = vmatprep.mubr.bf16.mxu1 %v6256_v37 }
 0x3be   : > { %v2884_v35 = vpop.f32.mrf.mxu1 }
 0x3bf   : > { %v2885_v60 = vadd.f32 %v2884_v35, %v5788_v6 }
 0x3c0   : > { %v2886_v51 = vpop.f32.mrf.mxu1 }
 0x3c1   : > { %v2887_v9 = vadd.f32 %v2886_v51, %v5791_v0  ;;  %v3095_v20 = vmax.f32 %v2885_v60, 0.0 }
 0x3c2   : > { %v2888_v29 = vpop.f32.mrf.mxu1 }
 0x3c3   : > { %v2889_v7 = vadd.f32 %v2888_v29, %v5788_v6  ;;  %v4083_v47 = vpop.f32.mrf.mxu0  ;;  %v3096_v26 = vmax.f32 %v2887_v9, 0.0 }
 0x3c4   : > { %v2890_v61 = vpop.f32.mrf.mxu1  ;;  %v2460_v54 = vadd.f32 %v5806_v39, %v4083_v47 }
 0x3c5   : > { %v3097_v1 = vmax.f32 %v2889_v7, 0.0  ;;  %v2891_v38 = vadd.f32 %v2890_v61, %v5791_v0  ;;  %v2451_v41 = vpop.f32.mrf.mxu0 }
 0x3c6   : > { %v2894_v62 = vpop.f32.mrf.mxu1  ;;  %v2452_v52 = vadd.f32 %v5806_v39, %v2451_v41  ;;  %v2528_v60 = vmax.f32 %v2460_v54, 0.0 }
 0x3c7   : > { %v3187_v8 = vpack.c.bf16 %v3097_v1, %v3095_v20  ;;  %v3098_v53 = vmax.f32 %v2891_v38, 0.0  ;;  %v4084_v12 = vpop.f32.mrf.mxu0  ;;  %v2895_v42 = vadd.f32 %v2894_v62, %v5788_v6 }
 0x3c8   : > { %v2896_v28 = vpop.f32.mrf.mxu1  ;;  %v2526_v36 = vmax.f32 %v2452_v52, 0.0  ;;  %v2463_v2 = vadd.f32 %v5806_v39, %v4084_v12 }
 0x3c9   : > { %v3320_v11 = vmax.bf16 %v3319_v31, %v3187_v8  ;;  %v3188_v40 = vpack.c.bf16 %v3098_v53, %v3096_v26  ;;  %v2454_v15 = vpop.f32.mrf.mxu0  ;;  %v2897_v48 = vadd.f32 %v2896_v28, %v5791_v0  ;;  %v3099_v25 = vmax.f32 %v2895_v42, 0.0 }
 0x3ca   : > { %v2455_v23 = vadd.f32 %v5806_v39, %v2454_v15  ;;  %v2898_v13 = vpop.f32.mrf.mxu1  ;;  %v2529_v19 = vmax.f32 %v2463_v2, 0.0 }
 0x3cb   : > { %v3333_v63 = vmax.bf16 %v3332_v50, %v3188_v40  ;;  %v2899_v44 = vadd.f32 %v2898_v13, %v5788_v6  ;;  %v2704_v56 = vpop.f32.mrf.mxu0  ;;  %v3100_v5 = vmax.f32 %v2897_v48, 0.0 }
 0x3cc   : > { %v2527_v4 = vmax.f32 %v2455_v23, 0.0  ;;  %v2900_v27 = vpop.f32.mrf.mxu1  ;;  %v2705_v43 = vadd.f32 %v2704_v56, %v5788_v6  ;;  %v2561_v61 = vpack.c.bf16 %v2529_v19, %v2528_v60 }
 0x3cd   : > { %v3101_v57 = vmax.f32 %v2899_v44, 0.0  ;;  %v2901_v22 = vadd.f32 %v2900_v27, %v5791_v0  ;;  %v2706_v55 = vpop.f32.mrf.mxu0 }
 0x3ce   : > { %v2560_v16 = vpack.c.bf16 %v2527_v4, %v2526_v36  ;;  %v3023_v32 = vmax.f32 %v2705_v43, 0.0 }
 0x3cf   : > { %v3189_v24 = vpack.c.bf16 %v3101_v57, %v3099_v25  ;;  %v3102_v45 = vmax.f32 %v2901_v22, 0.0  ;;  %v2708_v59 = vpop.f32.mrf.mxu0  ;;  %v2707_v25 = vadd.f32 %v2706_v55, %v5791_v0 }
 0x3d0   : > { %v2709_v34 = vadd.f32 %v2708_v59, %v5788_v6  ;;  %3003 = vmatmul.mubr.bf16.gmra.mxu1 %v2560_v16 }
 0x3d1   : > { %v3321_v10 = vmax.bf16 %v3320_v11, %v3189_v24  ;;  %v3190_v49 = vpack.c.bf16 %v3102_v45, %v3100_v5  ;;  %v2710_v31 = vpop.f32.mrf.mxu0  ;;  %3012 = vmatprep.mubr.bf16.mxu1 %v6256_v37 }
 0x3d2   : > { %v3025_v50 = vmax.f32 %v2709_v34, 0.0  ;;  %v2711_v13 = vadd.f32 %v2710_v31, %v5791_v0 }
 0x3d3   : > { %v3322_v3 = vunpack.i.l.bf16 %v3321_v10  ;;  %v3323_v14 = vunpack.i.h.bf16 %v3321_v10  ;;  %v3334_v35 = vmax.bf16 %v3333_v63, %v3190_v49  ;;  %v2714_v51 = vpop.f32.mrf.mxu0 }
 0x3d4   : > { %v5908_v29 = vpack.c.bf16 %v3025_v50, %v3023_v32  ;;  %v2715_v40 = vadd.f32 %v2714_v51, %v5788_v6  ;;  %v3026_v24 = vmax.f32 %v2711_v13, 0.0 }
 0x3d5   : > { %v3324_v9 = vmax.f32 %v3322_v3, %v3323_v14  ;;  %v3335_v39 = vunpack.i.l.bf16 %v3334_v35  ;;  %v3336_v7 = vunpack.i.h.bf16 %v3334_v35  ;;  %v2716_v47 = vpop.f32.mrf.mxu0  ;;  %v3024_v35 = vmax.f32 %v2707_v25, 0.0 }
 0x3d6   : > { %v2717_v48 = vadd.f32 %v2716_v47, %v5791_v0  ;;  %v3027_v22 = vmax.f32 %v2715_v40, 0.0 }
 0x3d7   : > { %v3325_v20 = vrot.slane %v3324_v9, 4  ;;  %v3337_v1 = vmax.f32 %v3335_v39, %v3336_v7  ;;  %v2718_v38 = vpop.f32.mrf.mxu0 }
 0x3d8   : > { %3013 = vmatmul.mubr.bf16.gmra.mxu1 %v2561_v61  ;;  %v2719_v12 = vadd.f32 %v2718_v38, %v5788_v6  ;;  %v3028_v10 = vmax.f32 %v2717_v48, 0.0 }
 0x3d9   : > { %v3326_v37 = vmax.f32 %v3324_v9, %v3325_v20  ;;  %v3338_v41 = vrot.slane %v3337_v1, 4  ;;  %v2720_v62 = vpop.f32.mrf.mxu0 }
 0x3da   : > { %v2721_v42 = vadd.f32 %v2720_v62, %v5791_v0  ;;  %v3029_v44 = vmax.f32 %v2719_v12, 0.0 }
 0x3db   : > { %v3327_v26 = vrot.slane %v3326_v37, 2  ;;  %v3339_v8 = vmax.f32 %v3337_v1, %v3338_v41  ;;  %v2724_v53 = vpop.f32.mrf.mxu0  ;;  %v3152_v1 = vpack.c.bf16 %v3026_v24, %v3024_v35 }
 0x3dc   : > { %v2725_v56 = vadd.f32 %v2724_v53, %v5788_v6  ;;  %v3030_v2 = vmax.f32 %v2721_v42, 0.0  ;;  %v3153_v49 = vpack.c.bf16 %v3029_v44, %v3027_v22 }
 0x3dd   : > { %v3328_v52 = vmax.f32 %v3326_v37, %v3327_v26  ;;  %v3340_v28 = vrot.slane %v3339_v8, 2  ;;  %v2726_v11 = vpop.f32.mrf.mxu0 }
 0x3de   : > { %v2727_v16 = vadd.f32 %v2726_v11, %v5791_v0  ;;  %v3031_v31 = vmax.f32 %v2725_v56, 0.0  ;;  %v3154_v51 = vpack.c.bf16 %v3030_v2, %v3028_v10  ;;  %v3215_v41 = vmax.bf16 %v3153_v49, %v5908_v29 }
 0x3df   : > { %v3329_v15 = vrot.slane %v3328_v52, 1  ;;  %v3341_v23 = vmax.f32 %v3339_v8, %v3340_v28  ;;  %v2728_v63 = vpop.f32.mrf.mxu0 }
 0x3e0   : > { %v2729_v36 = vadd.f32 %v2728_v63, %v5788_v6  ;;  %v3032_v60 = vmax.f32 %v2727_v16, 0.0  ;;  %v3228_v42 = vmax.bf16 %v3154_v51, %v3152_v1 }
 0x3e1   : > { %v3330_v4 = vmax.f32 %v3328_v52, %v3329_v15  ;;  %v3342_v27 = vrot.slane %v3341_v23, 1  ;;  %v2730_v57 = vpop.f32.mrf.mxu0 }
 0x3e2   : > { %v2731_v43 = vadd.f32 %v2730_v57, %v5791_v0  ;;  %v3033_v45 = vmax.f32 %v2729_v36, 0.0 }
 0x3e3   : > { %v3343_v5 = vmax.f32 %v3341_v23, %v3342_v27  ;;  %v2734_v59 = vpop.f32.mrf.mxu0  ;;  %v2904_v54 = vpop.f32.mrf.mxu1  ;;  %v3331_v34 = vpack.i.bf16 %v3330_v4, %v3330_v4 }
 0x3e4   : > { %v3034_v32 = vmax.f32 %v2731_v43, 0.0  ;;  %v2735_v55 = vadd.f32 %v2734_v59, %v5788_v6  ;;  %v2905_v50 = vadd.f32 %v2904_v54, %v5788_v6  ;;  %v3155_v39 = vpack.c.bf16 %v3033_v45, %v3031_v31 }
 0x3e5   : > { %v3344_v19 = vpack.i.bf16 %v3343_v5, %v3343_v5  ;;  %v2736_v3 = vpop.f32.mrf.mxu0  ;;  %v2906_v14 = vpop.f32.mrf.mxu1 }
 0x3e6   : > { %v2737_v7 = vadd.f32 %v2736_v3, %v5791_v0  ;;  %v2907_v47 = vadd.f32 %v2906_v14, %v5791_v0  ;;  %v3156_v62 = vpack.c.bf16 %v3034_v32, %v3032_v60  ;;  %v3035_v26 = vmax.f32 %v2735_v55, 0.0 }
 0x3e7   : > { %v5922_v9 = vcombine.low %v3331_v34, %v3344_v19  ;;  %v2738_v61 = vpop.f32.mrf.mxu0  ;;  %v2908_v20 = vpop.f32.mrf.mxu1  ;;  %v3103_v8 = vmax.f32 %v2905_v50, 0.0  ;;  %v3216_v15 = vmax.bf16 %v3215_v41, %v3155_v39 }
 0x3e8   : > { %v2739_v38 = vadd.f32 %v2738_v61, %v5788_v6  ;;  %v2909_v37 = vadd.f32 %v2908_v20, %v5788_v6  ;;  %v3036_v23 = vmax.f32 %v2737_v7, 0.0  ;;  %v3104_v13 = vmax.f32 %v2907_v47, 0.0 }
 0x3e9   : > { %v2740_v53 = vpop.f32.mrf.mxu0  ;;  %v2910_v12 = vpop.f32.mrf.mxu1  ;;  %v3229_v25 = vmax.bf16 %v3228_v42, %v3156_v62 }
 0x3ea   : > { %v3037_v52 = vmax.f32 %v2739_v38, 0.0  ;;  %v3105_v28 = vmax.f32 %v2909_v37, 0.0  ;;  %v2741_v11 = vadd.f32 %v2740_v53, %v5791_v0  ;;  %v2911_v40 = vadd.f32 %v2910_v12, %v5791_v0 }
 0x3eb   : > { %v2744_v63 = vpop.f32.mrf.mxu0  ;;  %v2914_v48 = vpop.f32.mrf.mxu1 }
 0x3ec   : > { %v3157_v44 = vpack.c.bf16 %v3037_v52, %v3035_v26  ;;  %v5931_v56 = vpack.c.bf16 %v3105_v28, %v3103_v8  ;;  %v3038_v29 = vmax.f32 %v2741_v11, 0.0  ;;  %v3106_v36 = vmax.f32 %v2911_v40, 0.0 }
 0x3ed   : > { %v2746_v4 = vpop.f32.mrf.mxu0  ;;  %v2916_v27 = vpop.f32.mrf.mxu1  ;;  %v2915_v16 = vadd.f32 %v2914_v48, %v5788_v6 }
 0x3ee   : > { %v3217_v57 = vmax.bf16 %v3216_v15, %v3157_v44  ;;  %v3158_v22 = vpack.c.bf16 %v3038_v29, %v3036_v23  ;;  %v5933_v2 = vpack.c.bf16 %v3106_v36, %v3104_v13  ;;  %v2917_v54 = vadd.f32 %v2916_v27, %v5791_v0 }
 0x3ef   : > { %v2748_v43 = vpop.f32.mrf.mxu0  ;;  %v2918_v5 = vpop.f32.mrf.mxu1  ;;  %v3107_v55 = vmax.f32 %v2915_v16, 0.0  ;;  %v2747_v16 = vadd.f32 %v2746_v4, %v5791_v0 }
 0x3f0   : > { %v3218_v24 = vunpack.i.l.bf16 %v3217_v57  ;;  %v3219_v45 = vunpack.i.h.bf16 %v3217_v57  ;;  %v3230_v59 = vmax.bf16 %v3229_v25, %v3158_v22  ;;  %v2919_v34 = vadd.f32 %v2918_v5, %v5788_v6 }
 0x3f1   : > { %v2750_v10 = vpop.f32.mrf.mxu0  ;;  %v2920_v49 = vpop.f32.mrf.mxu1  ;;  %v3108_v60 = vmax.f32 %v2917_v54, 0.0  ;;  %v2749_v48 = vadd.f32 %v2748_v43, %v5788_v6  ;;  %v2745_v57 = vadd.f32 %v2744_v63, %v5788_v6 }
 0x3f2   : > { %v3220_v31 = vmax.f32 %v3218_v24, %v3219_v45  ;;  %v3231_v19 = vunpack.i.l.bf16 %v3230_v59  ;;  %v3232_v32 = vunpack.i.h.bf16 %v3230_v59  ;;  %v3109_v50 = vmax.f32 %v2919_v34, 0.0 }
 0x3f3   : > { %v2921_v3 = vadd.f32 %v2920_v49, %v5791_v0  ;;  %v2754_v14 = vpop.f32.mrf.mxu0  ;;  %v2751_v44 = vadd.f32 %v2750_v10, %v5791_v0  ;;  %v3041_v34 = vmax.f32 %v2749_v48, 0.0 }
 0x3f4   : > { %v3221_v35 = vrot.slane %v3220_v31, 4  ;;  %v3233_v51 = vmax.f32 %v3231_v19, %v3232_v32  ;;  %v5939_v39 = vpack.c.bf16 %v3109_v50, %v3107_v55  ;;  %v2755_v29 = vadd.f32 %v2754_v14, %v5788_v6 }
 0x3f5   : > { %v3110_v7 = vmax.f32 %v2921_v3, 0.0  ;;  %v2756_v47 = vpop.f32.mrf.mxu0  ;;  %v3042_v49 = vmax.f32 %v2751_v44, 0.0  ;;  %v3039_v50 = vmax.f32 %v2745_v57, 0.0  ;;  %v3040_v14 = vmax.f32 %v2747_v16, 0.0 }
 0x3f6   : > { %v3222_v61 = vmax.f32 %v3220_v31, %v3221_v35  ;;  %v3234_v20 = vrot.slane %v3233_v51, 4  ;;  %v3345_v1 = vmax.bf16 %v5939_v39, %v5931_v56  ;;  %v2757_v36 = vadd.f32 %v2756_v47, %v5791_v0 }
 0x3f7   : > { %v5943_v38 = vpack.c.bf16 %v3110_v7, %v3108_v60  ;;  %v2758_v37 = vpop.f32.mrf.mxu0  ;;  %v3043_v31 = vmax.f32 %v2755_v29, 0.0 }
 0x3f8   : > { %v3223_v41 = vrot.slane %v3222_v61, 2  ;;  %v3235_v62 = vmax.f32 %v3233_v51, %v3234_v20  ;;  %v2759_v40 = vadd.f32 %v2758_v37, %v5788_v6  ;;  %v3044_v19 = vmax.f32 %v2757_v36, 0.0 }
 0x3f9   : > { %v3358_v26 = vmax.bf16 %v5943_v38, %v5933_v2  ;;  %v2760_v8 = vpop.f32.mrf.mxu0  ;;  %v3159_v37 = vpack.c.bf16 %v3041_v34, %v3039_v50 }
 0x3fa   : > { %v3224_v53 = vmax.f32 %v3222_v61, %v3223_v41  ;;  %v3236_v12 = vrot.slane %v3235_v62, 2  ;;  %v2761_v42 = vadd.f32 %v2760_v8, %v5791_v0  ;;  %v3045_v5 = vmax.f32 %v2759_v40, 0.0 }
 0x3fb   : > { %v2764_v52 = vpop.f32.mrf.mxu0  ;;  %v3160_v41 = vpack.c.bf16 %v3042_v49, %v3040_v14 }
 0x3fc   : > { %v3225_v28 = vrot.slane %v3224_v53, 1  ;;  %v3237_v11 = vmax.f32 %v3235_v62, %v3236_v12  ;;  %v3046_v24 = vmax.f32 %v2761_v42, 0.0  ;;  %v2765_v45 = vadd.f32 %v2764_v52, %v5788_v6 }
 0x3fd   : > { %v2766_v15 = vpop.f32.mrf.mxu0  ;;  %v3161_v35 = vpack.c.bf16 %v3045_v5, %v3043_v31 }
 0x3fe   : > { %v3226_v23 = vmax.f32 %v3224_v53, %v3225_v28  ;;  %v3238_v13 = vrot.slane %v3237_v11, 1  ;;  %v2767_v4 = vadd.f32 %v2766_v15, %v5791_v0  ;;  %v3162_v51 = vpack.c.bf16 %v3046_v24, %v3044_v19 }
 0x3ff   : > { %v2768_v27 = vpop.f32.mrf.mxu0  ;;  %v3047_v60 = vmax.f32 %v2765_v45, 0.0  ;;  %v3241_v40 = vmax.bf16 %v3161_v35, %v3159_v37 }
 0x400   : > { %v3239_v25 = vmax.f32 %v3237_v11, %v3238_v13  ;;  %v2769_v22 = vadd.f32 %v2768_v27, %v5788_v6  ;;  %v3227_v43 = vpack.i.bf16 %v3226_v23, %v3226_v23  ;;  %v3048_v12 = vmax.f32 %v2767_v4, 0.0 }
 0x401   : > { %v2770_v59 = vpop.f32.mrf.mxu0  ;;  %v3254_v42 = vmax.bf16 %v3162_v51, %v3160_v41 }
 0x402   : > { %v3240_v54 = vpack.i.bf16 %v3239_v25, %v3239_v25  ;;  %v2771_v10 = vadd.f32 %v2770_v59, %v5791_v0  ;;  %v3049_v32 = vmax.f32 %v2769_v22, 0.0 }
 0x403   : > { %v2774_v55 = vpop.f32.mrf.mxu0 }
 0x404   : > { %v5958_v63 = vcombine.low %v3227_v43, %v3240_v54  ;;  %v2924_v3 = vpop.f32.mrf.mxu1  ;;  %v3050_v47 = vmax.f32 %v2771_v10, 0.0  ;;  %v2775_v61 = vadd.f32 %v2774_v55, %v5788_v6  ;;  %v3163_v62 = vpack.c.bf16 %v3049_v32, %v3047_v60 }
 0x405   : > { %v2776_v7 = vpop.f32.mrf.mxu0  ;;  %v2925_v8 = vadd.f32 %v2924_v3, %v5788_v6 }
 0x406   : > { %v2926_v20 = vpop.f32.mrf.mxu1  ;;  %v2777_v52 = vadd.f32 %v2776_v7, %v5791_v0  ;;  %v3164_v48 = vpack.c.bf16 %v3050_v47, %v3048_v12  ;;  %v3051_v44 = vmax.f32 %v2775_v61, 0.0  ;;  %v3242_v25 = vmax.bf16 %v3241_v40, %v3163_v62 }
 0x407   : > { %v2778_v53 = vpop.f32.mrf.mxu0  ;;  %v2927_v15 = vadd.f32 %v2926_v20, %v5791_v0  ;;  %v3111_v57 = vmax.f32 %v2925_v8, 0.0 }
 0x408   : > { %v2779_v28 = vadd.f32 %v2778_v53, %v5788_v6  ;;  %v2928_v11 = vpop.f32.mrf.mxu1  ;;  %v3052_v24 = vmax.f32 %v2777_v52, 0.0  ;;  %v3255_v19 = vmax.bf16 %v3254_v42, %v3164_v48 }
 0x409   : > { %v2929_v23 = vadd.f32 %v2928_v11, %v5788_v6  ;;  %v2780_v13 = vpop.f32.mrf.mxu0  ;;  %v3112_v34 = vmax.f32 %v2927_v15, 0.0 }
 0x40a   : > { %v3053_v29 = vmax.f32 %v2779_v28, 0.0  ;;  %v2781_v36 = vadd.f32 %v2780_v13, %v5791_v0  ;;  %v2930_v27 = vpop.f32.mrf.mxu1 }
 0x40b   : > { %v3113_v22 = vmax.f32 %v2929_v23, 0.0  ;;  %v2931_v16 = vadd.f32 %v2930_v27, %v5791_v0  ;;  %v2784_v5 = vpop.f32.mrf.mxu0 }
 0x40c   : > { %v3165_v45 = vpack.c.bf16 %v3053_v29, %v3051_v44  ;;  %v3054_v59 = vmax.f32 %v2781_v36, 0.0  ;;  %v2785_v43 = vadd.f32 %v2784_v5, %v5788_v6  ;;  %v2934_v54 = vpop.f32.mrf.mxu1 }
 0x40d   : > { %v3195_v10 = vpack.c.bf16 %v3113_v22, %v3111_v57  ;;  %v3114_v49 = vmax.f32 %v2931_v16, 0.0  ;;  %v2786_v31 = vpop.f32.mrf.mxu0  ;;  %v2935_v35 = vadd.f32 %v2934_v54, %v5788_v6 }
 0x40e   : > { %v3243_v32 = vmax.bf16 %v3242_v25, %v3165_v45  ;;  %v3166_v55 = vpack.c.bf16 %v3054_v59, %v3052_v24  ;;  %v2936_v50 = vpop.f32.mrf.mxu1  ;;  %v3055_v14 = vmax.f32 %v2785_v43, 0.0  ;;  %v2787_v61 = vadd.f32 %v2786_v31, %v5791_v0 }
 0x40f   : > { %v3346_v4 = vmax.bf16 %v3345_v1, %v3195_v10  ;;  %v3196_v3 = vpack.c.bf16 %v3114_v49, %v3112_v34  ;;  %v2788_v51 = vpop.f32.mrf.mxu0  ;;  %v2937_v41 = vadd.f32 %v2936_v50, %v5791_v0  ;;  %v3115_v28 = vmax.f32 %v2935_v35, 0.0 }
 0x410   : > { %v3244_v60 = vunpack.i.l.bf16 %v3243_v32  ;;  %v3245_v7 = vunpack.i.h.bf16 %v3243_v32  ;;  %v3256_v47 = vmax.bf16 %v3255_v19, %v3166_v55  ;;  %v2938_v20 = vpop.f32.mrf.mxu1  ;;  %v2789_v56 = vadd.f32 %v2788_v51, %v5788_v6 }
 0x411   : > { %v3359_v37 = vmax.bf16 %v3358_v26, %v3196_v3  ;;  %v2939_v39 = vadd.f32 %v2938_v20, %v5788_v6  ;;  %v2790_v1 = vpop.f32.mrf.mxu0  ;;  %v3056_v26 = vmax.f32 %v2787_v61, 0.0  ;;  %v3116_v23 = vmax.f32 %v2937_v41, 0.0 }
 0x412   : > { %v3246_v62 = vmax.f32 %v3244_v60, %v3245_v7  ;;  %v3257_v8 = vunpack.i.l.bf16 %v3256_v47  ;;  %v3258_v53 = vunpack.i.h.bf16 %v3256_v47  ;;  %v2791_v12 = vadd.f32 %v2790_v1, %v5791_v0  ;;  %v2940_v52 = vpop.f32.mrf.mxu1 }
 0x413   : > { %v3057_v11 = vmax.f32 %v2789_v56, 0.0  ;;  %v3117_v40 = vmax.f32 %v2939_v39, 0.0  ;;  %v2941_v42 = vadd.f32 %v2940_v52, %v5791_v0 }
 0x414   : > { %v3247_v2 = vrot.slane %v3246_v62, 4  ;;  %v3259_v38 = vmax.f32 %v3257_v8, %v3258_v53  ;;  %v3058_v15 = vmax.f32 %v2791_v12, 0.0 }
 0x415   : > { %v3167_v13 = vpack.c.bf16 %v3057_v11, %v3055_v14  ;;  %v3197_v48 = vpack.c.bf16 %v3117_v40, %v3115_v28  ;;  %v3118_v44 = vmax.f32 %v2941_v42, 0.0 }
 0x416   : > { %v3248_v29 = vmax.f32 %v3246_v62, %v3247_v2  ;;  %v3260_v36 = vrot.slane %v3259_v38, 4  ;;  %v3168_v27 = vpack.c.bf16 %v3058_v15, %v3056_v26 }
 0x417   : > { %v3267_v25 = vmax.bf16 %v5799_v18, %v3167_v13  ;;  %v3347_v57 = vmax.bf16 %v3346_v4, %v3197_v48  ;;  %v3198_v22 = vpack.c.bf16 %v3118_v44, %v3116_v23 }
 0x418   : > { %v3249_v16 = vrot.slane %v3248_v29, 2  ;;  %v3261_v5 = vmax.f32 %v3259_v38, %v3260_v36  ;;  %v3280_v24 = vmax.bf16 %v5801_v33, %v3168_v27 }
 0x419   : > { %v3268_v45 = vmax.bf16 %v3267_v25, %v5826_v17  ;;  %v3348_v59 = vunpack.i.l.bf16 %v3347_v57  ;;  %v3349_v43 = vunpack.i.h.bf16 %v3347_v57  ;;  %v3360_v54 = vmax.bf16 %v3359_v37, %v3198_v22 }
 0x41a   : > { %v3262_v34 = vrot.slane %v3261_v5, 2  ;;  %v3281_v10 = vmax.bf16 %v3280_v24, %v5831_v30  ;;  %v3250_v18 = vmax.f32 %v3248_v29, %v3249_v16 }
 0x41b   : > { %v3269_v49 = vmax.bf16 %v3268_v45, %v5839_v58  ;;  %v3350_v31 = vmax.f32 %v3348_v59, %v3349_v43  ;;  %v3361_v19 = vunpack.i.l.bf16 %v3360_v54  ;;  %v3362_v32 = vunpack.i.h.bf16 %v3360_v54 }
 0x41c   : > { %v3263_v55 = vmax.f32 %v3261_v5, %v3262_v34  ;;  %v3282_v50 = vmax.bf16 %v3281_v10, %v5844_v46  ;;  %v3251_v61 = vrot.slane %v3250_v18, 1  ;;  %v3470_v45 = vunpack.c.l.b16 %v5878_v21 }
 0x41d   : > { %v3270_v4 = vunpack.i.l.bf16 %v3269_v49  ;;  %v3271_v3 = vunpack.i.h.bf16 %v3269_v49  ;;  %v3351_v33 = vrot.slane %v3350_v31, 4  ;;  %v3363_v14 = vmax.f32 %v3361_v19, %v3362_v32 }
 0x41e   : > { %v3283_v17 = vunpack.i.l.bf16 %v3282_v50  ;;  %v3284_v35 = vunpack.i.h.bf16 %v3282_v50  ;;  %v3264_v51 = vrot.slane %v3263_v55, 1  ;;  %v3252_v8 = vmax.f32 %v3250_v18, %v3251_v61 }
 0x41f   : > { %v3272_v60 = vmax.f32 %v3270_v4, %v3271_v3  ;;  %v3352_v7 = vmax.f32 %v3350_v31, %v3351_v33  ;;  %v3364_v47 = vrot.slane %v3363_v14, 4  ;;  %v3464_v59 = vunpack.c.l.b16 %v5958_v63 }
 0x420   : > { %v3285_v30 = vmax.f32 %v3283_v17, %v3284_v35  ;;  %v3265_v56 = vmax.f32 %v3263_v55, %v3264_v51  ;;  %v3253_v26 = vpack.i.bf16 %v3252_v8, %v3252_v8  ;;  %v3465_v43 = vunpack.c.h.b16 %v5958_v63 }
 0x421   : > { %v3273_v58 = vrot.slane %v3272_v60, 4  ;;  %v3353_v20 = vrot.slane %v3352_v7, 2  ;;  %v3365_v37 = vmax.f32 %v3363_v14, %v3364_v47  ;;  %v3471_v54 = vunpack.c.h.b16 %v5878_v21 }
 0x422   : > { %v3286_v41 = vrot.slane %v3285_v30, 4  ;;  %v3266_v11 = vpack.i.bf16 %v3265_v56, %v3265_v56  ;;  %v3472_v19 = vunpack.c.l.b16 %v5922_v9  ;;  %v3473_v32 = vunpack.c.h.b16 %v5922_v9 }
 0x423   : > { %v3274_v39 = vmax.f32 %v3272_v60, %v3273_v58  ;;  %v3354_v1 = vmax.f32 %v3352_v7, %v3353_v20  ;;  %v3366_v46 = vrot.slane %v3365_v37, 2 }
 0x424   : > { %v3287_v62 = vmax.f32 %v3285_v30, %v3286_v41  ;;  %v3928_v48 = vcombine.low %v3253_v26, %v3266_v11 }
 0x425   : > { %v3275_v53 = vrot.slane %v3274_v39, 2  ;;  %v3355_v12 = vrot.slane %v3354_v1, 1  ;;  %v3367_v52 = vmax.f32 %v3365_v37, %v3366_v46 }
 0x426   : > { %v3288_v28 = vrot.slane %v3287_v62, 2  ;;  %v3466_v16 = vunpack.c.l.b16 %v3928_v48  ;;  %v3467_v5 = vunpack.c.h.b16 %v3928_v48 }
 0x427   : > { %v3276_v40 = vmax.f32 %v3274_v39, %v3275_v53  ;;  %v3356_v42 = vmax.f32 %v3354_v1, %v3355_v12  ;;  %v3368_v2 = vrot.slane %v3367_v52, 1 }
 0x428   : > { %v3289_v38 = vmax.f32 %v3287_v62, %v3288_v28  ;;  %v3481_v49 = vsel %vm3480_vm1, %v3466_v16, %v3464_v59  ;;  %v3494_v31 = vsel %vm3480_vm1, %v3467_v5, %v3465_v43 }
 0x429   : > { %v3277_v15 = vrot.slane %v3276_v40, 1  ;;  %v3369_v23 = vmax.f32 %v3367_v52, %v3368_v2  ;;  %v3357_v29 = vpack.i.bf16 %v3356_v42, %v3356_v42  ;;  %v2944_v21 = vpop.f32.mrf.mxu1 }
 0x42a   : > { %v3290_v13 = vrot.slane %v3289_v38, 1 }
 0x42b   : > { %v3278_v44 = vmax.f32 %v3276_v40, %v3277_v15  ;;  %v3370_v36 = vpack.i.bf16 %v3369_v23, %v3369_v23  ;;  %v2946_v51 = vpop.f32.mrf.mxu1 }
 0x42c   : > { %v3291_v27 = vmax.f32 %v3289_v38, %v3290_v13  ;;  %v2947_v42 = vadd.f32 %v2946_v51, %v5791_v0 }
 0x42d   : > { %v3932_v25 = vcombine.low %v3357_v29, %v3370_v36  ;;  %v3279_v57 = vpack.i.bf16 %v3278_v44, %v3278_v44  ;;  %v2948_v60 = vpop.f32.mrf.mxu1  ;;  %v2945_v44 = vadd.f32 %v2944_v21, %v5788_v6 }
 0x42e   : > { %v3292_v22 = vpack.i.bf16 %v3291_v27, %v3291_v27  ;;  %v2949_v2 = vadd.f32 %v2948_v60, %v5788_v6  ;;  %v3120_v5 = vmax.f32 %v2947_v42, 0.0 }
 0x42f   : > { %v3474_v50 = vunpack.c.l.b16 %v3932_v25  ;;  %v3475_v4 = vunpack.c.h.b16 %v3932_v25  ;;  %v2950_v7 = vpop.f32.mrf.mxu1 }
 0x430   : > { %v3929_v24 = vcombine.low %v3279_v57, %v3292_v22  ;;  %v2951_v52 = vadd.f32 %v2950_v7, %v5791_v0 }
 0x431   : > { %v2954_v47 = vpop.f32.mrf.mxu1 }
 0x432   : > { %v3468_v34 = vunpack.c.l.b16 %v3929_v24  ;;  %v3469_v10 = vunpack.c.h.b16 %v3929_v24  ;;  %v2955_v38 = vadd.f32 %v2954_v47, %v5788_v6  ;;  %v3122_v29 = vmax.f32 %v2951_v52, 0.0 }
 0x433   : > { %v2956_v30 = vpop.f32.mrf.mxu1  ;;  %v3121_v24 = vmax.f32 %v2949_v2, 0.0 }
 0x434   : > { %v3483_v18 = vsel %vm3482_vm2, %v3468_v34, %v3481_v49  ;;  %v3495_v55 = vsel %vm3482_vm2, %v3469_v10, %v3494_v31  ;;  %v2957_v28 = vadd.f32 %v2956_v30, %v5791_v0  ;;  %v3119_v31 = vmax.f32 %v2945_v44, 0.0 }
 0x435   : > { %v3485_v3 = vsel %vm3484_vm3, %v3470_v45, %v3483_v18  ;;  %v3496_v63 = vsel %vm3484_vm3, %v3471_v54, %v3495_v55  ;;  %v2958_v61 = vpop.f32.mrf.mxu1  ;;  %v3123_v45 = vmax.f32 %v2955_v38, 0.0 }
 0x436   : > { %v3487_v33 = vsel %vm3486_vm4, %v3472_v19, %v3485_v3  ;;  %v3497_v14 = vsel %vm3486_vm4, %v3473_v32, %v3496_v63  ;;  %v2959_v11 = vadd.f32 %v2958_v61, %v5788_v6  ;;  %v3124_v36 = vmax.f32 %v2957_v28, 0.0 }
 0x437   : > { %v5995_v17 = vsel %vm3488_vm5, %v3474_v50, %v3487_v33  ;;  %v5997_v35 = vsel %vm3488_vm5, %v3475_v4, %v3497_v14  ;;  %v2960_v9 = vpop.f32.mrf.mxu1  ;;  %v3200_v19 = vpack.c.bf16 %v3122_v29, %v3120_v5  ;;  %v3199_v3 = vpack.c.bf16 %v3121_v24, %v3119_v31 }
 0x438   : > { %v2961_v53 = vadd.f32 %v2960_v9, %v5791_v0  ;;  %v3125_v27 = vmax.f32 %v2959_v11, 0.0 }
 0x43a   : > { %v3126_v26 = vmax.f32 %v2961_v53, 0.0  ;;  %v3201_v32 = vpack.c.bf16 %v3125_v27, %v3123_v45 }
 0x43c   : > { %v3202_v59 = vpack.c.bf16 %v3126_v26, %v3124_v36  ;;  %v3371_v60 = vmax.bf16 %v3201_v32, %v3199_v3 }
 0x43e   : > { %v3384_v33 = vmax.bf16 %v3202_v59, %v3200_v19 }
 0x44a   : > { %v2964_v58 = vpop.f32.mrf.mxu1 }
 0x44b   : > { %v2965_v25 = vadd.f32 %v2964_v58, %v5788_v6 }
 0x44c   : > { %v2966_v20 = vpop.f32.mrf.mxu1 }
 0x44d   : > { %v2967_v23 = vadd.f32 %v2966_v20, %v5791_v0  ;;  %v3127_v18 = vmax.f32 %v2965_v25, 0.0 }
 0x44e   : > { %v2968_v37 = vpop.f32.mrf.mxu1 }
 0x44f   : > { %v2969_v13 = vadd.f32 %v2968_v37, %v5788_v6  ;;  %v3128_v54 = vmax.f32 %v2967_v23, 0.0 }
 0x450   : > { %v2970_v41 = vpop.f32.mrf.mxu1 }
 0x451   : > { %v2971_v40 = vadd.f32 %v2970_v41, %v5791_v0  ;;  %v3129_v34 = vmax.f32 %v2969_v13, 0.0 }
 0x452   : > { %v2974_v56 = vpop.f32.mrf.mxu1 }
 0x453   : > { %v3130_v57 = vmax.f32 %v2971_v40, 0.0  ;;  %v2975_v10 = vadd.f32 %v2974_v56, %v5788_v6  ;;  %v3203_v14 = vpack.c.bf16 %v3129_v34, %v3127_v18 }
 0x454   : > { %v2976_v39 = vpop.f32.mrf.mxu1 }
 0x455   : > { %v2977_v22 = vadd.f32 %v2976_v39, %v5791_v0  ;;  %v3204_v55 = vpack.c.bf16 %v3130_v57, %v3128_v54  ;;  %v3131_v21 = vmax.f32 %v2975_v10, 0.0  ;;  %v3372_v61 = vmax.bf16 %v3371_v60, %v3203_v14 }
 0x456   : > { %v2978_v1 = vpop.f32.mrf.mxu1 }
 0x457   : > { %v2979_v16 = vadd.f32 %v2978_v1, %v5788_v6  ;;  %v3132_v50 = vmax.f32 %v2977_v22, 0.0  ;;  %v3385_v7 = vmax.bf16 %v3384_v33, %v3204_v55 }
 0x458   : > { %v2980_v46 = vpop.f32.mrf.mxu1 }
 0x459   : > { %v2981_v48 = vadd.f32 %v2980_v46, %v5791_v0  ;;  %v3133_v4 = vmax.f32 %v2979_v16, 0.0 }
 0x45b   : > { %v3134_v49 = vmax.f32 %v2981_v48, 0.0  ;;  %v3205_v47 = vpack.c.bf16 %v3133_v4, %v3131_v21 }
 0x45d   : > { %v3206_v51 = vpack.c.bf16 %v3134_v49, %v3132_v50  ;;  %v3373_v58 = vmax.bf16 %v3372_v61, %v3205_v47 }
 0x45f   : > { %v3386_v9 = vmax.bf16 %v3385_v7, %v3206_v51  ;;  %v3374_v39 = vunpack.i.l.bf16 %v3373_v58  ;;  %v3375_v1 = vunpack.i.h.bf16 %v3373_v58 }
 0x461   : > { %v3387_v37 = vunpack.i.l.bf16 %v3386_v9  ;;  %v3388_v41 = vunpack.i.h.bf16 %v3386_v9  ;;  %v3376_v2 = vmax.f32 %v3374_v39, %v3375_v1 }
 0x463   : > { %v3389_v52 = vmax.f32 %v3387_v37, %v3388_v41  ;;  %v3377_v5 = vrot.slane %v3376_v2, 4 }
 0x465   : > { %v3390_v29 = vrot.slane %v3389_v52, 4 }
 0x467   : > { %v3391_v31 = vmax.f32 %v3389_v52, %v3390_v29 }
 0x46f   : > { %v5999_v62 = vpop.f32.mrf.mxu1 }
 0x470   : > { %v2985_v26 = vadd.f32 %v5999_v62, %v5788_v6 }
 0x471   : > { %v6001_v8 = vpop.f32.mrf.mxu1 }
 0x472   : > { %v2987_v27 = vadd.f32 %v6001_v8, %v5791_v0  ;;  %v3135_v24 = vmax.f32 %v2985_v26, 0.0 }
 0x473   : > { %v2988_v12 = vpop.f32.mrf.mxu1 }
 0x474   : > { %v2989_v28 = vadd.f32 %v2988_v12, %v5788_v6  ;;  %v3136_v19 = vmax.f32 %v2987_v27, 0.0 }
 0x475   : > { %v2990_v15 = vpop.f32.mrf.mxu1 }
 0x476   : > { %v2991_v23 = vadd.f32 %v2990_v15, %v5791_v0  ;;  %v3137_v25 = vmax.f32 %v2989_v28, 0.0 }
 0x477   : > { %v2994_v43 = vpop.f32.mrf.mxu1 }
 0x478   : > { %v2995_v11 = vadd.f32 %v2994_v43, %v5788_v6  ;;  %v3138_v45 = vmax.f32 %v2991_v23, 0.0  ;;  %v3207_v8 = vpack.c.bf16 %v3137_v25, %v3135_v24 }
 0x479   : > { %v2996_v63 = vpop.f32.mrf.mxu1 }
 0x47a   : > { %v2997_v13 = vadd.f32 %v2996_v63, %v5791_v0  ;;  %v3139_v57 = vmax.f32 %v2995_v11, 0.0  ;;  %v3378_v63 = vmax.f32 %v3376_v2, %v3377_v5  ;;  %v3208_v33 = vpack.c.bf16 %v3138_v45, %v3136_v19 }
 0x47b   : > { %v2998_v30 = vpop.f32.mrf.mxu1 }
 0x47c   : > { %v2999_v46 = vadd.f32 %v2998_v30, %v5788_v6  ;;  %v3140_v59 = vmax.f32 %v2997_v13, 0.0  ;;  %v3392_v30 = vrot.slane %v3391_v31, 2  ;;  %v3379_v41 = vrot.slane %v3378_v63, 2 }
 0x47d   : > { %v3000_v20 = vpop.f32.mrf.mxu1 }
 0x47e   : > { %v3001_v40 = vadd.f32 %v3000_v20, %v5791_v0  ;;  %v3141_v48 = vmax.f32 %v2999_v46, 0.0  ;;  %v3380_v28 = vmax.f32 %v3378_v63, %v3379_v41 }
 0x480   : > { %v3142_v22 = vmax.f32 %v3001_v40, 0.0  ;;  %v3209_v43 = vpack.c.bf16 %v3141_v48, %v3139_v57  ;;  %v3381_v26 = vrot.slane %v3380_v28, 1 }
 0x482   : > { %v3210_v32 = vpack.c.bf16 %v3142_v22, %v3140_v59  ;;  %v3397_v14 = vmax.bf16 %v3209_v43, %v3207_v8  ;;  %v3423_v8 = vld [vmem:[#allocation2] sm:$0xff] }
 0x484   : > { %v3410_v61 = vmax.bf16 %v3210_v32, %v3208_v33 }
 0x490   : > { %v3004_v56 = vpop.f32.mrf.mxu1 }
 0x491   : > { %v3005_v12 = vadd.f32 %v3004_v56, %v5788_v6 }
 0x492   : > { %v3006_v53 = vpop.f32.mrf.mxu1 }
 0x493   : > { %v3007_v62 = vadd.f32 %v3006_v53, %v5791_v0  ;;  %v3143_v34 = vmax.f32 %v3005_v12, 0.0  ;;  %v3382_v12 = vmax.f32 %v3380_v28, %v3381_v26 }
 0x494   : > { %v3008_v42 = vpop.f32.mrf.mxu1 }
 0x495   : > { %v3009_v38 = vadd.f32 %v3008_v42, %v5788_v6  ;;  %v3144_v55 = vmax.f32 %v3007_v62, 0.0 }
 0x496   : > { %v3010_v44 = vpop.f32.mrf.mxu1 }
 0x497   : > { %v3011_v36 = vadd.f32 %v3010_v44, %v5791_v0  ;;  %v3145_v15 = vmax.f32 %v3009_v38, 0.0 }
 0x498   : > { %v3014_v16 = vpop.f32.mrf.mxu1 }
 0x499   : > { %v3146_v10 = vmax.f32 %v3011_v36, 0.0  ;;  %v3015_v49 = vadd.f32 %v3014_v16, %v5788_v6  ;;  %v3211_v50 = vpack.c.bf16 %v3145_v15, %v3143_v34  ;;  %v3383_v16 = vpack.i.bf16 %v3382_v12, %v3382_v12 }
 0x49a   : > { %v3016_v54 = vpop.f32.mrf.mxu1 }
 0x49b   : > { %v3017_v4 = vadd.f32 %v3016_v54, %v5791_v0  ;;  %v3212_v51 = vpack.c.bf16 %v3146_v10, %v3144_v55  ;;  %v3147_v60 = vmax.f32 %v3015_v49, 0.0  ;;  %v3398_v9 = vmax.bf16 %v3397_v14, %v3211_v50 }
 0x49c   : > { %v3018_v18 = vpop.f32.mrf.mxu1 }
 0x49d   : > { %v3019_v3 = vadd.f32 %v3018_v18, %v5788_v6  ;;  %v3148_v58 = vmax.f32 %v3017_v4, 0.0  ;;  %v3411_v56 = vmax.bf16 %v3410_v61, %v3212_v51  ;;  %v3393_v6 = vmax.f32 %v3391_v31, %v3392_v30 }
 0x49e   : > { %v3020_v21 = vpop.f32.mrf.mxu1 }
 0x49f   : > { %v3149_v7 = vmax.f32 %v3019_v3, 0.0  ;;  %v3021_v47 = vadd.f32 %v3020_v21, %v5791_v0  ;;  %v3394_v2 = vrot.slane %v3393_v6, 1 }
 0x4a1   : > { %v3213_v20 = vpack.c.bf16 %v3149_v7, %v3147_v60  ;;  %v3150_v37 = vmax.f32 %v3021_v47, 0.0  ;;  %v3395_v48 = vmax.f32 %v3393_v6, %v3394_v2 }
 0x4a3   : > { %v3399_v39 = vmax.bf16 %v3398_v9, %v3213_v20  ;;  %v3214_v1 = vpack.c.bf16 %v3150_v37, %v3148_v58  ;;  %v3396_v25 = vpack.i.bf16 %v3395_v48, %v3395_v48 }
 0x4a5   : > { %v3400_v46 = vunpack.i.l.bf16 %v3399_v39  ;;  %v3401_v53 = vunpack.i.h.bf16 %v3399_v39  ;;  %v3412_v52 = vmax.bf16 %v3411_v56, %v3214_v1  ;;  %v3933_v15 = vcombine.low %v3383_v16, %v3396_v25 }
 0x4a7   : > { %v3402_v11 = vmax.f32 %v3400_v46, %v3401_v53  ;;  %v3413_v40 = vunpack.i.l.bf16 %v3412_v52  ;;  %v3414_v42 = vunpack.i.h.bf16 %v3412_v52  ;;  %v3476_v43 = vunpack.c.l.b16 %v3933_v15 }
 0x4a8   : > { %v3477_v54 = vunpack.c.h.b16 %v3933_v15 }
 0x4a9   : > { %v3403_v0 = vrot.slane %v3402_v11, 4  ;;  %v3415_v38 = vmax.f32 %v3413_v40, %v3414_v42  ;;  %v3491_v31 = vsel %vm3490_vm6, %v3476_v43, %v5995_v17 }
 0x4aa   : > { %v3499_v19 = vsel %vm3490_vm6, %v3477_v54, %v5997_v35 }
 0x4ab   : > { %v3404_v23 = vmax.f32 %v3402_v11, %v3403_v0  ;;  %v3416_v13 = vrot.slane %v3415_v38, 4 }
 0x4ad   : > { %v3405_v44 = vrot.slane %v3404_v23, 2  ;;  %v3417_v29 = vmax.f32 %v3415_v38, %v3416_v13 }
 0x4af   : > { %v3406_v36 = vmax.f32 %v3404_v23, %v3405_v44  ;;  %v3418_v27 = vrot.slane %v3417_v29, 2 }
 0x4b1   : > { %v3407_v57 = vrot.slane %v3406_v36, 1  ;;  %v3419_v22 = vmax.f32 %v3417_v29, %v3418_v27 }
 0x4b3   : > { %v3408_v5 = vmax.f32 %v3406_v36, %v3407_v57  ;;  %v3420_v62 = vrot.slane %v3419_v22, 1 }
 0x4b5   : > { %v3421_v24 = vmax.f32 %v3419_v22, %v3420_v62  ;;  %v3409_v45 = vpack.i.bf16 %v3408_v5, %v3408_v5 }
 0x4b7   : > { %v3422_v59 = vpack.i.bf16 %v3421_v24, %v3421_v24 }
 0x4b9   : > { %v3934_v34 = vcombine.low %v3409_v45, %v3422_v59 }
 0x4bb   : > { %v3478_v10 = vunpack.c.l.b16 %v3934_v34  ;;  %v3479_v49 = vunpack.c.h.b16 %v3934_v34 }
 0x4bd   : > { %v3493_v32 = vsel %vm3492_vm7, %v3478_v10, %v3491_v31  ;;  %v3500_v18 = vsel %vm3492_vm7, %v3479_v49, %v3499_v19 }
 0x4be   : > { %v3501_v55 = vpack.c.b16 %v3500_v18, %v3493_v32  ;;  %3508 = sbr.rel (%p3935_p4) target bundleno = 1484 (0x5cc), region = 102 }
 0x4c0   : > { %v3503_v50 = vmax.bf16 %v3501_v55, %v3423_v8 }
 0x4c2   : > { %3504 = vst [vmem:[#allocation2] sm:$0xff] %v3503_v50 }
 0x4c3   : > { %v4306_v4 = vld [vmem:[%s6203_s7 + $0x74] ss:$8 sps:$4 sm:$0xff]   ;;  %v4308_v3 = vld [vmem:[%s6203_s7 + $0x70] ss:$8 sps:$4 sm:$0xff]   ;;  %v4309_v17 = vld [vmem:[%s6203_s7 + $0x64] ss:$8 sps:$4 sm:$0xff]  }
 0x4c4   : > { %3721 = vmatprep.subr.bf16.mxu0 %v4306_v4  ;;  %v4311_v35 = vld [vmem:[%s6203_s7 + $0x60] ss:$8 sps:$4 sm:$0xff]   ;;  %v4312_v63 = vld [vmem:[%s6203_s7 + $0x54] ss:$8 sps:$4 sm:$0xff]   ;;  %v4314_v33 = vld [vmem:[%s6203_s7 + $0x50] ss:$8 sps:$4 sm:$0xff]  }
 0x4c5   : > { %3722 = vmatpush1.bf16.msra.mxu0 %v4308_v3  ;;  %v4315_v14 = vld [vmem:[%s6203_s7 + $0x44] ss:$8 sps:$4 sm:$0xff]   ;;  %v4317_v21 = vld [vmem:[%s6203_s7 + $0x40] ss:$8 sps:$4 sm:$0xff]   ;;  %v4318_v51 = vld [vmem:[%s6203_s7 + $0x34] ss:$8 sps:$4 sm:$0xff]  }
 0x4c6   : > { %3723 = vmatprep.subr.bf16.mxu0 %v4309_v17  ;;  %v4320_v60 = vld [vmem:[%s6203_s7 + $0x30] ss:$8 sps:$4 sm:$0xff]   ;;  %v4321_v7 = vld [vmem:[%s6203_s7 + $0x24] ss:$8 sps:$4 sm:$0xff]   ;;  %v4323_v47 = vld [vmem:[%s6203_s7 + $0x20] ss:$8 sps:$4 sm:$0xff]  }
 0x4c7   : > { %v4324_v30 = vld [vmem:[%s6203_s7 + $0x14] ss:$8 sps:$4 sm:$0xff]   ;;  %v4326_v58 = vld [vmem:[%s6203_s7 + $0x10] ss:$8 sps:$4 sm:$0xff]   ;;  %v4327_v20 = vld [vmem:[%s6203_s7 + $0x4] ss:$8 sps:$4 sm:$0xff]  }
 0x4c8   : > { %v4329_v37 = vld [vmem:[%s6203_s7] ss:$8 sps:$4 sm:$0xff]   ;;  %v4330_v41 = vld [vmem:[%s6203_s7 + $0xf4] ss:$8 sps:$4 sm:$0xff]   ;;  %v4332_v56 = vld [vmem:[%s6203_s7 + $0xf0] ss:$8 sps:$4 sm:$0xff]  }
 0x4c9   : > { %3724 = vmatpush1.bf16.msra.mxu0 %v4311_v35  ;;  %v3509_v61 = vld [vmem:[#allocation2] sm:$0xff]  ;;  %v4336_v6 = vld [vmem:[%s6203_s7 + $0xd4] ss:$8 sps:$4 sm:$0xff]   ;;  %v4338_v46 = vld [vmem:[%s6203_s7 + $0xd0] ss:$8 sps:$4 sm:$0xff]  }
 0x4ca   : > { %3725 = vmatprep.subr.bf16.mxu0 %v4312_v63  ;;  %v3937_v9 = vcombine.high %v3509_v61, %v3509_v61  ;;  %v4333_v39 = vld [vmem:[%s6203_s7 + $0xe4] ss:$8 sps:$4 sm:$0xff]   ;;  %v4335_v1 = vld [vmem:[%s6203_s7 + $0xe0] ss:$8 sps:$4 sm:$0xff]   ;;  %v4342_v28 = vld [vmem:[%s6203_s7 + $0xb4] ss:$8 sps:$4 sm:$0xff]   ;;  %v3936_v23 = vcombine.low %v3509_v61, %v3509_v61 }
 0x4cb   : > { %v4339_v53 = vld [vmem:[%s6203_s7 + $0xc4] ss:$8 sps:$4 sm:$0xff]   ;;  %v4341_v52 = vld [vmem:[%s6203_s7 + $0xc0] ss:$8 sps:$4 sm:$0xff]   ;;  %v4344_v11 = vld [vmem:[%s6203_s7 + $0xb0] ss:$8 sps:$4 sm:$0xff]  }
 0x4cc   : > { %3753 = vmatprep.mubr.bf16.mxu0 %v3937_v9  ;;  %v4345_v40 = vld [vmem:[%s6203_s7 + $0xa4] ss:$8 sps:$4 sm:$0xff]   ;;  %v4347_v42 = vld [vmem:[%s6203_s7 + $0xa0] ss:$8 sps:$4 sm:$0xff]   ;;  %v4348_v2 = vld [vmem:[%s6203_s7 + $0x94] ss:$8 sps:$4 sm:$0xff]  }
 0x4cd   : > { %3726 = vmatpush1.bf16.msra.mxu0 %v4314_v33  ;;  %v4350_v0 = vld [vmem:[%s6203_s7 + $0x90] ss:$8 sps:$4 sm:$0xff]   ;;  %v4351_v38 = vld [vmem:[%s6203_s7 + $0x84] ss:$8 sps:$4 sm:$0xff]   ;;  %v4353_v26 = vld [vmem:[%s6203_s7 + $0x80] ss:$8 sps:$4 sm:$0xff]  }
 0x4ce   : > { %3727 = vmatprep.subr.bf16.mxu0 %v4315_v14  ;;  %v3542_v13 = vld [vmem:[%s6204_s8] sm:$0x3]  ;;  %v6272_v48 = vld [vmem:[#allocation21_spill] sm:$0xff]  ;;  %v6273_v29 = vld [vmem:[#allocation19_spill] sm:$0xff] }
 0x4cf   : > { %v3547_v44 = vrot.slane %v3542_v13, %v6272_v48  ;;  %v3551_v12 = vrot.slane %v3542_v13, %v6273_v29 }
 0x4d1   : > { %3728 = vmatpush1.bf16.msra.mxu0 %v4317_v21 }
 0x4d2   : > { %3729 = vmatprep.subr.bf16.mxu0 %v4318_v51 }
 0x4d5   : > { %3730 = vmatpush1.bf16.msra.mxu0 %v4320_v60 }
 0x4d6   : > { %3731 = vmatprep.subr.bf16.mxu0 %v4321_v7 }
 0x4d9   : > { %3732 = vmatpush1.bf16.msra.mxu0 %v4323_v47 }
 0x4da   : > { %3733 = vmatprep.subr.bf16.mxu0 %v4324_v30 }
 0x4dd   : > { %3734 = vmatpush1.bf16.msra.mxu0 %v4326_v58 }
 0x4de   : > { %3735 = vmatprep.subr.bf16.mxu0 %v4327_v20 }
 0x4e1   : > { %3736 = vmatpush1.bf16.msra.mxu0 %v4329_v37 }
 0x4e2   : > { %3737 = vmatprep.subr.bf16.mxu0 %v4330_v41 }
 0x4e5   : > { %3738 = vmatpush2.bf16.msra.mxu0 %v4332_v56 }
 0x4e6   : > { %3739 = vmatprep.subr.bf16.mxu0 %v4333_v39 }
 0x4e9   : > { %3740 = vmatpush2.bf16.msra.mxu0 %v4335_v1 }
 0x4ea   : > { %3741 = vmatprep.subr.bf16.mxu0 %v4336_v6 }
 0x4ed   : > { %3742 = vmatpush2.bf16.msra.mxu0 %v4338_v46 }
 0x4ee   : > { %3743 = vmatprep.subr.bf16.mxu0 %v4339_v53 }
 0x4f1   : > { %3744 = vmatpush2.bf16.msra.mxu0 %v4341_v52 }
 0x4f2   : > { %3745 = vmatprep.subr.bf16.mxu0 %v4342_v28 }
 0x4f5   : > { %3746 = vmatpush2.bf16.msra.mxu0 %v4344_v11 }
 0x4f6   : > { %3747 = vmatprep.subr.bf16.mxu0 %v4345_v40 }
 0x4f9   : > { %3748 = vmatpush2.bf16.msra.mxu0 %v4347_v42 }
 0x4fa   : > { %3749 = vmatprep.subr.bf16.mxu0 %v4348_v2 }
 0x4fd   : > { %3750 = vmatpush2.bf16.msra.mxu0 %v4350_v0 }
 0x4fe   : > { %3751 = vmatprep.subr.bf16.mxu0 %v4351_v38 }
 0x501   : > { %3752 = vmatpush2.bf16.msra.mxu0 %v4353_v26 }
 0x504   : > { %3754 = vmatmul.mubr.bf16.vlgmr.msra.gmra.mxu0 %v3936_v23 }
 0x5c4   : > { %v3755_v36 = vpop.f32.mrf.mxu0 }
 0x5c5   : > { %v3756_v27 = vadd.f32 %v3755_v36, %v3547_v44 }
 0x5c6   : > { %v3757_v25 = vpop.f32.mrf.mxu0 }
 0x5c7   : > { %v3762_v57 = vmax.f32 %v3756_v27, 0.0  ;;  %v3758_v22 = vadd.f32 %v3757_v25, %v3551_v12 }
 0x5c8   : > { %v3759_v16 = vpop.f32.mrf.mxu0 }
 0x5c9   : > { %3764 = vst [vmem:[%s4760_s28] sm:$0xff] %v3762_v57  ;;  %v3763_v5 = vmax.f32 %v3758_v22, 0.0 }
 0x5ca   : > { %v3760_v62 = vpop.f32.mrf.mxu0 }
 0x5cb   : > { %3765 = vst [vmem:[%s4760_s28 + $0x8] sm:$0xff] %v3763_v5 }
 0x5cc PF: > { %s3976_s12 = sshll.u32 %s4452_s15, 8  ;;  %s6274_s26 = sld [smem:[#allocation27_spill]] }
 0x5cd   : > { %s3781_s25 = sshll.u32 %s4760_s28, 4  ;;  %s3767_s30 = scalar_lea.sflag [#allocation5], %s633_s21  ;;  %s3782_s25 = int_to_ptr.vmem [resolvable:$true] %s3781_s25 }
 0x5ce   : > { %s4356_s22 = scalar_lea.vmem %s3782_s25, 256  ;;  %s4470_s20 = smov [#allocation4]  }
 0x5cf   : > { %p4357_p5 = scmp.ne.s32.totalorder %s3782_s25, %s4356_s22  ;;  %s4360_s24 = sshll.u32 %s4470_s20, 4  ;;  %s4361_s24 = int_to_ptr.vmem [resolvable:$false] %s4360_s24 }
 0x5d0   : > { %s4362_s0 = scalar_lea.vmem %s4361_s24, 512  ;;  %p4363_p9 = scmp.lt.s32.totalorder %s3782_s25, %s4361_s24 }
 0x5d1   : > { %p4358_p6 = pnand %p4357_p5, %p4593_p7  ;;  %p4364_p10 = scmp.lt.s32.totalorder %s4362_s0, %s4356_s22 }
 0x5d2   : > { %s3779_s23 = scalar_lea.hbm %s6274_s26, %s3976_s12 }
 0x5d3   : > { %p4359_p8 = pneg %p4358_p6  ;;  %p4365_p11 = por %p4364_p10, %p4363_p9 }
 0x5d5   : > { %p4366_p13 = pnand %p4365_p11, %p4359_p8 }
 0x5d7   : > { %4369 = shalt.err (!%p4366_p13)
}
 0x5d8   : > { %s4370_s15 = scalar_lea.hbm %s3779_s23, 256  ;;  %s4374_s12 = scalar_lea.hbm %s6274_s26, 512 }
 0x5d9   : > { %p4371_p0 = scmp.ne.s32.totalorder %s3779_s23, %s4370_s15  ;;  %p4375_p3 = scmp.lt.s32.totalorder %s3779_s23, %s6274_s26 }
 0x5da   : > { %p4376_p4 = scmp.lt.s32.totalorder %s4374_s12, %s4370_s15 }
 0x5db   : > { %p4372_p1 = pnand %p4371_p0, %p4593_p7 }
 0x5dc   : > { %p4377_p5 = por %p4376_p4, %p4375_p3 }
 0x5dd   : > { %p4373_p2 = pneg %p4372_p1 }
 0x5df   : > { %p4378_p6 = pnand %p4377_p5, %p4373_p2 }
 0x5e1   : > { %4381 = shalt.err (!%p4378_p6)
}
 0x5e2   : > { %4101 = dma.vmem_to_hbm [thread:$0]  (%p4593_p7), %s3782_s25, 256, %s3779_s23, %s3767_s30  }
 0x5e3 PF: > { %s6275_s0 = sld [smem:[#allocation7_spill]]  ;;  %p4107_p8 = scmp.ge.s32.totalorder %s4464_s18, 2 }
 0x5e5   : > { %p4104_p9 = pnand %p4107_p8, %p4601_p12 }
 0x5e7   : > { %p4105_p10 = pneg %p4104_p9 }
 0x5e9   : > { %s3793_s20 = sand.u32 1, %s6275_s0  }
 0x5ea   : > { %s3794_s24 = scalar_lea.sflag [#allocation5], %s3793_s20 }
 0x5eb   : > { %4423 = dma.done.wait (%p4105_p10), %s3794_s24, 256  }
 0x5ec   : > { %4425 = vsyncadd (%p4105_p10), %s3794_s24, 4294967040  ;;  %s22_s18 = sadd.s32 1, %s4464_s18   ;;  %s6277_s27 = sld [smem:[#allocation8_spill]] }
 0x5ed   : > { %p19_p11 = scmp.ge.s32.totalorder %s22_s18, 6   ;;  %s6278_s23 = sld [smem:[#allocation9_spill]] }
 0x5ee   : > { %s6279_s30 = smov %s4432_s10  ;;  %s6280_s10 = smov %s4436_s11 }
 0x5ef   : > { %s6281_s11 = smov %s4606_s9  ;;  %s6282_s12 = smov %s4444_s13 }
 0x5f0   : > { %s6283_s13 = smov %s4609_s19  ;;  %s6284_s14 = smov %s4456_s16 }
 0x5f1   : > { %s6285_s15 = smov %s4460_s17  ;;  %21 = sbr.rel (!%p19_p11) target bundleno = 9 (0x9), region = 142 }
 0x5f2   : > { %s6286_s16 = smov %s6277_s27 }
 0x5f3   : > { %s6287_s17 = smov %s6278_s23 }
 0x5f6   :  { %3799 = vsyncpa [#allocation5], 1 }
 0x5f7   :  { %3801 = vsyncpa [#allocation5 + $0x1], 1 }

</bundles_post_ra>
